<compile_context>
chip_gen: v5e
topology: v5e:2x2
jax: 0.10.0
libtpu: 0.0.40
codegen_flags: <defaults>
</compile_context>

<pallas_src>
import jax
import jax.numpy as jnp
from jax import lax
from jax.experimental import pallas as pl
from jax.experimental.pallas import tpu as pltpu

_EPS = 1e-5
_MAX_LANE_TILE = 32768


# --------------------------------------------------------------------------
# Generation-aware VMEM window / lane-tile selection
# --------------------------------------------------------------------------
def _vmem_limit_bytes():
    """VMEM window for the compiler, derived from the actual chip capacity."""
    cap = 64 * 1024 * 1024  # conservative default (v7x per-core VMEM)
    try:
        info = pltpu.get_tpu_info()
        for name in ("vmem_capacity_bytes", "vmem_size_bytes", "vmem_bytes"):
            c = getattr(info, name, None)
            if c:
                cap = int(c)
                break
    except Exception:
        pass
    # ~48 MiB on v7x (64 MiB physical), up to ~96 MiB on v5e/v6e (128 MiB).
    return min((cap * 3) // 4, 100 * 1024 * 1024)


def _pick_tile(S, per_col_bytes, budget):
    """Largest lane tile (multiple of 128, or full extent) fitting `budget`.

    Returns (tile, needs_pad). needs_pad=True means the spatial extent must be
    zero-padded in glue to a multiple of `tile` (awkward non-2^k shapes)."""
    fit = max(int(budget) // max(int(per_col_bytes), 1), 128)
    if S <= fit and S <= _MAX_LANE_TILE:
        return S, False  # full-extent block: any size is legal
    cap = max(128, (min(fit, _MAX_LANE_TILE) // 128) * 128)
    t = cap
    while t >= 128:
        if S % t == 0:
            return t, False
        t -= 128
    return cap, True


# --------------------------------------------------------------------------
# Kernel 1: fused attention-coefficient path
#   theta(x) + phi(g)  (one concatenated GEMM)  + bias -> relu -> psi -> sigmoid
# --------------------------------------------------------------------------
def _attn_coeff_kernel(xg_ref, w_ref, b_ref, qw_ref, qb_ref, o_ref):
    """xg_ref: (C*8+Cg, ts) bf16 (im2col(x) ++ g); w_ref: (Ci, C*8+Cg) bf16;
    b_ref: (Ci, 1) f32 (phi bias); qw/qb: psi weight column / bias; o: (1, ts)."""
    f = jnp.dot(w_ref[...], xg_ref[...],
                preferred_element_type=jnp.float32) + b_ref[...]   # (Ci, ts)
    f = jnp.maximum(f, 0.0)
    psi = jnp.sum(f * qw_ref[...], axis=0, keepdims=True) + qb_ref[...]
    o_ref[...] = jax.nn.sigmoid(psi)                               # lane-dense


def _attn_coeff(xg, p, *, ts, vmem_limit):
    """xg: (N, K, Sp) bf16 -> sig: (N, 1, Sp) f32."""
    N, K, Sp = xg.shape
    Ci = p["tp_w"].shape[0]
    # TODO(synk): on v5e/v6e (128 MiB VMEM) sweep pipeline_mode=pl.Buffered(3)
    # on the xg stream once tiles get large; keep depth 2 on v7x.
    return pl.pallas_call(
        _attn_coeff_kernel,
        out_shape=jax.ShapeDtypeStruct((N, 1, Sp), jnp.float32),
        grid=(N, Sp // ts),
        in_specs=[
            pl.BlockSpec((None, K, ts), lambda n, s: (n, 0, s)),
            pl.BlockSpec((Ci, K), lambda n, s: (0, 0)),    # weights resident
            pl.BlockSpec((Ci, 1), lambda n, s: (0, 0)),
            pl.BlockSpec((Ci, 1), lambda n, s: (0, 0)),
            pl.BlockSpec((1, 1), lambda n, s: (0, 0)),
        ],
        out_specs=pl.BlockSpec((None, 1, ts), lambda n, s: (n, 0, s)),
        compiler_params=pltpu.CompilerParams(
            dimension_semantics=("parallel", "parallel"),
            vmem_limit_bytes=vmem_limit),
    )(xg, p["tp_w"], p["phi_b"], p["psi_w"], p["psi_b"])


# --------------------------------------------------------------------------
# Kernel 2a: stats pass — z = W·(sig*x)+b per tile; accumulate per-(n,c)
# sum / sumsq in VMEM scratch; finalize to folded affine scale/shift.
# --------------------------------------------------------------------------
def _make_stats_kernel(S, ts, need_mask):
    inv_s = 1.0 / float(S)

    def kernel(x_ref, s_ref, w_ref, b_ref, gma_ref, bta_ref,
               scale_ref, shift_ref, sum_sc, ssq_sc):
        si = pl.program_id(1)

        @pl.when(si == 0)
        def _():
            sum_sc[...] = jnp.zeros_like(sum_sc)
            ssq_sc[...] = jnp.zeros_like(ssq_sc)

        y = (x_ref[...] * s_ref[...]).astype(jnp.bfloat16)          # (C, ts)
        z = jnp.dot(w_ref[...], y,
                    preferred_element_type=jnp.float32) + b_ref[...]
        if need_mask:  # zero-padded spatial tail must not pollute the stats
            pos = si * ts + lax.broadcasted_iota(jnp.int32, z.shape, 1)
            valid = pos < S
            sum_sc[...] += jnp.sum(jnp.where(valid, z, 0.0),
                                   axis=-1, keepdims=True)
            ssq_sc[...] += jnp.sum(jnp.where(valid, z * z, 0.0),
                                   axis=-1, keepdims=True)
        else:
            sum_sc[...] += jnp.sum(z, axis=-1, keepdims=True)
            ssq_sc[...] += jnp.sum(z * z, axis=-1, keepdims=True)

        @pl.when(si == pl.num_programs(1) - 1)
        def _():
            mean = sum_sc[...] * inv_s
            var = jnp.maximum(ssq_sc[...] * inv_s - mean * mean, 0.0)  # biased
            scale = gma_ref[...] * lax.rsqrt(var + _EPS)
            scale_ref[...] = scale
            shift_ref[...] = bta_ref[...] - mean * scale

    return kernel


def _gate_fc_stats(x2, s2, p, *, S, ts, need_mask, vmem_limit):
    N, C, Sp = x2.shape
    kernel = _make_stats_kernel(S, ts, need_mask)
    return pl.pallas_call(
        kernel,
        out_shape=(jax.ShapeDtypeStruct((N, C, 1), jnp.float32),
                   jax.ShapeDtypeStruct((N, C, 1), jnp.float32)),
        grid=(N, Sp // ts),
        in_specs=[
            pl.BlockSpec((None, C, ts), lambda n, s: (n, 0, s)),
            pl.BlockSpec((None, 1, ts), lambda n, s: (n, 0, s)),
            pl.BlockSpec((C, C), lambda n, s: (0, 0)),
            pl.BlockSpec((C, 1), lambda n, s: (0, 0)),
            pl.BlockSpec((C, 1), lambda n, s: (0, 0)),
            pl.BlockSpec((C, 1), lambda n, s: (0, 0)),
        ],
        out_specs=(pl.BlockSpec((None, C, 1), lambda n, s: (n, 0, 0)),
                   pl.BlockSpec((None, C, 1), lambda n, s: (n, 0, 0))),
        scratch_shapes=[pltpu.VMEM((C, 1), jnp.float32),
                        pltpu.VMEM((C, 1), jnp.float32)],
        compiler_params=pltpu.CompilerParams(
            dimension_semantics=("parallel", "arbitrary"),
            vmem_limit_bytes=vmem_limit),
    )(x2, s2, p["fc_w"], p["fc_b"], p["fc_gamma"], p["fc_beta"])


# --------------------------------------------------------------------------
# Kernel 2b: normalize pass — recompute z per tile, apply folded affine.
# --------------------------------------------------------------------------
def _gate_fc_norm_kernel(x_ref, s_ref, w_ref, b_ref, scale_ref, shift_ref,
                         o_ref):
    y = (x_ref[...] * s_ref[...]).astype(jnp.bfloat16)
    z = jnp.dot(w_ref[...], y, preferred_element_type=jnp.float32) + b_ref[...]
    o_ref[...] = (z * scale_ref[...] + shift_ref[...]).astype(o_ref.dtype)


def _gate_fc_norm(x2, s2, scale, shift, p, *, ts, vmem_limit):
    N, C, Sp = x2.shape
    return pl.pallas_call(
        _gate_fc_norm_kernel,
        out_shape=jax.ShapeDtypeStruct((N, C, Sp), jnp.float32),
        grid=(N, Sp // ts),
        in_specs=[
            pl.BlockSpec((None, C, ts), lambda n, s: (n, 0, s)),
            pl.BlockSpec((None, 1, ts), lambda n, s: (n, 0, s)),
            pl.BlockSpec((C, C), lambda n, s: (0, 0)),
            pl.BlockSpec((C, 1), lambda n, s: (0, 0)),
            pl.BlockSpec((None, C, 1), lambda n, s: (n, 0, 0)),
            pl.BlockSpec((None, C, 1), lambda n, s: (n, 0, 0)),
        ],
        out_specs=pl.BlockSpec((None, C, ts), lambda n, s: (n, 0, s)),
        compiler_params=pltpu.CompilerParams(
            dimension_semantics=("parallel", "parallel"),
            vmem_limit_bytes=vmem_limit),
    )(x2, s2, p["fc_w"], p["fc_b"], scale, shift)


# --------------------------------------------------------------------------
# Trilinear resize (align_corners=False) — XLA glue on the TINY gate map only.
# --------------------------------------------------------------------------
def _resize_linear_axis(x, axis, out_size):
    n = x.shape[axis]
    if out_size == n:
        return x
    scale = n / out_size
    src = jnp.clip((jnp.arange(out_size, dtype=jnp.float32) + 0.5) * scale - 0.5,
                   0.0, float(n - 1))
    i0 = jnp.floor(src).astype(jnp.int32)
    i1 = jnp.minimum(i0 + 1, n - 1)
    frac = src - i0.astype(jnp.float32)
    x0 = jnp.take(x, i0, axis=axis)
    x1 = jnp.take(x, i1, axis=axis)
    sh = [1] * x.ndim
    sh[axis] = out_size
    frac = frac.reshape(sh)
    return x0 * (1.0 - frac) + x1 * frac


def resize_trilinear(x, size):
    # TODO(synk): resize of the (N,1,d,h,w) gate map stays in XLA glue; the
    # tensor is tiny so its HBM traffic is negligible.
    for ax, s in zip((2, 3, 4), size):
        x = _resize_linear_axis(x, ax, s)
    return x


# --------------------------------------------------------------------------
# _GridAttentionBlock3D forward
# --------------------------------------------------------------------------
def grid_attention_block_3d(x, g, p):
    """x: (N, C, D, H, W) encoder feature; g: (N, Cg, D/2, H/2, W/2) gate.

    Returns (y, sigm_psi_f) exactly like the PyTorch module."""
    N, C, D, H, W = x.shape
    assert D % 2 == 0 and H % 2 == 0 and W % 2 == 0, "theta conv needs even dims"
    d, h, w = D // 2, H // 2, W // 2
    Cg = g.shape[1]
    assert g.shape[0] == N and g.shape[2:] == (d, h, w)
    S, Sh = D * H * W, d * h * w
    K = C * 8 + Cg

    vmem_limit = _vmem_limit_bytes()
    budget = (vmem_limit * 3) // 5  # headroom for resident weights / scratch

    # --- attention-coefficient path --------------------------------------
    # stride-2 2x2x2 im2col as a pure permutation (no blowup), concatenated
    # with the gate features so the kernel does ONE (Ci, K) GEMM per tile.
    xs = jnp.transpose(
        x.astype(jnp.bfloat16).reshape(N, C, d, 2, h, 2, w, 2),
        (0, 1, 3, 5, 7, 2, 4, 6)).reshape(N, C * 8, Sh)
    g2 = g.astype(jnp.bfloat16).reshape(N, Cg, Sh)
    xg = jnp.concatenate([xs, g2], axis=1)                     # (N, K, Sh)
    # TODO(synk): if a profile shows this transpose+concat as its own HBM
    # pass, fuse the 2x2x2/s2 decimation into the attention kernel (8 strided
    # tap loads from a natural-layout x block) instead of materializing xg.

    per_col1 = 4 * K + 4 * p["tp_w"].shape[0] + 8  # dbl-buf xg + f temp + out
    ts1, pad1 = _pick_tile(Sh, per_col1, budget)
    if pad1:
        shp = ((Sh + ts1 - 1) // ts1) * ts1
        xg = jnp.pad(xg, ((0, 0), (0, 0), (0, shp - Sh)))
    sig = _attn_coeff(xg, p, ts=ts1, vmem_limit=vmem_limit)
    if pad1:
        sig = sig[:, :, :Sh]
    sig = sig.reshape(N, 1, d, h, w)

    # trilinear upsample of the tiny attention map (returned by the module).
    sig_up = resize_trilinear(sig, (D, H, W))

    # --- gating + final 1x1 conv + InstanceNorm (two spatially tiled passes)
    x2 = x.reshape(N, C, S)
    s2 = sig_up.reshape(N, 1, S)
    xb = jnp.dtype(x2.dtype).itemsize
    per_col2 = 2 * (C * xb + 4) + 2 * (C * 4) + 6 * C + 8
    ts2, pad2 = _pick_tile(S, per_col2, budget)
    if pad2:
        sp = ((S + ts2 - 1) // ts2) * ts2
        x2 = jnp.pad(x2, ((0, 0), (0, 0), (0, sp - S)))
        s2 = jnp.pad(s2, ((0, 0), (0, 0), (0, sp - S)))
    scale, shift = _gate_fc_stats(x2, s2, p, S=S, ts=ts2, need_mask=pad2,
                                  vmem_limit=vmem_limit)
    y = _gate_fc_norm(x2, s2, scale, shift, p, ts=ts2, vmem_limit=vmem_limit)
    if pad2:
        y = y[:, :, :S]
    return y.reshape(N, C, D, H, W), sig_up


# --------------------------------------------------------------------------
# Parameters: raw (PyTorch-layout) init + one-time prep into GEMM layout.
# --------------------------------------------------------------------------
def init_raw_params(key, in_c, inter_c, gate_c):
    ks = jax.random.split(key, 8)

    def _w(k, shape, fan_in):
        return jax.random.normal(k, shape, jnp.float32) / jnp.sqrt(float(fan_in))

    return {
        "theta_w": _w(ks[0], (inter_c, in_c, 2, 2, 2), in_c * 8),
        "phi_w": _w(ks[1], (inter_c, gate_c, 1, 1, 1), gate_c),
        "phi_b": 0.1 * jax.random.normal(ks[2], (inter_c,), jnp.float32),
        "psi_w": _w(ks[3], (1, inter_c, 1, 1, 1), inter_c),
        "psi_b": 0.1 * jax.random.normal(ks[4], (1,), jnp.float32),
        "fc_w": _w(ks[5], (in_c, in_c, 1, 1, 1), in_c),
        "fc_b": 0.1 * jax.random.normal(ks[6], (in_c,), jnp.float32),
        "fc_gamma": 1.0 + 0.1 * jax.random.normal(ks[7], (in_c,), jnp.float32),
        "fc_beta": jnp.zeros((in_c,), jnp.float32),
    }


def prep_params(raw):
    """One-time reshape/cast of weights into the kernel GEMM layout."""
    inter_c = raw["theta_w"].shape[0]
    in_c = raw["fc_w"].shape[0]
    gate_c = raw["phi_w"].shape[1]
    tp_w = jnp.concatenate(
        [raw["theta_w"].reshape(inter_c, in_c * 8),
         raw["phi_w"].reshape(inter_c, gate_c)], axis=1).astype(jnp.bfloat16)
    return {
        "tp_w": tp_w,                                     # (Ci, C*8+Cg) bf16
        "phi_b": raw["phi_b"].reshape(inter_c, 1),
        "psi_w": raw["psi_w"].reshape(inter_c, 1),        # column -> sublane reduce
        "psi_b": raw["psi_b"].reshape(1, 1),
        "fc_w": raw["fc_w"].reshape(in_c, in_c).astype(jnp.bfloat16),
        "fc_b": raw["fc_b"].reshape(in_c, 1),
        "fc_gamma": raw["fc_gamma"].reshape(in_c, 1),
        "fc_beta": raw["fc_beta"].reshape(in_c, 1),
    }


# --------------------------------------------------------------------------
# Plain-JAX reference (independent path: XLA conv) for a sanity check.
# --------------------------------------------------------------------------
def reference_forward(x, g, raw):
    dn = lax.conv_dimension_numbers(x.shape, raw["theta_w"].shape,
                                    ("NCDHW", "OIDHW", "NCDHW"))
    theta = lax.conv_general_dilated(x, raw["theta_w"], (2, 2, 2), "VALID",
                                     dimension_numbers=dn)
    inter_c = raw["theta_w"].shape[0]
    in_c = raw["fc_w"].shape[0]
    phi = (jnp.einsum("oi,nidhw->nodhw", raw["phi_w"].reshape(inter_c, -1), g)
           + raw["phi_b"][None, :, None, None, None])
    f = jax.nn.relu(theta + phi)
    psi = (jnp.einsum("oi,nidhw->nodhw", raw["psi_w"].reshape(1, -1), f)
           + raw["psi_b"][None, :, None, None, None])
    sig = jax.nn.sigmoid(psi)
    sig_up = resize_trilinear(sig, x.shape[2:])
    y = sig_up * x
    z = (jnp.einsum("oi,nidhw->nodhw", raw["fc_w"].reshape(in_c, -1), y)
         + raw["fc_b"][None, :, None, None, None])
    mean = z.mean(axis=(2, 3, 4), keepdims=True)
    var = ((z - mean) ** 2).mean(axis=(2, 3, 4), keepdims=True)
    out = ((z - mean) * lax.rsqrt(var + _EPS)
           * raw["fc_gamma"][None, :, None, None, None]
           + raw["fc_beta"][None, :, None, None, None])
    return out, sig_up


# --------------------------------------------------------------------------
if __name__ == "__main__":
    key = jax.random.PRNGKey(0)
    kx, kg, kp = jax.random.split(key, 3)

    N, C, D, H, W = 2, 16, 16, 16, 16          # in_channels = 16
    inter_c, gate_c = 8, 32                    # inter_channels=8, gate_channels=32

    x = jax.random.normal(kx, (N, C, D, H, W), jnp.float32)
    g = jax.random.normal(kg, (N, gate_c, D // 2, H // 2, W // 2), jnp.float32)

    raw = init_raw_params(kp, C, inter_c, gate_c)
    params = prep_params(raw)

    fwd = jax.jit(grid_attention_block_3d)
    y, att = jax.block_until_ready(fwd(x, g, params))

    assert y.shape == (N, C, D, H, W), y.shape
    assert att.shape == (N, 1, D, H, W), att.shape
    assert bool(jnp.all(jnp.isfinite(y))) and bool(jnp.all(jnp.isfinite(att)))

    # loose tolerance: attention path and the final 1x1 conv run bf16 MXU inputs.
    y_ref, att_ref = reference_forward(x, g, raw)
    err_y = float(jnp.max(jnp.abs(y - y_ref)))
    err_a = float(jnp.max(jnp.abs(att - att_ref)))
    assert err_a < 0.05, ("attention map mismatch", err_a)
    assert err_y < 0.2, ("output mismatch", err_y)

    print("KERNEL_OK")
</pallas_src>

<mosaic_0001>
module attributes {stable_mosaic.version = 11 : i64} {
  func.func @_attn_coeff_kernel(%arg0: i32, %arg1: i32, %arg2: memref<1x160x512xbf16, #tpu.memory_space<vmem>>, %arg3: memref<8x160xbf16, #tpu.memory_space<vmem>>, %arg4: memref<8x1xf32, #tpu.memory_space<vmem>>, %arg5: memref<8x1xf32, #tpu.memory_space<vmem>>, %arg6: memref<1x1xf32, #tpu.memory_space<vmem>>, %arg7: memref<1x1x512xf32, #tpu.memory_space<vmem>>) attributes {dimension_semantics = [#tpu.dimension_semantics<parallel>, #tpu.dimension_semantics<parallel>], iteration_bounds = array<i64: 2, 1>, scalar_prefetch = 0 : i64, scratch_operands = 0 : i64, tpu.core_type = #tpu.core_type<tc>, window_params = [{transform_indices = @transform_0, window_bounds = array<i64: 1, 160, 512>}, {pipeline_mode = #tpu.pipeline_mode<synchronous>, transform_indices = @transform_1, window_bounds = array<i64: 8, 160>}, {pipeline_mode = #tpu.pipeline_mode<synchronous>, transform_indices = @transform_2, window_bounds = array<i64: 8, 1>}, {pipeline_mode = #tpu.pipeline_mode<synchronous>, transform_indices = @transform_3, window_bounds = array<i64: 8, 1>}, {pipeline_mode = #tpu.pipeline_mode<synchronous>, transform_indices = @transform_4, window_bounds = array<i64: 1, 1>}, {transform_indices = @transform_5, window_bounds = array<i64: 1, 1, 512>}]} {
    %c0 = arith.constant 0 : index
    %c0_0 = arith.constant 0 : index
    %0 = vector.load %arg3[%c0, %c0_0] : memref<8x160xbf16, #tpu.memory_space<vmem>>, vector<8x160xbf16>
    %c0_1 = arith.constant 0 : index
    %c0_2 = arith.constant 0 : index
    %c0_3 = arith.constant 0 : index
    %1 = vector.load %arg2[%c0_1, %c0_2, %c0_3] : memref<1x160x512xbf16, #tpu.memory_space<vmem>>, vector<1x160x512xbf16>
    %2 = vector.shape_cast %1 : vector<1x160x512xbf16> to vector<160x512xbf16>
    %cst = arith.constant dense<0.000000e+00> : vector<8x512xf32>
    %3 = tpu.matmul %0, %2, %cst {dimension_numbers = #tpu.dot_dimension_numbers<[1], [0], [0], [1], [0, 0, 1, 1], [], []>} : vector<8x160xbf16>, vector<160x512xbf16>, vector<8x512xf32> -> vector<8x512xf32>
    %c0_4 = arith.constant 0 : index
    %c0_5 = arith.constant 0 : index
    %4 = vector.load %arg4[%c0_4, %c0_5] : memref<8x1xf32, #tpu.memory_space<vmem>>, vector<8x1xf32>
    %5 = vector.broadcast %4 : vector<8x1xf32> to vector<8x512xf32>
    %6 = arith.addf %3, %5 : vector<8x512xf32>
    %cst_6 = arith.constant 0.000000e+00 : f32
    %7 = vector.broadcast %cst_6 : f32 to vector<8x512xf32>
    %8 = arith.maximumf %6, %7 : vector<8x512xf32>
    %c0_7 = arith.constant 0 : index
    %c0_8 = arith.constant 0 : index
    %9 = vector.load %arg5[%c0_7, %c0_8] : memref<8x1xf32, #tpu.memory_space<vmem>>, vector<8x1xf32>
    %10 = vector.broadcast %9 : vector<8x1xf32> to vector<8x512xf32>
    %11 = arith.mulf %8, %10 : vector<8x512xf32>
    %cst_9 = arith.constant dense<0.000000e+00> : vector<512xf32>
    %12 = vector.multi_reduction <add>, %11, %cst_9 [0] : vector<8x512xf32> to vector<512xf32>
    %13 = vector.shape_cast %12 : vector<512xf32> to vector<1x512xf32>
    %c0_10 = arith.constant 0 : index
    %c0_11 = arith.constant 0 : index
    %14 = vector.load %arg6[%c0_10, %c0_11] : memref<1x1xf32, #tpu.memory_space<vmem>>, vector<1x1xf32>
    %15 = vector.broadcast %14 : vector<1x1xf32> to vector<1x512xf32>
    %16 = arith.addf %13, %15 : vector<1x512xf32>
    %17 = arith.negf %16 : vector<1x512xf32>
    %18 = math.exp %17 : vector<1x512xf32>
    %cst_12 = arith.constant 1.000000e+00 : f32
    %19 = vector.broadcast %cst_12 : f32 to vector<1x512xf32>
    %20 = arith.addf %19, %18 : vector<1x512xf32>
    %21 = arith.divf %19, %20 : vector<1x512xf32>
    %c0_13 = arith.constant 0 : index
    %c0_14 = arith.constant 0 : index
    %c0_15 = arith.constant 0 : index
    %22 = vector.load %arg7[%c0_13, %c0_14, %c0_15] : memref<1x1x512xf32, #tpu.memory_space<vmem>>, vector<1x1x512xf32>
    %23 = vector.shape_cast %22 : vector<1x1x512xf32> to vector<1x512xf32>
    %24 = vector.shape_cast %21 : vector<1x512xf32> to vector<1x1x512xf32>
    tpu.vector_store %arg7[%c0_13, %c0_14, %c0_15], %24 {strides = array<i32>} : memref<1x1x512xf32, #tpu.memory_space<vmem>>, vector<1x1x512xf32>,
    return
  }
  func.func @transform_0(%arg0: i32, %arg1: i32) -> (i32, i32, i32) {
    %c0_i32 = arith.constant 0 : i32
    %c0_i32_0 = arith.constant 0 : i32
    return %arg0, %c0_i32, %arg1 : i32, i32, i32
  }
  func.func @transform_1(%arg0: i32, %arg1: i32) -> (i32, i32) {
    %c0_i32 = arith.constant 0 : i32
    %c0_i32_0 = arith.constant 0 : i32
    %c0_i32_1 = arith.constant 0 : i32
    return %c0_i32, %c0_i32_0 : i32, i32
  }
  func.func @transform_2(%arg0: i32, %arg1: i32) -> (i32, i32) {
    %c0_i32 = arith.constant 0 : i32
    %c0_i32_0 = arith.constant 0 : i32
    %c0_i32_1 = arith.constant 0 : i32
    return %c0_i32, %c0_i32_0 : i32, i32
  }
  func.func @transform_3(%arg0: i32, %arg1: i32) -> (i32, i32) {
    %c0_i32 = arith.constant 0 : i32
    %c0_i32_0 = arith.constant 0 : i32
    %c0_i32_1 = arith.constant 0 : i32
    return %c0_i32, %c0_i32_0 : i32, i32
  }
  func.func @transform_4(%arg0: i32, %arg1: i32) -> (i32, i32) {
    %c0_i32 = arith.constant 0 : i32
    %c0_i32_0 = arith.constant 0 : i32
    %c0_i32_1 = arith.constant 0 : i32
    return %c0_i32, %c0_i32_0 : i32, i32
  }
  func.func @transform_5(%arg0: i32, %arg1: i32) -> (i32, i32, i32) {
    %c0_i32 = arith.constant 0 : i32
    %c0_i32_0 = arith.constant 0 : i32
    return %arg0, %c0_i32, %arg1 : i32, i32, i32
  }
}

module attributes {stable_mosaic.version = 11 : i64} {
  func.func @kernel(%arg0: i32, %arg1: i32, %arg2: memref<1x16x4096xf32, #tpu.memory_space<vmem>>, %arg3: memref<1x1x4096xf32, #tpu.memory_space<vmem>>, %arg4: memref<16x16xbf16, #tpu.memory_space<vmem>>, %arg5: memref<16x1xf32, #tpu.memory_space<vmem>>, %arg6: memref<16x1xf32, #tpu.memory_space<vmem>>, %arg7: memref<16x1xf32, #tpu.memory_space<vmem>>, %arg8: memref<1x16x1xf32, #tpu.memory_space<vmem>>, %arg9: memref<1x16x1xf32, #tpu.memory_space<vmem>>, %arg10: memref<16x1xf32, #tpu.memory_space<vmem>>, %arg11: memref<16x1xf32, #tpu.memory_space<vmem>>) attributes {dimension_semantics = [#tpu.dimension_semantics<parallel>, #tpu.dimension_semantics<arbitrary>], iteration_bounds = array<i64: 2, 1>, scalar_prefetch = 0 : i64, scratch_operands = 2 : i64, tpu.core_type = #tpu.core_type<tc>, window_params = [{transform_indices = @transform_0, window_bounds = array<i64: 1, 16, 4096>}, {transform_indices = @transform_1, window_bounds = array<i64: 1, 1, 4096>}, {pipeline_mode = #tpu.pipeline_mode<synchronous>, transform_indices = @transform_2, window_bounds = array<i64: 16, 16>}, {pipeline_mode = #tpu.pipeline_mode<synchronous>, transform_indices = @transform_3, window_bounds = array<i64: 16, 1>}, {pipeline_mode = #tpu.pipeline_mode<synchronous>, transform_indices = @transform_4, window_bounds = array<i64: 16, 1>}, {pipeline_mode = #tpu.pipeline_mode<synchronous>, transform_indices = @transform_5, window_bounds = array<i64: 16, 1>}, {transform_indices = @transform_6, window_bounds = array<i64: 1, 16, 1>}, {transform_indices = @transform_7, window_bounds = array<i64: 1, 16, 1>}]} {
    %c0_i32 = arith.constant 0 : i32
    %0 = arith.cmpi eq, %arg1, %c0_i32 : i32
    %1 = arith.extui %0 : i1 to i32
    %c0_i32_0 = arith.constant 0 : i32
    %2 = arith.cmpi ne, %1, %c0_i32_0 : i32
    scf.if %2 {
      %cst_22 = arith.constant 0.000000e+00 : f32
      %29 = vector.broadcast %cst_22 : f32 to vector<16x1xf32>
      %c0_23 = arith.constant 0 : index
      %c0_24 = arith.constant 0 : index
      %30 = vector.load %arg10[%c0_23, %c0_24] : memref<16x1xf32, #tpu.memory_space<vmem>>, vector<16x1xf32>
      tpu.vector_store %arg10[%c0_23, %c0_24], %29 {strides = array<i32>} : memref<16x1xf32, #tpu.memory_space<vmem>>, vector<16x1xf32>,
      %cst_25 = arith.constant 0.000000e+00 : f32
      %31 = vector.broadcast %cst_25 : f32 to vector<16x1xf32>
      %c0_26 = arith.constant 0 : index
      %c0_27 = arith.constant 0 : index
      %32 = vector.load %arg11[%c0_26, %c0_27] : memref<16x1xf32, #tpu.memory_space<vmem>>, vector<16x1xf32>
      tpu.vector_store %arg11[%c0_26, %c0_27], %31 {strides = array<i32>} : memref<16x1xf32, #tpu.memory_space<vmem>>, vector<16x1xf32>,
    } else {
    }
    %c0 = arith.constant 0 : index
    %c0_1 = arith.constant 0 : index
    %c0_2 = arith.constant 0 : index
    %3 = vector.load %arg2[%c0, %c0_1, %c0_2] : memref<1x16x4096xf32, #tpu.memory_space<vmem>>, vector<1x16x4096xf32>
    %4 = vector.shape_cast %3 : vector<1x16x4096xf32> to vector<16x4096xf32>
    %c0_3 = arith.constant 0 : index
    %c0_4 = arith.constant 0 : index
    %c0_5 = arith.constant 0 : index
    %5 = vector.load %arg3[%c0_3, %c0_4, %c0_5] : memref<1x1x4096xf32, #tpu.memory_space<vmem>>, vector<1x1x4096xf32>
    %6 = vector.shape_cast %5 : vector<1x1x4096xf32> to vector<1x4096xf32>
    %7 = vector.broadcast %6 : vector<1x4096xf32> to vector<16x4096xf32>
    %8 = arith.mulf %4, %7 : vector<16x4096xf32>
    %9 = arith.truncf %8 : vector<16x4096xf32> to vector<16x4096xbf16>
    %c0_6 = arith.constant 0 : index
    %c0_7 = arith.constant 0 : index
    %10 = vector.load %arg4[%c0_6, %c0_7] : memref<16x16xbf16, #tpu.memory_space<vmem>>, vector<16x16xbf16>
    %cst = arith.constant dense<0.000000e+00> : vector<16x4096xf32>
    %11 = tpu.matmul %10, %9, %cst {dimension_numbers = #tpu.dot_dimension_numbers<[1], [0], [0], [1], [0, 0, 1, 1], [], []>} : vector<16x16xbf16>, vector<16x4096xbf16>, vector<16x4096xf32> -> vector<16x4096xf32>
    %c0_8 = arith.constant 0 : index
    %c0_9 = arith.constant 0 : index
    %12 = vector.load %arg5[%c0_8, %c0_9] : memref<16x1xf32, #tpu.memory_space<vmem>>, vector<16x1xf32>
    %13 = vector.broadcast %12 : vector<16x1xf32> to vector<16x4096xf32>
    %14 = arith.addf %11, %13 : vector<16x4096xf32>
    %c0_10 = arith.constant 0 : index
    %c0_11 = arith.constant 0 : index
    %15 = vector.load %arg10[%c0_10, %c0_11] : memref<16x1xf32, #tpu.memory_space<vmem>>, vector<16x1xf32>
    %cst_12 = arith.constant dense<0.000000e+00> : vector<16xf32>
    %16 = vector.multi_reduction <add>, %14, %cst_12 [1] : vector<16x4096xf32> to vector<16xf32>
    %17 = vector.shape_cast %16 : vector<16xf32> to vector<16x1xf32>
    %18 = arith.addf %15, %17 : vector<16x1xf32>
    %c0_13 = arith.constant 0 : index
    %c0_14 = arith.constant 0 : index
    %19 = vector.load %arg10[%c0_13, %c0_14] : memref<16x1xf32, #tpu.memory_space<vmem>>, vector<16x1xf32>
    tpu.vector_store %arg10[%c0_13, %c0_14], %18 {strides = array<i32>} : memref<16x1xf32, #tpu.memory_space<vmem>>, vector<16x1xf32>,
    %c0_15 = arith.constant 0 : index
    %c0_16 = arith.constant 0 : index
    %20 = vector.load %arg11[%c0_15, %c0_16] : memref<16x1xf32, #tpu.memory_space<vmem>>, vector<16x1xf32>
    %21 = arith.mulf %14, %14 : vector<16x4096xf32>
    %cst_17 = arith.constant dense<0.000000e+00> : vector<16xf32>
    %22 = vector.multi_reduction <add>, %21, %cst_17 [1] : vector<16x4096xf32> to vector<16xf32>
    %23 = vector.shape_cast %22 : vector<16xf32> to vector<16x1xf32>
    %24 = arith.addf %20, %23 : vector<16x1xf32>
    %c0_18 = arith.constant 0 : index
    %c0_19 = arith.constant 0 : index
    %25 = vector.load %arg11[%c0_18, %c0_19] : memref<16x1xf32, #tpu.memory_space<vmem>>, vector<16x1xf32>
    tpu.vector_store %arg11[%c0_18, %c0_19], %24 {strides = array<i32>} : memref<16x1xf32, #tpu.memory_space<vmem>>, vector<16x1xf32>,
    %c0_i32_20 = arith.constant 0 : i32
    %26 = arith.cmpi eq, %arg1, %c0_i32_20 : i32
    %27 = arith.extui %26 : i1 to i32
    %c0_i32_21 = arith.constant 0 : i32
    %28 = arith.cmpi ne, %27, %c0_i32_21 : i32
    scf.if %28 {
      %c0_22 = arith.constant 0 : index
      %c0_23 = arith.constant 0 : index
      %29 = vector.load %arg10[%c0_22, %c0_23] : memref<16x1xf32, #tpu.memory_space<vmem>>, vector<16x1xf32>
      %cst_24 = arith.constant 2.44140625E-4 : f32
      %30 = vector.broadcast %cst_24 : f32 to vector<16x1xf32>
      %31 = arith.mulf %29, %30 : vector<16x1xf32>
      %c0_25 = arith.constant 0 : index
      %c0_26 = arith.constant 0 : index
      %32 = vector.load %arg11[%c0_25, %c0_26] : memref<16x1xf32, #tpu.memory_space<vmem>>, vector<16x1xf32>
      %cst_27 = arith.constant 2.44140625E-4 : f32
      %33 = vector.broadcast %cst_27 : f32 to vector<16x1xf32>
      %34 = arith.mulf %32, %33 : vector<16x1xf32>
      %35 = arith.mulf %31, %31 : vector<16x1xf32>
      %36 = arith.subf %34, %35 : vector<16x1xf32>
      %cst_28 = arith.constant 0.000000e+00 : f32
      %37 = vector.broadcast %cst_28 : f32 to vector<16x1xf32>
      %38 = arith.maximumf %36, %37 : vector<16x1xf32>
      %c0_29 = arith.constant 0 : index
      %c0_30 = arith.constant 0 : index
      %39 = vector.load %arg6[%c0_29, %c0_30] : memref<16x1xf32, #tpu.memory_space<vmem>>, vector<16x1xf32>
      %cst_31 = arith.constant 9.99999974E-6 : f32
      %40 = vector.broadcast %cst_31 : f32 to vector<16x1xf32>
      %41 = arith.addf %38, %40 : vector<16x1xf32>
      %42 = math.rsqrt %41 : vector<16x1xf32>
      %43 = arith.mulf %39, %42 : vector<16x1xf32>
      %c0_32 = arith.constant 0 : index
      %c0_33 = arith.constant 0 : index
      %c0_34 = arith.constant 0 : index
      %44 = vector.load %arg8[%c0_32, %c0_33, %c0_34] : memref<1x16x1xf32, #tpu.memory_space<vmem>>, vector<1x16x1xf32>
      %45 = vector.shape_cast %44 : vector<1x16x1xf32> to vector<16x1xf32>
      %46 = vector.shape_cast %43 : vector<16x1xf32> to vector<1x16x1xf32>
      tpu.vector_store %arg8[%c0_32, %c0_33, %c0_34], %46 {strides = array<i32>} : memref<1x16x1xf32, #tpu.memory_space<vmem>>, vector<1x16x1xf32>,
      %c0_35 = arith.constant 0 : index
      %c0_36 = arith.constant 0 : index
      %47 = vector.load %arg7[%c0_35, %c0_36] : memref<16x1xf32, #tpu.memory_space<vmem>>, vector<16x1xf32>
      %48 = arith.mulf %31, %43 : vector<16x1xf32>
      %49 = arith.subf %47, %48 : vector<16x1xf32>
      %c0_37 = arith.constant 0 : index
      %c0_38 = arith.constant 0 : index
      %c0_39 = arith.constant 0 : index
      %50 = vector.load %arg9[%c0_37, %c0_38, %c0_39] : memref<1x16x1xf32, #tpu.memory_space<vmem>>, vector<1x16x1xf32>
      %51 = vector.shape_cast %50 : vector<1x16x1xf32> to vector<16x1xf32>
      %52 = vector.shape_cast %49 : vector<16x1xf32> to vector<1x16x1xf32>
      tpu.vector_store %arg9[%c0_37, %c0_38, %c0_39], %52 {strides = array<i32>} : memref<1x16x1xf32, #tpu.memory_space<vmem>>, vector<1x16x1xf32>,
    } else {
    }
    return
  }
  func.func @transform_0(%arg0: i32, %arg1: i32) -> (i32, i32, i32) {
    %c0_i32 = arith.constant 0 : i32
    %c0_i32_0 = arith.constant 0 : i32
    return %arg0, %c0_i32, %arg1 : i32, i32, i32
  }
  func.func @transform_1(%arg0: i32, %arg1: i32) -> (i32, i32, i32) {
    %c0_i32 = arith.constant 0 : i32
    %c0_i32_0 = arith.constant 0 : i32
    return %arg0, %c0_i32, %arg1 : i32, i32, i32
  }
  func.func @transform_2(%arg0: i32, %arg1: i32) -> (i32, i32) {
    %c0_i32 = arith.constant 0 : i32
    %c0_i32_0 = arith.constant 0 : i32
    %c0_i32_1 = arith.constant 0 : i32
    return %c0_i32, %c0_i32_0 : i32, i32
  }
  func.func @transform_3(%arg0: i32, %arg1: i32) -> (i32, i32) {
    %c0_i32 = arith.constant 0 : i32
    %c0_i32_0 = arith.constant 0 : i32
    %c0_i32_1 = arith.constant 0 : i32
    return %c0_i32, %c0_i32_0 : i32, i32
  }
  func.func @transform_4(%arg0: i32, %arg1: i32) -> (i32, i32) {
    %c0_i32 = arith.constant 0 : i32
    %c0_i32_0 = arith.constant 0 : i32
    %c0_i32_1 = arith.constant 0 : i32
    return %c0_i32, %c0_i32_0 : i32, i32
  }
  func.func @transform_5(%arg0: i32, %arg1: i32) -> (i32, i32) {
    %c0_i32 = arith.constant 0 : i32
    %c0_i32_0 = arith.constant 0 : i32
    %c0_i32_1 = arith.constant 0 : i32
    return %c0_i32, %c0_i32_0 : i32, i32
  }
  func.func @transform_6(%arg0: i32, %arg1: i32) -> (i32, i32, i32) {
    %c0_i32 = arith.constant 0 : i32
    %c0_i32_0 = arith.constant 0 : i32
    %c0_i32_1 = arith.constant 0 : i32
    return %arg0, %c0_i32, %c0_i32_0 : i32, i32, i32
  }
  func.func @transform_7(%arg0: i32, %arg1: i32) -> (i32, i32, i32) {
    %c0_i32 = arith.constant 0 : i32
    %c0_i32_0 = arith.constant 0 : i32
    %c0_i32_1 = arith.constant 0 : i32
    return %arg0, %c0_i32, %c0_i32_0 : i32, i32, i32
  }
}

module attributes {stable_mosaic.version = 11 : i64} {
  func.func @_gate_fc_norm_kernel(%arg0: i32, %arg1: i32, %arg2: memref<1x16x4096xf32, #tpu.memory_space<vmem>>, %arg3: memref<1x1x4096xf32, #tpu.memory_space<vmem>>, %arg4: memref<16x16xbf16, #tpu.memory_space<vmem>>, %arg5: memref<16x1xf32, #tpu.memory_space<vmem>>, %arg6: memref<1x16x1xf32, #tpu.memory_space<vmem>>, %arg7: memref<1x16x1xf32, #tpu.memory_space<vmem>>, %arg8: memref<1x16x4096xf32, #tpu.memory_space<vmem>>) attributes {dimension_semantics = [#tpu.dimension_semantics<parallel>, #tpu.dimension_semantics<parallel>], iteration_bounds = array<i64: 2, 1>, scalar_prefetch = 0 : i64, scratch_operands = 0 : i64, tpu.core_type = #tpu.core_type<tc>, window_params = [{transform_indices = @transform_0, window_bounds = array<i64: 1, 16, 4096>}, {transform_indices = @transform_1, window_bounds = array<i64: 1, 1, 4096>}, {pipeline_mode = #tpu.pipeline_mode<synchronous>, transform_indices = @transform_2, window_bounds = array<i64: 16, 16>}, {pipeline_mode = #tpu.pipeline_mode<synchronous>, transform_indices = @transform_3, window_bounds = array<i64: 16, 1>}, {transform_indices = @transform_4, window_bounds = array<i64: 1, 16, 1>}, {transform_indices = @transform_5, window_bounds = array<i64: 1, 16, 1>}, {transform_indices = @transform_6, window_bounds = array<i64: 1, 16, 4096>}]} {
    %c0 = arith.constant 0 : index
    %c0_0 = arith.constant 0 : index
    %c0_1 = arith.constant 0 : index
    %0 = vector.load %arg2[%c0, %c0_0, %c0_1] : memref<1x16x4096xf32, #tpu.memory_space<vmem>>, vector<1x16x4096xf32>
    %1 = vector.shape_cast %0 : vector<1x16x4096xf32> to vector<16x4096xf32>
    %c0_2 = arith.constant 0 : index
    %c0_3 = arith.constant 0 : index
    %c0_4 = arith.constant 0 : index
    %2 = vector.load %arg3[%c0_2, %c0_3, %c0_4] : memref<1x1x4096xf32, #tpu.memory_space<vmem>>, vector<1x1x4096xf32>
    %3 = vector.shape_cast %2 : vector<1x1x4096xf32> to vector<1x4096xf32>
    %4 = vector.broadcast %3 : vector<1x4096xf32> to vector<16x4096xf32>
    %5 = arith.mulf %1, %4 : vector<16x4096xf32>
    %6 = arith.truncf %5 : vector<16x4096xf32> to vector<16x4096xbf16>
    %c0_5 = arith.constant 0 : index
    %c0_6 = arith.constant 0 : index
    %7 = vector.load %arg4[%c0_5, %c0_6] : memref<16x16xbf16, #tpu.memory_space<vmem>>, vector<16x16xbf16>
    %cst = arith.constant dense<0.000000e+00> : vector<16x4096xf32>
    %8 = tpu.matmul %7, %6, %cst {dimension_numbers = #tpu.dot_dimension_numbers<[1], [0], [0], [1], [0, 0, 1, 1], [], []>} : vector<16x16xbf16>, vector<16x4096xbf16>, vector<16x4096xf32> -> vector<16x4096xf32>
    %c0_7 = arith.constant 0 : index
    %c0_8 = arith.constant 0 : index
    %9 = vector.load %arg5[%c0_7, %c0_8] : memref<16x1xf32, #tpu.memory_space<vmem>>, vector<16x1xf32>
    %10 = vector.broadcast %9 : vector<16x1xf32> to vector<16x4096xf32>
    %11 = arith.addf %8, %10 : vector<16x4096xf32>
    %c0_9 = arith.constant 0 : index
    %c0_10 = arith.constant 0 : index
    %c0_11 = arith.constant 0 : index
    %12 = vector.load %arg6[%c0_9, %c0_10, %c0_11] : memref<1x16x1xf32, #tpu.memory_space<vmem>>, vector<1x16x1xf32>
    %13 = vector.shape_cast %12 : vector<1x16x1xf32> to vector<16x1xf32>
    %14 = vector.broadcast %13 : vector<16x1xf32> to vector<16x4096xf32>
    %15 = arith.mulf %11, %14 : vector<16x4096xf32>
    %c0_12 = arith.constant 0 : index
    %c0_13 = arith.constant 0 : index
    %c0_14 = arith.constant 0 : index
    %16 = vector.load %arg7[%c0_12, %c0_13, %c0_14] : memref<1x16x1xf32, #tpu.memory_space<vmem>>, vector<1x16x1xf32>
    %17 = vector.shape_cast %16 : vector<1x16x1xf32> to vector<16x1xf32>
    %18 = vector.broadcast %17 : vector<16x1xf32> to vector<16x4096xf32>
    %19 = arith.addf %15, %18 : vector<16x4096xf32>
    %c0_15 = arith.constant 0 : index
    %c0_16 = arith.constant 0 : index
    %c0_17 = arith.constant 0 : index
    %20 = vector.load %arg8[%c0_15, %c0_16, %c0_17] : memref<1x16x4096xf32, #tpu.memory_space<vmem>>, vector<1x16x4096xf32>
    %21 = vector.shape_cast %20 : vector<1x16x4096xf32> to vector<16x4096xf32>
    %22 = vector.shape_cast %19 : vector<16x4096xf32> to vector<1x16x4096xf32>
    tpu.vector_store %arg8[%c0_15, %c0_16, %c0_17], %22 {strides = array<i32>} : memref<1x16x4096xf32, #tpu.memory_space<vmem>>, vector<1x16x4096xf32>,
    return
  }
  func.func @transform_0(%arg0: i32, %arg1: i32) -> (i32, i32, i32) {
    %c0_i32 = arith.constant 0 : i32
    %c0_i32_0 = arith.constant 0 : i32
    return %arg0, %c0_i32, %arg1 : i32, i32, i32
  }
  func.func @transform_1(%arg0: i32, %arg1: i32) -> (i32, i32, i32) {
    %c0_i32 = arith.constant 0 : i32
    %c0_i32_0 = arith.constant 0 : i32
    return %arg0, %c0_i32, %arg1 : i32, i32, i32
  }
  func.func @transform_2(%arg0: i32, %arg1: i32) -> (i32, i32) {
    %c0_i32 = arith.constant 0 : i32
    %c0_i32_0 = arith.constant 0 : i32
    %c0_i32_1 = arith.constant 0 : i32
    return %c0_i32, %c0_i32_0 : i32, i32
  }
  func.func @transform_3(%arg0: i32, %arg1: i32) -> (i32, i32) {
    %c0_i32 = arith.constant 0 : i32
    %c0_i32_0 = arith.constant 0 : i32
    %c0_i32_1 = arith.constant 0 : i32
    return %c0_i32, %c0_i32_0 : i32, i32
  }
  func.func @transform_4(%arg0: i32, %arg1: i32) -> (i32, i32, i32) {
    %c0_i32 = arith.constant 0 : i32
    %c0_i32_0 = arith.constant 0 : i32
    %c0_i32_1 = arith.constant 0 : i32
    return %arg0, %c0_i32, %c0_i32_0 : i32, i32, i32
  }
  func.func @transform_5(%arg0: i32, %arg1: i32) -> (i32, i32, i32) {
    %c0_i32 = arith.constant 0 : i32
    %c0_i32_0 = arith.constant 0 : i32
    %c0_i32_1 = arith.constant 0 : i32
    return %arg0, %c0_i32, %c0_i32_0 : i32, i32, i32
  }
  func.func @transform_6(%arg0: i32, %arg1: i32) -> (i32, i32, i32) {
    %c0_i32 = arith.constant 0 : i32
    %c0_i32_0 = arith.constant 0 : i32
    return %arg0, %c0_i32, %arg1 : i32, i32, i32
  }
}

</mosaic_0001>

<bundles_post_ra>
// kernel: grid_attention_block_3d.3
= control target key start
LH: loop header
LB: loop body
LE: loop exit
PB: predicated region body
PF: predicated region fallthrough
CT: control target
= control target key end

     0   :  { %s1170_s20 = smov 0   ;;  %s1172_s21 = smov 0   ;;  %s1346_s0 = inlined_call_operand.vmem [shape: bf16[2,160,512], index: 0, kind: input, shape index: {}]   ;;  %s1347_s1 = inlined_call_operand.vmem [shape: bf16[8,160], index: 1, kind: input, shape index: {}]   ;;  %s1348_s2 = inlined_call_operand.vmem [shape: f32[8,1], index: 2, kind: input, shape index: {}]   ;;  %s1349_s3 = inlined_call_operand.vmem [shape: f32[8,1], index: 3, kind: input, shape index: {}]   ;;  %s1350_s4 = inlined_call_operand.<no memory space> [shape: f32[1,1], index: 4, kind: input, shape index: {}]   ;;  %s1351_s5 = inlined_call_operand.vmem [shape: f32[2,1,512], index: 5, kind: output, shape index: {}]  }
   0x1   :  { %v10_v0 = vstv %s1350_s4  ;;  %s1174_s22 = smov 0  }
   0x2   :  { %11 = vst [vmem:[#allocation2] sm:$0x1] %v10_v0 }
   0x3 LB: > { %s29_s4 = sadd.s32 1, %s1130_s21  ;;  %p855_p0 = scmp.ge.s32.totalorder %s1134_s22, 1  ;;  %s1134_s22 = sphi %s1174_s22, %s17_s22   ;;  %s1130_s21 = sphi %s1172_s21, %s1359_s21   ;;  %s1126_s20 = sphi %s1170_s20, %s1358_s20  }
   0x4   : > { %p31_p1 = scmp.ge.s32.totalorder %s29_s4, 2  ;;  %p210_p2 = scmp.lt.s32.totalorder %s1134_s22, 3 }
   0x6   : > { %s1361_s4 = smov (%p31_p1, %s29_s4), 0  ;;  %p211_p3 = pnand %p855_p0, %p210_p2 }
   0x7   : > { %p246_p4 = scmp.lt.s32.totalorder (!%p211_p3), %s1126_s20, 1 }
   0x8   : > { %214 = sbr.rel (%p211_p3) target bundleno = 253 (0xfd), region = 40 }
   0xd   : > { %s1363_s20 = smov (!%p246_p4, %s1126_s20), 1  ;;  %v1199_v1 = vld [vmem:[%s1347_s1] sm:$0xff]  ;;  %vm518_vm0 = vcmask 261120  }
   0xe   : > { %s1068_s23 = smul.u32 320, %s1363_s20  ;;  %v314_v18 = vunpack.c.h.b16 %v1199_v1  ;;  %s857_s8 = sshll.u32 %s1363_s20, 2 }
   0xf   : > { %s262_s11 = scalar_lea.vmem %s1351_s5, %s857_s8 }
  0x10   : > { %s1194_s26 = scalar_lea.vmem %s1346_s0, %s1068_s23  ;;  %v1226_v37 = vpack.c.b16 %v314_v18, %v314_v18 }
  0x11   : > { %v972_v2 = vld [vmem:[%s1194_s26 + $0xe0] sm:$0xf]  ;;  %v1058_v3 = vld [vmem:[%s1194_s26 + $0xec] sm:$0xf0]  ;;  %v1056_v7 = vld [vmem:[%s1194_s26 + $0xe4] sm:$0xf] }
  0x12   : > { %v1004_v4 = vld [vmem:[%s1194_s26 + $0x120] sm:$0xf]  ;;  %v973_v5 = vor.u32 %v1058_v3, %v972_v2  ;;  %v1066_v6 = vld [vmem:[%s1194_s26 + $0x12c] sm:$0xf0]  ;;  %v974_v8 = vld [vmem:[%s1194_s26 + $0xf0] sm:$0xf0] }
  0x13   : > { %v1005_v9 = vor.u32 %v1066_v6, %v1004_v4  ;;  %v977_v10 = vor.u32 %v1056_v7, %v974_v8  ;;  %v1012_v11 = vld [vmem:[%s1194_s26 + $0x128] sm:$0xf]  ;;  %v1067_v12 = vld [vmem:[%s1194_s26 + $0x134] sm:$0xf0]  ;;  %v956_v13 = vld [vmem:[%s1194_s26 + $0xc0] sm:$0xf] }
  0x14   : > { %522 = vmatpush.bf16.msra.mxu0 %v973_v5  ;;  %v1013_v14 = vor.u32 %v1067_v12, %v1012_v11  ;;  %v1054_v15 = vld [vmem:[%s1194_s26 + $0xcc] sm:$0xf0]  ;;  %v988_v16 = vld [vmem:[%s1194_s26 + $0x100] sm:$0xf]  ;;  %v1052_v21 = vld [vmem:[%s1194_s26 + $0xc4] sm:$0xf] }
  0x15   : > { %v1062_v17 = vld [vmem:[%s1194_s26 + $0x10c] sm:$0xf0]  ;;  %541 = vmatpush.bf16.msra.mxu1 %v1005_v9  ;;  %548 = vmatpush.bf16.msra.mxu2 %v977_v10  ;;  %v957_v19 = vor.u32 %v1054_v15, %v956_v13  ;;  %v958_v22 = vld [vmem:[%s1194_s26 + $0xd0] sm:$0xf0]  ;;  %v980_v23 = vld [vmem:[%s1194_s26 + $0xe8] sm:$0xf] }
  0x16   : > { %v989_v20 = vor.u32 %v1062_v17, %v988_v16  ;;  %593 = vmatpush.bf16.msra.mxu3 %v1013_v14  ;;  %v961_v24 = vor.u32 %v1052_v21, %v958_v22  ;;  %v1059_v25 = vld [vmem:[%s1194_s26 + $0xf4] sm:$0xf0]  ;;  %v996_v26 = vld [vmem:[%s1194_s26 + $0x108] sm:$0xf]  ;;  %v1057_v30 = vld [vmem:[%s1194_s26 + $0xec] sm:$0xf] }
  0x17   : > { %v1063_v27 = vld [vmem:[%s1194_s26 + $0x114] sm:$0xf0]  ;;  %v981_v28 = vor.u32 %v1059_v25, %v980_v23  ;;  %v982_v31 = vld [vmem:[%s1194_s26 + $0xf8] sm:$0xf0]  ;;  %v940_v32 = vld [vmem:[%s1194_s26 + $0xa0] sm:$0xf] }
  0x18   : > { %v997_v29 = vor.u32 %v1063_v27, %v996_v26  ;;  %523 = vmatpush.bf16.msra.mxu0 %v957_v19  ;;  %v985_v33 = vor.u32 %v1057_v30, %v982_v31  ;;  %v1050_v34 = vld [vmem:[%s1194_s26 + $0xac] sm:$0xf0]  ;;  %v1048_v35 = vld [vmem:[%s1194_s26 + $0xa4] sm:$0xf]  ;;  %v942_v36 = vld [vmem:[%s1194_s26 + $0xb0] sm:$0xf0] }
  0x19   : > { %542 = vmatpush.bf16.msra.mxu1 %v989_v20  ;;  %549 = vmatpush.bf16.msra.mxu2 %v961_v24  ;;  %v941_v38 = vor.u32 %v1050_v34, %v940_v32  ;;  %v945_v39 = vor.u32 %v1048_v35, %v942_v36  ;;  %v964_v40 = vld [vmem:[%s1194_s26 + $0xc8] sm:$0xf]  ;;  %v1055_v41 = vld [vmem:[%s1194_s26 + $0xd4] sm:$0xf0]  ;;  %v1053_v42 = vld [vmem:[%s1194_s26 + $0xcc] sm:$0xf] }
  0x1a   : > { %594 = vmatpush.bf16.msra.mxu3 %v997_v29  ;;  %v965_v43 = vor.u32 %v1055_v41, %v964_v40  ;;  %v966_v44 = vld [vmem:[%s1194_s26 + $0xd8] sm:$0xf0]  ;;  %v924_v45 = vld [vmem:[%s1194_s26 + $0x80] sm:$0xf]  ;;  %v1046_v46 = vld [vmem:[%s1194_s26 + $0x8c] sm:$0xf0]  ;;  %v313_v41 = vunpack.c.l.b16 %v1199_v1 }
  0x1b   : > { %v969_v47 = vor.u32 %v1053_v42, %v966_v44  ;;  %v1044_v48 = vld [vmem:[%s1194_s26 + $0x84] sm:$0xf]  ;;  %v926_v49 = vld [vmem:[%s1194_s26 + $0x90] sm:$0xf0]  ;;  %v948_v50 = vld [vmem:[%s1194_s26 + $0xa8] sm:$0xf]  ;;  %v925_v51 = vor.u32 %v1046_v46, %v924_v45 }
  0x1c   : > { %524 = vmatpush.bf16.msra.mxu0 %v941_v38  ;;  %v1051_v52 = vld [vmem:[%s1194_s26 + $0xb4] sm:$0xf0]  ;;  %v1049_v53 = vld [vmem:[%s1194_s26 + $0xac] sm:$0xf]  ;;  %v950_v54 = vld [vmem:[%s1194_s26 + $0xb8] sm:$0xf0]  ;;  %1018 = vmatmul.msk.bf16.vlgmr.msra.gmra.mxu1 %vm518_vm0, %v1226_v37  ;;  %v929_v55 = vor.u32 %v1044_v48, %v926_v49 }
  0x1d   : > { %574 = vmatpush.bf16.msrb.mxu1 %v981_v28  ;;  %550 = vmatpush.bf16.msra.mxu2 %v945_v39  ;;  %v908_v56 = vld [vmem:[%s1194_s26 + $0x60] sm:$0xf]  ;;  %v1042_v57 = vld [vmem:[%s1194_s26 + $0x6c] sm:$0xf0]  ;;  %v949_v58 = vor.u32 %v1051_v52, %v948_v50  ;;  %v1040_v59 = vld [vmem:[%s1194_s26 + $0x64] sm:$0xf]  ;;  %v953_v61 = vor.u32 %v1049_v53, %v950_v54 }
  0x1e   : > { %600 = vmatpush.bf16.msrb.mxu3 %v985_v33  ;;  %v910_v60 = vld [vmem:[%s1194_s26 + $0x70] sm:$0xf0]  ;;  %v932_v62 = vld [vmem:[%s1194_s26 + $0x88] sm:$0xf]  ;;  %v1047_v63 = vld [vmem:[%s1194_s26 + $0x94] sm:$0xf0]  ;;  %v909_v0 = vor.u32 %v1042_v57, %v908_v56  ;;  %v315_v56 = vpack.c.b16 %v313_v41, %v313_v41 }
  0x1f   : > { %1020 = vmatmul.msk.bf16.vlgmr.msra.gmra.mxu3 %vm518_vm0, %v1226_v37  ;;  %v1045_v2 = vld [vmem:[%s1194_s26 + $0x8c] sm:$0xf]  ;;  %v934_v3 = vld [vmem:[%s1194_s26 + $0x98] sm:$0xf0]  ;;  %v913_v4 = vor.u32 %v1040_v59, %v910_v60  ;;  %v892_v5 = vld [vmem:[%s1194_s26 + $0x40] sm:$0xf]  ;;  %v933_v7 = vor.u32 %v1047_v63, %v932_v62 }
  0x20   : > { %525 = vmatpush.bf16.msra.mxu0 %v925_v51  ;;  %v1038_v6 = vld [vmem:[%s1194_s26 + $0x4c] sm:$0xf0]  ;;  %v1036_v8 = vld [vmem:[%s1194_s26 + $0x44] sm:$0xf]  ;;  %v894_v9 = vld [vmem:[%s1194_s26 + $0x50] sm:$0xf0]  ;;  %v937_v10 = vor.u32 %v1045_v2, %v934_v3 }
  0x21   : > { %575 = vmatpush.bf16.msrb.mxu1 %v965_v43  ;;  %551 = vmatpush.bf16.msra.mxu2 %v929_v55  ;;  %v916_v11 = vld [vmem:[%s1194_s26 + $0x68] sm:$0xf]  ;;  %v1043_v12 = vld [vmem:[%s1194_s26 + $0x74] sm:$0xf0]  ;;  %v893_v13 = vor.u32 %v1038_v6, %v892_v5  ;;  %v1041_v14 = vld [vmem:[%s1194_s26 + $0x6c] sm:$0xf]  ;;  %v897_v16 = vor.u32 %v1036_v8, %v894_v9 }
  0x22   : > { %601 = vmatpush.bf16.msrb.mxu3 %v969_v47  ;;  %v918_v15 = vld [vmem:[%s1194_s26 + $0x78] sm:$0xf0]  ;;  %v876_v17 = vld [vmem:[%s1194_s26 + $0x20] sm:$0xf]  ;;  %v1034_v18 = vld [vmem:[%s1194_s26 + $0x2c] sm:$0xf0]  ;;  %v917_v19 = vor.u32 %v1043_v12, %v916_v11 }
  0x23   : > { %v1032_v20 = vld [vmem:[%s1194_s26 + $0x24] sm:$0xf]  ;;  %v878_v21 = vld [vmem:[%s1194_s26 + $0x30] sm:$0xf0]  ;;  %v921_v22 = vor.u32 %v1041_v14, %v918_v15  ;;  %v900_v23 = vld [vmem:[%s1194_s26 + $0x48] sm:$0xf]  ;;  %v877_v26 = vor.u32 %v1034_v18, %v876_v17 }
  0x24   : > { %526 = vmatpush.bf16.msra.mxu0 %v909_v0  ;;  %v1039_v24 = vld [vmem:[%s1194_s26 + $0x54] sm:$0xf0]  ;;  %v1037_v25 = vld [vmem:[%s1194_s26 + $0x4c] sm:$0xf]  ;;  %v902_v27 = vld [vmem:[%s1194_s26 + $0x58] sm:$0xf0]  ;;  %v881_v30 = vor.u32 %v1032_v20, %v878_v21 }
  0x25   : > { %576 = vmatpush.bf16.msrb.mxu1 %v949_v58  ;;  %552 = vmatpush.bf16.msra.mxu2 %v913_v4  ;;  %v860_v28 = vld [vmem:[%s1194_s26] sm:$0xf]  ;;  %v1030_v29 = vld [vmem:[%s1194_s26 + $0xc] sm:$0xf0]  ;;  %v1028_v31 = vld [vmem:[%s1194_s26 + $0x4] sm:$0xf]  ;;  %v901_v34 = vor.u32 %v1039_v24, %v900_v23  ;;  %v905_v39 = vor.u32 %v1037_v25, %v902_v27 }
  0x26   : > { %602 = vmatpush.bf16.msrb.mxu3 %v953_v61  ;;  %v862_v32 = vld [vmem:[%s1194_s26 + $0x10] sm:$0xf0]  ;;  %v884_v33 = vld [vmem:[%s1194_s26 + $0x28] sm:$0xf]  ;;  %v1065_v35 = vld [vmem:[%s1194_s26 + $0x12c] sm:$0xf]  ;;  %v861_v45 = vor.u32 %v1030_v29, %v860_v28 }
  0x27   : > { %v1014_v36 = vld [vmem:[%s1194_s26 + $0x138] sm:$0xf0]  ;;  %v306_v38 = vld [vmem:[%s1348_s2] sm:$0xff]  ;;  %v1035_v40 = vld [vmem:[%s1194_s26 + $0x34] sm:$0xf0]  ;;  %v1136_v44 = vmov 0   ;;  %v865_v49 = vor.u32 %v1028_v31, %v862_v32 }
  0x28   : > { %527 = vmatpush.bf16.msra.mxu0 %v893_v13  ;;  %v1064_v42 = vld [vmem:[%s1194_s26 + $0x124] sm:$0xf]  ;;  %v1006_v43 = vld [vmem:[%s1194_s26 + $0x130] sm:$0xf0]  ;;  %1094 = vset.pattern.permute.xlu0 %v1136_v44  ;;  %v1033_v46 = vld [vmem:[%s1194_s26 + $0x2c] sm:$0xf]  ;;  %v1017_v50 = vor.u32 %v1065_v35, %v1014_v36  ;;  %v885_v1 = vor.u32 %v1035_v40, %v884_v33 }
  0x29   : > { %577 = vmatpush.bf16.msrb.mxu1 %v933_v7  ;;  %553 = vmatpush.bf16.msra.mxu2 %v897_v16  ;;  %v886_v47 = vld [vmem:[%s1194_s26 + $0x38] sm:$0xf0]  ;;  %v664_v48 = vld [vmem:[#allocation2] sm:$0x1]  ;;  %v1009_v51 = vor.u32 %v1064_v42, %v1006_v43  ;;  %v868_v52 = vld [vmem:[%s1194_s26 + $0x8] sm:$0xf] }
  0x2a   : > { %603 = vmatpush.bf16.msrb.mxu3 %v937_v10  ;;  %309 = vperm.xlu0 %1094, %v306_v38   ;;  %v1061_v53 = vld [vmem:[%s1194_s26 + $0x10c] sm:$0xf]  ;;  %v998_v54 = vld [vmem:[%s1194_s26 + $0x118] sm:$0xf0]  ;;  %v889_v55 = vor.u32 %v1033_v46, %v886_v47  ;;  %v1031_v57 = vld [vmem:[%s1194_s26 + $0x14] sm:$0xf0] }
  0x2b   : > { %1095 = vset.pattern.permute.xlu1 %v1136_v44  ;;  %v1060_v58 = vld [vmem:[%s1194_s26 + $0x104] sm:$0xf]  ;;  %v990_v59 = vld [vmem:[%s1194_s26 + $0x110] sm:$0xf0]  ;;  %v1029_v60 = vld [vmem:[%s1194_s26 + $0xc] sm:$0xf]  ;;  %v1001_v62 = vor.u32 %v1061_v53, %v998_v54  ;;  %v869_v0 = vor.u32 %v1031_v57, %v868_v52 }
  0x2c   : > { %528 = vmatpush.bf16.msra.mxu0 %v877_v26  ;;  %667 = vperm.xlu1 %1095, %v664_v48   ;;  %v870_v61 = vld [vmem:[%s1194_s26 + $0x18] sm:$0xf0]  ;;  %v630_v63 = vld [vmem:[%s1349_s3] sm:$0xff]  ;;  %v993_v2 = vor.u32 %v1060_v58, %v990_v59 }
  0x2d   : > { %578 = vmatpush.bf16.msrb.mxu1 %v917_v19  ;;  %554 = vmatpush.bf16.msra.mxu2 %v881_v30  ;;  %v873_v3 = vor.u32 %v1029_v60, %v870_v61 }
  0x2e   : > { %604 = vmatpush.bf16.msrb.mxu3 %v921_v22 }
  0x30   : > { %529 = vmatpush.bf16.msra.mxu0 %v861_v45 }
  0x31   : > { %579 = vmatpush.bf16.msrb.mxu1 %v901_v34  ;;  %555 = vmatpush.bf16.msra.mxu2 %v865_v49 }
  0x32   : > { %605 = vmatpush.bf16.msrb.mxu3 %v905_v39  ;;  %633 = vperm.xlu0 %1094, %v630_v63  }
  0x33   : > { %530 = vmatmul.bf16.vlgmr.msra.gmra.mxu0 %v315_v56 }
  0x34   : > { %619 = vmatpush.bf16.msrb.mxu0 %v1017_v50  ;;  %556 = vmatmul.bf16.vlgmr.msra.gmra.mxu2 %v315_v56 }
  0x35   : > { %580 = vmatpush.bf16.msrb.mxu1 %v885_v1  ;;  %567 = vmatpush.bf16.msrb.mxu2 %v1009_v51 }
  0x36   : > { %606 = vmatpush.bf16.msrb.mxu3 %v889_v55 }
  0x38   : > { %620 = vmatpush.bf16.msrb.mxu0 %v1001_v62 }
  0x39   : > { %581 = vmatpush.bf16.msrb.mxu1 %v869_v0  ;;  %568 = vmatpush.bf16.msrb.mxu2 %v993_v2 }
  0x3a   : > { %607 = vmatpush.bf16.msrb.mxu3 %v873_v3 }
  0x3c   : > { %582 = vmatmul.bf16.vlgmr.msrb.gmra.mxu1 %v315_v56 }
  0x3d   : > { %608 = vmatmul.bf16.vlgmr.msrb.gmra.mxu3 %v315_v56 }
  0x43   : > { %1021 = vmatmul.msk.bf16.vlgmr.msrb.gmra.mxu0 %vm518_vm0, %v1226_v37 }
  0x44   : > { %1019 = vmatmul.msk.bf16.vlgmr.msrb.gmra.mxu2 %vm518_vm0, %v1226_v37  ;;  %vm760_vm0 = vcmask 1042434  }
  0x99   : > { %v544_v4 = vpop.f32.mrf.mxu1 }
  0x9c   : > { %v310_v8 = vpop.permute.xlu0 %309 }
  0x9e   : > { %v668_v34 = vpop.permute.xlu1 %667 }
  0x9f   : > { %v670_v39 = vperm.slane %v668_v34, 0 }
  0xa1   : > { %v546_v6 = vpop.f32.mrf.mxu1 }
  0xa2   : > { %v596_v5 = vpop.f32.mrf.mxu3 }
  0xa4   : > { %v634_v12 = vpop.permute.xlu0 %633 }
  0xaa   : > { %v598_v7 = vpop.f32.mrf.mxu3 }
  0xb0   : > { %v531_v9 = vpop.f32.mrf.mxu0 }
  0xb1   : > { %v532_v10 = vadd.f32 %v531_v9, %v310_v8 }
  0xb3   : > { %v545_v11 = vadd.f32 %v544_v4, %v532_v10 }
  0xb5   : > { %v626_v13 = vmax.f32 %v545_v11, 0.0 }
  0xb7   : > { %v636_v16 = vmul.f32 %v634_v12, %v626_v13  ;;  %v557_v17 = vpop.f32.mrf.mxu2 }
  0xb8   : > { %v533_v18 = vpop.f32.mrf.mxu0  ;;  %v558_v43 = vadd.f32 %v557_v17, %v310_v8 }
  0xb9   : > { %v583_v14 = vpop.f32.mrf.mxu1  ;;  %v640_v20 = vrot.slane %v636_v16, 4 }
  0xba   : > { %v584_v15 = vadd.f32 %v583_v14, %v310_v8 }
  0xbb   : > { %v641_v22 = vadd.f32 %v640_v20, %v636_v16 }
  0xbc   : > { %v597_v19 = vadd.f32 %v596_v5, %v584_v15 }
  0xbd   : > { %v642_v23 = vrot.slane %v641_v22, 2 }
  0xbe   : > { %v628_v21 = vmax.f32 %v597_v19, 0.0 }
  0xbf   : > { %v643_v27 = vadd.f32 %v642_v23, %v641_v22  ;;  %v559_v29 = vpop.f32.mrf.mxu2 }
  0xc0   : > { %v638_v37 = vmul.f32 %v634_v12, %v628_v21  ;;  %v609_v24 = vpop.f32.mrf.mxu3  ;;  %v622_v30 = vpop.f32.mrf.mxu0 }
  0xc1   : > { %v610_v25 = vadd.f32 %v609_v24, %v310_v8  ;;  %v585_v26 = vpop.f32.mrf.mxu1  ;;  %v644_v31 = vrot.slane %v643_v27, 1 }
  0xc2   : > { %v652_v28 = vrot.slane %v638_v37, 4 }
  0xc3   : > { %v623_v33 = vadd.f32 %v622_v30, %v610_v25  ;;  %v645_v38 = vadd.f32 %v644_v31, %v643_v27 }
  0xc4   : > { %v653_v32 = vadd.f32 %v652_v28, %v638_v37 }
  0xc5   : > { %v629_v36 = vmax.f32 %v623_v33, 0.0  ;;  %v671_v47 = vadd.f32 %v670_v39, %v645_v38 }
  0xc6   : > { %v654_v35 = vrot.slane %v653_v32, 2 }
  0xc7   : > { %v639_v41 = vmul.f32 %v634_v12, %v629_v36  ;;  %v570_v46 = vpop.f32.mrf.mxu2  ;;  %v1022_v54 = vmul.f32 -1.442695, %v671_v47 }
  0xc8   : > { %v655_v40 = vadd.f32 %v654_v35, %v653_v32  ;;  %v611_v42 = vpop.f32.mrf.mxu3  ;;  %v571_v48 = vadd.f32 %v570_v46, %v558_v43  ;;  %v624_v49 = vpop.f32.mrf.mxu0 }
  0xc9   : > { %v658_v45 = vrot.slane %v639_v41, 4 }
  0xca   : > { %v656_v44 = vrot.slane %v655_v40, 1  ;;  %v627_v51 = vmax.f32 %v571_v48, 0.0 }
  0xcb   : > { %v659_v1 = vadd.f32 %v658_v45, %v639_v41 }
  0xcc   : > { %v657_v50 = vadd.f32 %v656_v44, %v655_v40  ;;  %v637_v55 = vmul.f32 %v634_v12, %v627_v51 }
  0xcd   : > { %v660_v52 = vrot.slane %v659_v1, 2 }
  0xce   : > { %v673_v53 = vadd.f32 %v670_v39, %v657_v50  ;;  %v646_v58 = vrot.slane %v637_v55, 4 }
  0xcf   : > { %v661_v56 = vadd.f32 %v660_v52, %v659_v1  ;;  %v572_v60 = vpop.f32.mrf.mxu2 }
  0xd0   : > { %v1024_v57 = vmul.f32 -1.442695, %v673_v53  ;;  %v647_v61 = vadd.f32 %v646_v58, %v637_v55  ;;  %v765_v53 = vlaneseq }
  0xd1   : > { %v662_v59 = vrot.slane %v661_v56, 1 }
  0xd2   : > { %1096 = vpow2.f32 %v1024_v57  ;;  %v648_v0 = vrot.slane %v647_v61, 2 }
  0xd3   : > { %1098 = vpow2.f32 %v1022_v54  ;;  %v663_v62 = vadd.f32 %v662_v59, %v661_v56 }
  0xd4   : > { %v649_v4 = vadd.f32 %v648_v0, %v647_v61 }
  0xd5   : > { %v674_v63 = vadd.f32 %v670_v39, %v663_v62 }
  0xd6   : > { %v650_v7 = vrot.slane %v649_v4, 1 }
  0xd7   : > { %v1025_v3 = vmul.f32 -1.442695, %v674_v63 }
  0xd8   : > { %v1097_v2 = vpop.eup %1096  ;;  %v651_v9 = vadd.f32 %v650_v7, %v649_v4 }
  0xd9   : > { %v1099_v5 = vpop.eup %1098  ;;  %v689_v6 = vadd.f32 1.0, %v1097_v2  ;;  %1100 = vpow2.f32 %v1025_v3 }
  0xda   : > { %v1299_v8 = vadd.f32 1.0, %v1099_v5  ;;  %v672_v10 = vadd.f32 %v670_v39, %v651_v9 }
  0xdb   : > { %1102 = vrcp.f32 %v689_v6  ;;  %vm726_vm4 = vweird.f32 %v689_v6  ;;  %v732_v33 = vand.u32 2147483648, %v689_v6  ;;  %v730_v35 = vand.u32 2147483647, %v689_v6 }
  0xdc   : > { %1104 = vrcp.f32 %v1299_v8  ;;  %v1023_v12 = vmul.f32 -1.442695, %v672_v10  ;;  %vm696_vm10 = vweird.f32 %v1299_v8  ;;  %v702_v46 = vand.u32 2147483648, %v1299_v8 }
  0xdd   : > { %v733_v47 = vor.u32 1.1754944e-38, %v732_v33  ;;  %v700_v50 = vand.u32 2147483647, %v1299_v8  ;;  %vm731_vm12 = vcmp.eq.f32.partialorder %v730_v35, 8.507059e+37 }
  0xde   : > { %1106 = vpow2.f32 %v1023_v12  ;;  %v703_v57 = vor.u32 1.1754944e-38, %v702_v46 }
  0xdf   : > { %v1101_v11 = vpop.eup %1100 }
  0xe0   : > { %v690_v13 = vadd.f32 1.0, %v1101_v11 }
  0xe1   : > { %v1103_v14 = vpop.eup %1102 }
  0xe2   : > { %1108 = vrcp.f32 %v690_v13  ;;  %v1302_v15 = vpop.eup %1104  ;;  %v722_v16 = vmul.f32 %v1103_v14, %v689_v6  ;;  %v745_v29 = vand.u32 2147483647, %v690_v13  ;;  %v747_v30 = vand.u32 2147483648, %v690_v13 }
  0xe3   : > { %v692_v19 = vmul.f32 %v1302_v15, %v1299_v8  ;;  %vm727_vm2 = vweird.f32 %v1103_v14  ;;  %vm741_vm3 = vweird.f32 %v690_v13  ;;  %vm697_vm6 = vweird.f32 %v1302_v15 }
  0xe4   : > { %v1107_v17 = vpop.eup %1106  ;;  %v723_v21 = vsub.f32 1.0, %v722_v16  ;;  %vm1315_vm7 = vmor %vm726_vm4, %vm727_vm2  ;;  %vm746_vm8 = vcmp.eq.f32.partialorder %v745_v29, 8.507059e+37  ;;  %v748_v41 = vor.u32 1.1754944e-38, %v747_v30  ;;  %vm701_vm2 = vcmp.eq.f32.partialorder %v700_v50, 8.507059e+37 }
  0xe5   : > { %v688_v20 = vadd.f32 1.0, %v1107_v17  ;;  %v693_v23 = vsub.f32 1.0, %v692_v19  ;;  %vm1325_vm11 = vmor %vm696_vm10, %vm697_vm6  ;;  %vm767_vm4 = vcmp.lt.s32.totalorder %v765_v53, 512 }
  0xe6   : > { %v724_v24 = vmul.f32 %v1103_v14, %v723_v21 }
  0xe7   : > { %1110 = vrcp.f32 %v688_v20  ;;  %v694_v28 = vmul.f32 %v1302_v15, %v693_v23  ;;  %v717_v42 = vand.u32 2147483648, %v688_v20  ;;  %v715_v45 = vand.u32 2147483647, %v688_v20 }
  0xe8   : > { %v1109_v18 = vpop.eup %1108  ;;  %v725_v31 = vadd.f32 %v1103_v14, %v724_v24  ;;  %vm711_vm13 = vweird.f32 %v688_v20 }
  0xe9   : > { %v737_v22 = vmul.f32 %v1109_v18, %v690_v13  ;;  %vm742_vm1 = vweird.f32 %v1109_v18  ;;  %v695_v39 = vadd.f32 %v1302_v15, %v694_v28  ;;  %v718_v52 = vor.u32 1.1754944e-38, %v717_v42 }
  0xea   : > { %vm1307_vm5 = vmor %vm741_vm3, %vm742_vm1  ;;  %v729_v43 = vsel %vm1315_vm7, %v1103_v14, %v725_v31  ;;  %vm716_vm15 = vcmp.eq.f32.partialorder %v715_v45, 8.507059e+37  ;;  %vm758_vm1 = vcmask 1040384   ;;  %vm762_vm3 = vcmask 1041408  }
  0xeb   : > { %v738_v37 = vsub.f32 1.0, %v737_v22  ;;  %v734_v51 = vsel %vm731_vm12, %v733_v47, %v729_v43  ;;  %v699_v54 = vsel %vm1325_vm11, %v1302_v15, %v695_v39 }
  0xec   : > { %v756_v59 = vrot.slane %v734_v51, 6  ;;  %v704_v61 = vsel %vm701_vm2, %v703_v57, %v699_v54 }
  0xed   : > { %v739_v25 = vmul.f32 %v1109_v18, %v738_v37  ;;  %v1111_v27 = vpop.eup %1110 }
  0xee   : > { %v707_v32 = vmul.f32 %v1111_v27, %v688_v20  ;;  %vm712_vm9 = vweird.f32 %v1111_v27 }
  0xef   : > { %v740_v26 = vadd.f32 %v1109_v18, %v739_v25  ;;  %vm713_vm14 = vmor %vm711_vm13, %vm712_vm9 }
  0xf0   : > { %v708_v38 = vsub.f32 1.0, %v707_v32 }
  0xf1   : > { %v744_v36 = vsel %vm1307_vm5, %v1109_v18, %v740_v26 }
  0xf2   : > { %v709_v44 = vmul.f32 %v1111_v27, %v708_v38  ;;  %v749_v48 = vsel %vm746_vm8, %v748_v41, %v744_v36 }
  0xf3   : > { %v757_v55 = vrot.slane %v749_v48, 5 }
  0xf4   : > { %v710_v1 = vadd.f32 %v1111_v27, %v709_v44 }
  0xf5   : > { %v761_v62 = vsel %vm760_vm0, %v756_v59, %v757_v55 }
  0xf6   : > { %v714_v56 = vsel %vm713_vm14, %v1111_v27, %v710_v1 }
  0xf7   : > { %v719_v58 = vsel %vm716_vm15, %v718_v52, %v714_v56 }
  0xf8   : > { %v755_v60 = vrot.slane %v719_v58, 7 }
  0xfa   : > { %v759_v63 = vsel %vm758_vm1, %v704_v61, %v755_v60 }
  0xfb   : > { %v763_v0 = vsel %vm762_vm3, %v759_v63, %v761_v62 }
  0xfc   : > { %769 = vst.msk [vmem:[%s262_s11] sm:$0xf] %vm767_vm4, %v763_v0 }
  0xfd PF: > { %s17_s22 = sadd.s32 1, %s1134_s22   ;;  %s1358_s20 = smov %s1130_s21 }
  0xfe   : > { %p14_p5 = scmp.ge.s32.totalorder %s17_s22, 4   ;;  %s1359_s21 = smov %s1361_s4 }
 0x100   :  { %16 = sbr.rel (!%p14_p5) target bundleno = 3 (0x3), region = 70 }

// kernel: grid_attention_block_3d.4
= control target key start
LH: loop header
LB: loop body
LE: loop exit
PB: predicated region body
PF: predicated region fallthrough
CT: control target
= control target key end

     0   :  { %s1596_s24 = smov 0   ;;  %s1598_s25 = smov 0   ;;  %s1898_s0 = inlined_call_operand.vmem [shape: f32[2,16,4096], index: 0, kind: input, shape index: {}]   ;;  %s1899_s1 = inlined_call_operand.vmem [shape: f32[2,1,4096], index: 1, kind: input, shape index: {}]   ;;  %s1900_s2 = inlined_call_operand.vmem [shape: bf16[16,16], index: 2, kind: input, shape index: {}]   ;;  %s1901_s3 = inlined_call_operand.vmem [shape: f32[16,1], index: 3, kind: input, shape index: {}]   ;;  %s1902_s4 = inlined_call_operand.vmem [shape: f32[16,1], index: 4, kind: input, shape index: {}]   ;;  %s1903_s5 = inlined_call_operand.vmem [shape: f32[16,1], index: 5, kind: input, shape index: {}]   ;;  %s1904_s6 = inlined_call_operand.vmem [shape: f32[2,16,1], index: 6, kind: output, shape index: {0}]   ;;  %s1905_s7 = inlined_call_operand.vmem [shape: f32[2,16,1], index: 7, kind: output, shape index: {1}]  }
   0x1   :  { %s1600_s26 = smov 0  }
   0x2 LB: > { %s30_s27 = sadd.s32 1, %s1548_s25  ;;  %p1449_p0 = scmp.ge.s32.totalorder %s1552_s26, 1  ;;  %s1552_s26 = sphi %s1600_s26, %s18_s26   ;;  %s1548_s25 = sphi %s1598_s25, %s1907_s25   ;;  %s1544_s24 = sphi %s1596_s24, %s1906_s24  }
   0x3   : > { %p32_p1 = scmp.ge.s32.totalorder %s30_s27, 2  ;;  %p275_p2 = scmp.lt.s32.totalorder %s1552_s26, 3 }
   0x5   : > { %s1909_s27 = smov (%p32_p1, %s30_s27), 0  ;;  %p276_p3 = pnand %p1449_p0, %p275_p2 }
   0x6   : > { %p325_p4 = scmp.lt.s32.totalorder (!%p276_p3), %s1544_s24, 1 }
   0x7   : > { %279 = sbr.rel (%p276_p3) target bundleno = 447 (0x1bf), region = 44 }
   0xc   : > { %v597_v0 = vld [vmem:[%s1901_s3] sm:$0xff]  ;;  %v1554_v1 = vmov 0   ;;  %s1911_s24 = smov (!%p325_p4, %s1544_s24), 1  ;;  %v598_v2 = vld [vmem:[%s1901_s3 + $0x8] sm:$0xff]  ;;  %vm614_vm0 = vcmask 130048   ;;  %vm358_vm1 = vcmask 7168  }
   0xd   : > { %1525 = vset.pattern.permute.xlu0 %v1554_v1  ;;  %s1495_s30 = sshll.u32 %s1911_s24, 9  ;;  %s1452_s8 = sshll.u32 %s1911_s24, 5  ;;  %v1650_v32 = vld [vmem:[%s1900_s2] sm:$0xff] }
   0xe   : > { %601 = vperm.xlu0 %1525, %v597_v0   ;;  %s1624_s11 = scalar_lea.vmem %s1898_s0, %s1495_s30  ;;  %s1629_s14 = scalar_lea.vmem %s1899_s1, %s1452_s8 }
   0xf   : > { %v363_v3 = vld [vmem:[%s1624_s11] sm:$0xff]  ;;  %v364_v7 = vld [vmem:[%s1624_s11 + $0x8] sm:$0xff]  ;;  %v365_v10 = vld [vmem:[%s1624_s11 + $0x10] sm:$0xff]  ;;  %s1496_s19 = sshll.u32 %s1911_s24, 4 }
  0x10   : > { %v395_v4 = vld [vmem:[%s1624_s11 + $0x100] sm:$0xff]  ;;  %v396_v8 = vld [vmem:[%s1624_s11 + $0x108] sm:$0xff]  ;;  %v397_v12 = vld [vmem:[%s1624_s11 + $0x110] sm:$0xff]  ;;  %s347_s28 = scalar_lea.vmem %s1904_s6, %s1496_s19  ;;  %s352_s9 = scalar_lea.vmem %s1905_s7, %s1496_s19 }
  0x11   : > { %v427_v5 = vld [vmem:[%s1629_s14] sm:$0xff]  ;;  %v366_v13 = vld [vmem:[%s1624_s11 + $0x18] sm:$0xff]  ;;  %v369_v22 = vld [vmem:[%s1624_s11 + $0x30] sm:$0xff] }
  0x12   : > { %v435_v6 = vperm.slane %v427_v5, 0  ;;  %v436_v9 = vperm.slane %v427_v5, 1  ;;  %v437_v11 = vperm.slane %v427_v5, 2  ;;  %v398_v14 = vld [vmem:[%s1624_s11 + $0x118] sm:$0xff]  ;;  %v438_v15 = vperm.slane %v427_v5, 3  ;;  %v401_v23 = vld [vmem:[%s1624_s11 + $0x130] sm:$0xff] }
  0x13   : > { %v441_v16 = vperm.slane %v427_v5, 6  ;;  %v439_v17 = vperm.slane %v427_v5, 4  ;;  %v367_v24 = vld [vmem:[%s1624_s11 + $0x20] sm:$0xff]  ;;  %v370_v35 = vld [vmem:[%s1624_s11 + $0x38] sm:$0xff]  ;;  %v368_v41 = vld [vmem:[%s1624_s11 + $0x28] sm:$0xff]  ;;  %v442_v45 = vperm.slane %v427_v5, 7 }
  0x14   : > { %v499_v18 = vmul.f32 %v435_v6, %v363_v3  ;;  %v531_v19 = vmul.f32 %v435_v6, %v395_v4  ;;  %v500_v20 = vmul.f32 %v436_v9, %v364_v7  ;;  %v532_v21 = vmul.f32 %v436_v9, %v396_v8  ;;  %v399_v29 = vld [vmem:[%s1624_s11 + $0x120] sm:$0xff]  ;;  %v402_v36 = vld [vmem:[%s1624_s11 + $0x138] sm:$0xff]  ;;  %v400_v42 = vld [vmem:[%s1624_s11 + $0x128] sm:$0xff] }
  0x15   : > { %v501_v25 = vmul.f32 %v437_v11, %v365_v10  ;;  %v533_v26 = vmul.f32 %v437_v11, %v397_v12  ;;  %v502_v27 = vmul.f32 %v438_v15, %v366_v13  ;;  %v534_v28 = vmul.f32 %v438_v15, %v398_v14  ;;  %v1657_v43 = vld [vmem:[%s1629_s14 + $0x8] sm:$0xff]  ;;  %v373_v47 = vld [vmem:[%s1624_s11 + $0x50] sm:$0xff]  ;;  %v371_v50 = vld [vmem:[%s1624_s11 + $0x40] sm:$0xff] }
  0x16   : > { %606 = vperm.xlu0 %1525, %v598_v2   ;;  %v563_v30 = vpack.c.bf16 %v531_v19, %v499_v18  ;;  %v564_v31 = vpack.c.bf16 %v532_v21, %v500_v20  ;;  %v505_v33 = vmul.f32 %v441_v16, %v369_v22  ;;  %v537_v34 = vmul.f32 %v441_v16, %v401_v23  ;;  %v405_v48 = vld [vmem:[%s1624_s11 + $0x150] sm:$0xff]  ;;  %v403_v52 = vld [vmem:[%s1624_s11 + $0x140] sm:$0xff]  ;;  %v374_v60 = vld [vmem:[%s1624_s11 + $0x58] sm:$0xff] }
  0x17   : > { %v565_v37 = vpack.c.bf16 %v533_v26, %v501_v25  ;;  %v566_v38 = vpack.c.bf16 %v534_v28, %v502_v27  ;;  %v503_v39 = vmul.f32 %v439_v17, %v367_v24  ;;  %v535_v40 = vmul.f32 %v439_v17, %v399_v29  ;;  %v406_v61 = vld [vmem:[%s1624_s11 + $0x158] sm:$0xff]  ;;  %v372_v62 = vld [vmem:[%s1624_s11 + $0x48] sm:$0xff]  ;;  %v377_v14 = vld [vmem:[%s1624_s11 + $0x70] sm:$0xff] }
  0x18   : > { %625 = vmatpush.bf16.msra.mxu0 %v563_v30  ;;  %639 = vmatpush.bf16.msra.mxu1 %v564_v31  ;;  %v569_v44 = vpack.c.bf16 %v537_v34, %v505_v33  ;;  %v440_v46 = vperm.slane %v427_v5, 5  ;;  %v445_v49 = vperm.slane %v1657_v43, 2  ;;  %v443_v53 = vperm.slane %v1657_v43, 0  ;;  %v404_v2 = vld [vmem:[%s1624_s11 + $0x148] sm:$0xff]  ;;  %v409_v15 = vld [vmem:[%s1624_s11 + $0x170] sm:$0xff]  ;;  %v375_v18 = vld [vmem:[%s1624_s11 + $0x60] sm:$0xff] }
  0x19   : > { %653 = vmatpush.bf16.msra.mxu2 %v565_v37  ;;  %667 = vmatpush.bf16.msra.mxu3 %v566_v38  ;;  %v567_v51 = vpack.c.bf16 %v535_v40, %v503_v39  ;;  %v446_v54 = vperm.slane %v1657_v43, 3  ;;  %v444_v55 = vperm.slane %v1657_v43, 1  ;;  %v506_v56 = vmul.f32 %v442_v45, %v370_v35  ;;  %v407_v19 = vld [vmem:[%s1624_s11 + $0x160] sm:$0xff]  ;;  %v378_v20 = vld [vmem:[%s1624_s11 + $0x78] sm:$0xff]  ;;  %v376_v24 = vld [vmem:[%s1624_s11 + $0x68] sm:$0xff] }
  0x1a   : > { %v538_v57 = vmul.f32 %v442_v45, %v402_v36  ;;  %v504_v58 = vmul.f32 %v440_v46, %v368_v41  ;;  %v536_v59 = vmul.f32 %v440_v46, %v400_v42  ;;  %v509_v63 = vmul.f32 %v445_v49, %v373_v47  ;;  %v410_v23 = vld [vmem:[%s1624_s11 + $0x178] sm:$0xff]  ;;  %v408_v25 = vld [vmem:[%s1624_s11 + $0x168] sm:$0xff]  ;;  %v429_v39 = vld [vmem:[%s1629_s14 + $0x10] sm:$0xff] }
  0x1b   : > { %1461 = vmatmul.msk.bf16.vlgmr.msra.gmra.mxu0 %vm614_vm0, %v1650_v32  ;;  %1462 = vmatmul.msk.bf16.vlgmr.msra.gmra.mxu1 %vm614_vm0, %v1650_v32  ;;  %v541_v0 = vmul.f32 %v445_v49, %v405_v48  ;;  %v507_v1 = vmul.f32 %v443_v53, %v371_v50  ;;  %v539_v5 = vmul.f32 %v443_v53, %v403_v52  ;;  %v449_v16 = vperm.slane %v1657_v43, 6  ;;  %v381_v40 = vld [vmem:[%s1624_s11 + $0x90] sm:$0xff]  ;;  %v411_v45 = vld [vmem:[%s1624_s11 + $0x180] sm:$0xff]  ;;  %v382_v46 = vld [vmem:[%s1624_s11 + $0x98] sm:$0xff] }
  0x1c   : > { %1463 = vmatmul.msk.bf16.vlgmr.msra.gmra.mxu2 %vm614_vm0, %v1650_v32  ;;  %1464 = vmatmul.msk.bf16.vlgmr.msra.gmra.mxu3 %vm614_vm0, %v1650_v32  ;;  %v570_v3 = vpack.c.bf16 %v538_v57, %v506_v56  ;;  %v568_v4 = vpack.c.bf16 %v536_v59, %v504_v58  ;;  %v510_v7 = vmul.f32 %v446_v54, %v374_v60  ;;  %v447_v17 = vperm.slane %v1657_v43, 4  ;;  %v413_v41 = vld [vmem:[%s1624_s11 + $0x190] sm:$0xff]  ;;  %v414_v49 = vld [vmem:[%s1624_s11 + $0x198] sm:$0xff]  ;;  %v380_v50 = vld [vmem:[%s1624_s11 + $0x88] sm:$0xff] }
  0x1d   : > { %709 = vmatpush.bf16.msrb.mxu2 %v569_v44  ;;  %681 = vmatpush.bf16.msrb.mxu0 %v567_v51  ;;  %v573_v6 = vpack.c.bf16 %v541_v0, %v509_v63  ;;  %v542_v8 = vmul.f32 %v446_v54, %v406_v61  ;;  %v508_v9 = vmul.f32 %v444_v55, %v372_v62  ;;  %v450_v21 = vperm.slane %v1657_v43, 7  ;;  %v379_v44 = vld [vmem:[%s1624_s11 + $0x80] sm:$0xff]  ;;  %v412_v51 = vld [vmem:[%s1624_s11 + $0x188] sm:$0xff]  ;;  %v385_v0 = vld [vmem:[%s1624_s11 + $0xb0] sm:$0xff] }
  0x1e   : > { %723 = vmatpush.bf16.msrb.mxu3 %v570_v3  ;;  %695 = vmatpush.bf16.msrb.mxu1 %v568_v4  ;;  %v571_v10 = vpack.c.bf16 %v539_v5, %v507_v1  ;;  %v540_v11 = vmul.f32 %v444_v55, %v404_v2  ;;  %v448_v22 = vperm.slane %v1657_v43, 5  ;;  %v513_v26 = vmul.f32 %v449_v16, %v377_v14  ;;  %v417_v1 = vld [vmem:[%s1624_s11 + $0x1b0] sm:$0xff]  ;;  %v383_v4 = vld [vmem:[%s1624_s11 + $0xa0] sm:$0xff] }
  0x1f   : > { %v574_v12 = vpack.c.bf16 %v542_v8, %v510_v7  ;;  %v545_v27 = vmul.f32 %v449_v16, %v409_v15  ;;  %v511_v28 = vmul.f32 %v447_v17, %v375_v18  ;;  %v543_v29 = vmul.f32 %v447_v17, %v407_v19  ;;  %v415_v5 = vld [vmem:[%s1624_s11 + $0x1a0] sm:$0xff] }
  0x20   : > { %v572_v13 = vpack.c.bf16 %v540_v11, %v508_v9  ;;  %v514_v30 = vmul.f32 %v450_v21, %v378_v20  ;;  %v546_v31 = vmul.f32 %v450_v21, %v410_v23  ;;  %v512_v33 = vmul.f32 %v448_v22, %v376_v24  ;;  %v418_v9 = vld [vmem:[%s1624_s11 + $0x1b8] sm:$0xff]  ;;  %v416_v11 = vld [vmem:[%s1624_s11 + $0x1a8] sm:$0xff] }
  0x21   : > { %765 = vmatpush.bf16.msra.mxu2 %v573_v6  ;;  %737 = vmatpush.bf16.msra.mxu0 %v571_v10  ;;  %v544_v34 = vmul.f32 %v448_v22, %v408_v25  ;;  %v577_v35 = vpack.c.bf16 %v545_v27, %v513_v26  ;;  %v575_v36 = vpack.c.bf16 %v543_v29, %v511_v28  ;;  %v453_v42 = vperm.slane %v429_v39, 2  ;;  %v386_v6 = vld [vmem:[%s1624_s11 + $0xb8] sm:$0xff]  ;;  %v384_v10 = vld [vmem:[%s1624_s11 + $0xa8] sm:$0xff]  ;;  %v389_v25 = vld [vmem:[%s1624_s11 + $0xd0] sm:$0xff] }
  0x22   : > { %779 = vmatpush.bf16.msra.mxu3 %v574_v12  ;;  %751 = vmatpush.bf16.msra.mxu1 %v572_v13  ;;  %v578_v37 = vpack.c.bf16 %v546_v31, %v514_v30  ;;  %v451_v43 = vperm.slane %v429_v39, 0  ;;  %v454_v47 = vperm.slane %v429_v39, 3  ;;  %v452_v48 = vperm.slane %v429_v39, 1  ;;  %v430_v24 = vld [vmem:[%s1629_s14 + $0x18] sm:$0xff]  ;;  %v421_v26 = vld [vmem:[%s1624_s11 + $0x1d0] sm:$0xff]  ;;  %v387_v29 = vld [vmem:[%s1624_s11 + $0xc0] sm:$0xff] }
  0x23   : > { %v576_v38 = vpack.c.bf16 %v544_v34, %v512_v33  ;;  %v517_v52 = vmul.f32 %v453_v42, %v381_v40  ;;  %v549_v53 = vmul.f32 %v453_v42, %v413_v41  ;;  %v457_v2 = vperm.slane %v429_v39, 6  ;;  %v419_v30 = vld [vmem:[%s1624_s11 + $0x1c0] sm:$0xff]  ;;  %v390_v31 = vld [vmem:[%s1624_s11 + $0xd8] sm:$0xff] }
  0x24   : > { %v515_v54 = vmul.f32 %v451_v43, %v379_v44  ;;  %v547_v55 = vmul.f32 %v451_v43, %v411_v45  ;;  %v518_v56 = vmul.f32 %v454_v47, %v382_v46  ;;  %v550_v57 = vmul.f32 %v454_v47, %v414_v49 }
  0x25   : > { %v516_v58 = vmul.f32 %v452_v48, %v380_v50  ;;  %v548_v59 = vmul.f32 %v452_v48, %v412_v51  ;;  %v581_v60 = vpack.c.bf16 %v549_v53, %v517_v52  ;;  %v455_v3 = vperm.slane %v429_v39, 4  ;;  %v393_v50 = vld [vmem:[%s1624_s11 + $0xf0] sm:$0xff] }
  0x26   : > { %v579_v61 = vpack.c.bf16 %v547_v55, %v515_v54  ;;  %v582_v62 = vpack.c.bf16 %v550_v57, %v518_v56  ;;  %v458_v7 = vperm.slane %v429_v39, 7  ;;  %v456_v8 = vperm.slane %v429_v39, 5  ;;  %v425_v51 = vld [vmem:[%s1624_s11 + $0x1f0] sm:$0xff]  ;;  %v391_v54 = vld [vmem:[%s1624_s11 + $0xe0] sm:$0xff]  ;;  %v394_v56 = vld [vmem:[%s1624_s11 + $0xf8] sm:$0xff] }
  0x27   : > { %v580_v63 = vpack.c.bf16 %v548_v59, %v516_v58  ;;  %v521_v12 = vmul.f32 %v457_v2, %v385_v0  ;;  %v553_v13 = vmul.f32 %v457_v2, %v417_v1  ;;  %v519_v14 = vmul.f32 %v455_v3, %v383_v4  ;;  %v423_v55 = vld [vmem:[%s1624_s11 + $0x1e0] sm:$0xff]  ;;  %v426_v59 = vld [vmem:[%s1624_s11 + $0x1f8] sm:$0xff] }
  0x28   : > { %v551_v15 = vmul.f32 %v455_v3, %v415_v5  ;;  %v522_v16 = vmul.f32 %v458_v7, %v386_v6  ;;  %v554_v17 = vmul.f32 %v458_v7, %v418_v9  ;;  %v520_v18 = vmul.f32 %v456_v8, %v384_v10 }
  0x29   : > { %v552_v19 = vmul.f32 %v456_v8, %v416_v11  ;;  %v585_v20 = vpack.c.bf16 %v553_v13, %v521_v12  ;;  %v461_v27 = vperm.slane %v430_v24, 2  ;;  %v459_v28 = vperm.slane %v430_v24, 0 }
  0x2a   : > { %v583_v21 = vpack.c.bf16 %v551_v15, %v519_v14  ;;  %v586_v22 = vpack.c.bf16 %v554_v17, %v522_v16  ;;  %v462_v33 = vperm.slane %v430_v24, 3  ;;  %v460_v34 = vperm.slane %v430_v24, 1 }
  0x2b   : > { %1465 = vmatmul.msk.bf16.vlgmr.msrb.gmra.mxu0 %vm614_vm0, %v1650_v32  ;;  %1466 = vmatmul.msk.bf16.vlgmr.msrb.gmra.mxu1 %vm614_vm0, %v1650_v32  ;;  %v584_v23 = vpack.c.bf16 %v552_v19, %v520_v18  ;;  %v557_v39 = vmul.f32 %v461_v27, %v421_v26  ;;  %v523_v40 = vmul.f32 %v459_v28, %v387_v29  ;;  %v465_v52 = vperm.slane %v430_v24, 6 }
  0x2c   : > { %1467 = vmatmul.msk.bf16.vlgmr.msrb.gmra.mxu2 %vm614_vm0, %v1650_v32  ;;  %1468 = vmatmul.msk.bf16.vlgmr.msrb.gmra.mxu3 %vm614_vm0, %v1650_v32  ;;  %v555_v41 = vmul.f32 %v459_v28, %v419_v30  ;;  %v526_v42 = vmul.f32 %v462_v33, %v390_v31  ;;  %v463_v53 = vperm.slane %v430_v24, 4  ;;  %v466_v57 = vperm.slane %v430_v24, 7 }
  0x2d   : > { %821 = vmatpush.bf16.msrb.mxu2 %v577_v35  ;;  %793 = vmatpush.bf16.msrb.mxu0 %v575_v36  ;;  %v422_v35 = vld [vmem:[%s1624_s11 + $0x1d8] sm:$0xff]  ;;  %v388_v36 = vld [vmem:[%s1624_s11 + $0xc8] sm:$0xff]  ;;  %v464_v58 = vperm.slane %v430_v24, 5 }
  0x2e   : > { %835 = vmatpush.bf16.msrb.mxu3 %v578_v37  ;;  %807 = vmatpush.bf16.msrb.mxu1 %v576_v38  ;;  %v420_v37 = vld [vmem:[%s1624_s11 + $0x1c8] sm:$0xff]  ;;  %v525_v38 = vmul.f32 %v461_v27, %v389_v25  ;;  %v558_v43 = vmul.f32 %v462_v33, %v422_v35  ;;  %v524_v44 = vmul.f32 %v460_v34, %v388_v36 }
  0x2f   : > { %v556_v45 = vmul.f32 %v460_v34, %v420_v37  ;;  %v587_v47 = vpack.c.bf16 %v555_v41, %v523_v40  ;;  %v527_v0 = vmul.f32 %v463_v53, %v391_v54  ;;  %v559_v1 = vmul.f32 %v463_v53, %v423_v55 }
  0x30   : > { %v589_v46 = vpack.c.bf16 %v557_v39, %v525_v38  ;;  %v590_v48 = vpack.c.bf16 %v558_v43, %v526_v42  ;;  %v530_v2 = vmul.f32 %v466_v57, %v394_v56  ;;  %v562_v3 = vmul.f32 %v466_v57, %v426_v59 }
  0x31   : > { %v588_v49 = vpack.c.bf16 %v556_v45, %v524_v44  ;;  %v591_v7 = vpack.c.bf16 %v559_v1, %v527_v0 }
  0x32   : > { %v594_v8 = vpack.c.bf16 %v562_v3, %v530_v2 }
  0x3b   : > { %1469 = vmatmul.msk.bf16.vlgmr.msra.gmra.mxu0 %vm614_vm0, %v1650_v32  ;;  %1470 = vmatmul.msk.bf16.vlgmr.msra.gmra.mxu1 %vm614_vm0, %v1650_v32 }
  0x3c   : > { %1471 = vmatmul.msk.bf16.vlgmr.msra.gmra.mxu2 %vm614_vm0, %v1650_v32  ;;  %1472 = vmatmul.msk.bf16.vlgmr.msra.gmra.mxu3 %vm614_vm0, %v1650_v32 }
  0x3d   : > { %877 = vmatpush.bf16.msra.mxu2 %v581_v60  ;;  %849 = vmatpush.bf16.msra.mxu0 %v579_v61  ;;  %v392_v60 = vld [vmem:[%s1624_s11 + $0xe8] sm:$0xff] }
  0x3e   : > { %891 = vmatpush.bf16.msra.mxu3 %v582_v62  ;;  %863 = vmatpush.bf16.msra.mxu1 %v580_v63  ;;  %v424_v61 = vld [vmem:[%s1624_s11 + $0x1e8] sm:$0xff]  ;;  %v529_v62 = vmul.f32 %v465_v52, %v393_v50  ;;  %v561_v63 = vmul.f32 %v465_v52, %v425_v51  ;;  %v528_v4 = vmul.f32 %v464_v58, %v392_v60 }
  0x3f   : > { %v560_v5 = vmul.f32 %v464_v58, %v424_v61 }
  0x40   : > { %v593_v6 = vpack.c.bf16 %v561_v63, %v529_v62 }
  0x41   : > { %v592_v9 = vpack.c.bf16 %v560_v5, %v528_v4 }
  0x4b   : > { %1473 = vmatmul.msk.bf16.vlgmr.msrb.gmra.mxu0 %vm614_vm0, %v1650_v32  ;;  %1474 = vmatmul.msk.bf16.vlgmr.msrb.gmra.mxu1 %vm614_vm0, %v1650_v32 }
  0x4c   : > { %1475 = vmatmul.msk.bf16.vlgmr.msrb.gmra.mxu2 %vm614_vm0, %v1650_v32  ;;  %1476 = vmatmul.msk.bf16.vlgmr.msrb.gmra.mxu3 %vm614_vm0, %v1650_v32 }
  0x4d   : > { %933 = vmatpush.bf16.msrb.mxu2 %v585_v20  ;;  %905 = vmatpush.bf16.msrb.mxu0 %v583_v21 }
  0x4e   : > { %947 = vmatpush.bf16.msrb.mxu3 %v586_v22  ;;  %919 = vmatpush.bf16.msrb.mxu1 %v584_v23 }
  0x5b   : > { %1477 = vmatmul.msk.bf16.vlgmr.msra.gmra.mxu0 %vm614_vm0, %v1650_v32  ;;  %1478 = vmatmul.msk.bf16.vlgmr.msra.gmra.mxu1 %vm614_vm0, %v1650_v32 }
  0x5c   : > { %1479 = vmatmul.msk.bf16.vlgmr.msra.gmra.mxu2 %vm614_vm0, %v1650_v32  ;;  %1480 = vmatmul.msk.bf16.vlgmr.msra.gmra.mxu3 %vm614_vm0, %v1650_v32 }
  0x5d   : > { %989 = vmatpush.bf16.msra.mxu2 %v589_v46  ;;  %961 = vmatpush.bf16.msra.mxu0 %v587_v47 }
  0x5e   : > { %1003 = vmatpush.bf16.msra.mxu3 %v590_v48  ;;  %975 = vmatpush.bf16.msra.mxu1 %v588_v49 }
  0x6b   : > { %1481 = vmatmul.msk.bf16.vlgmr.msrb.gmra.mxu0 %vm614_vm0, %v1650_v32  ;;  %1482 = vmatmul.msk.bf16.vlgmr.msrb.gmra.mxu1 %vm614_vm0, %v1650_v32 }
  0x6c   : > { %1483 = vmatmul.msk.bf16.vlgmr.msrb.gmra.mxu2 %vm614_vm0, %v1650_v32  ;;  %1484 = vmatmul.msk.bf16.vlgmr.msrb.gmra.mxu3 %vm614_vm0, %v1650_v32 }
  0x6d   : > { %1045 = vmatpush.bf16.msrb.mxu2 %v593_v6  ;;  %1017 = vmatpush.bf16.msrb.mxu0 %v591_v7 }
  0x6e   : > { %1059 = vmatpush.bf16.msrb.mxu3 %v594_v8  ;;  %1031 = vmatpush.bf16.msrb.mxu1 %v592_v9 }
  0x7b   : > { %1485 = vmatmul.msk.bf16.vlgmr.msra.gmra.mxu0 %vm614_vm0, %v1650_v32  ;;  %1486 = vmatmul.msk.bf16.vlgmr.msra.gmra.mxu1 %vm614_vm0, %v1650_v32 }
  0x7c   : > { %1487 = vmatmul.msk.bf16.vlgmr.msra.gmra.mxu2 %vm614_vm0, %v1650_v32  ;;  %1488 = vmatmul.msk.bf16.vlgmr.msra.gmra.mxu3 %vm614_vm0, %v1650_v32 }
  0x80   : > { %v1781_v20 = vpop.permute.xlu0 %601 }
  0x88   : > { %v1785_v26 = vpop.permute.xlu0 %606 }
  0x8b   : > { %1489 = vmatmul.msk.bf16.vlgmr.msrb.gmra.mxu0 %vm614_vm0, %v1650_v32  ;;  %1490 = vmatmul.msk.bf16.vlgmr.msrb.gmra.mxu1 %vm614_vm0, %v1650_v32 }
  0x8c   : > { %1491 = vmatmul.msk.bf16.vlgmr.msrb.gmra.mxu2 %vm614_vm0, %v1650_v32  ;;  %1492 = vmatmul.msk.bf16.vlgmr.msrb.gmra.mxu3 %vm614_vm0, %v1650_v32 }
  0x98   : > { %v627_v10 = vpop.f32.mrf.mxu0  ;;  %v641_v11 = vpop.f32.mrf.mxu1 }
  0x99   : > { %v628_v25 = vadd.f32 %v627_v10, %v1781_v20  ;;  %v642_v32 = vadd.f32 %v641_v11, %v1781_v20 }
  0x9b   : > { %v1141_v33 = vmul.f32 %v628_v25, %v628_v25  ;;  %v1142_v34 = vmul.f32 %v642_v32, %v642_v32  ;;  %v1068_v39 = vadd.f32 %v642_v32, %v628_v25 }
  0x9d   : > { %v1205_v40 = vadd.f32 %v1142_v34, %v1141_v33 }
  0x9f   : > { %v655_v12 = vpop.f32.mrf.mxu2  ;;  %v669_v13 = vpop.f32.mrf.mxu3 }
  0xa0   : > { %v629_v14 = vpop.f32.mrf.mxu0  ;;  %v643_v15 = vpop.f32.mrf.mxu1  ;;  %v656_v27 = vadd.f32 %v655_v12, %v1781_v20  ;;  %v670_v38 = vadd.f32 %v669_v13, %v1781_v20 }
  0xa1   : > { %v630_v35 = vadd.f32 %v629_v14, %v1785_v26  ;;  %v644_v36 = vadd.f32 %v643_v15, %v1785_v26 }
  0xa2   : > { %v1143_v37 = vmul.f32 %v656_v27, %v656_v27  ;;  %v1069_v43 = vadd.f32 %v1068_v39, %v656_v27  ;;  %v1144_v47 = vmul.f32 %v670_v38, %v670_v38 }
  0xa3   : > { %v1173_v44 = vmul.f32 %v630_v35, %v630_v35  ;;  %v1174_v45 = vmul.f32 %v644_v36, %v644_v36  ;;  %v1101_v56 = vadd.f32 %v644_v36, %v630_v35 }
  0xa4   : > { %v1206_v46 = vadd.f32 %v1205_v40, %v1143_v37  ;;  %v1070_v55 = vadd.f32 %v1069_v43, %v670_v38 }
  0xa5   : > { %v1238_v57 = vadd.f32 %v1174_v45, %v1173_v44 }
  0xa6   : > { %v1207_v58 = vadd.f32 %v1206_v46, %v1144_v47 }
  0xa7   : > { %v657_v16 = vpop.f32.mrf.mxu2  ;;  %v671_v17 = vpop.f32.mrf.mxu3 }
  0xa8   : > { %v683_v18 = vpop.f32.mrf.mxu0  ;;  %v697_v19 = vpop.f32.mrf.mxu1  ;;  %v658_v41 = vadd.f32 %v657_v16, %v1785_v26  ;;  %v672_v59 = vadd.f32 %v671_v17, %v1785_v26 }
  0xa9   : > { %v684_v42 = vadd.f32 %v683_v18, %v1781_v20  ;;  %v698_v54 = vadd.f32 %v697_v19, %v1781_v20 }
  0xaa   : > { %v1175_v52 = vmul.f32 %v658_v41, %v658_v41  ;;  %v1102_v62 = vadd.f32 %v1101_v56, %v658_v41  ;;  %v1176_v3 = vmul.f32 %v672_v59, %v672_v59 }
  0xab   : > { %v1145_v53 = vmul.f32 %v684_v42, %v684_v42  ;;  %v1071_v63 = vadd.f32 %v1070_v55, %v684_v42  ;;  %v1146_v2 = vmul.f32 %v698_v54, %v698_v54 }
  0xac   : > { %v1239_v0 = vadd.f32 %v1238_v57, %v1175_v52  ;;  %v1103_v9 = vadd.f32 %v1102_v62, %v672_v59 }
  0xad   : > { %v1208_v1 = vadd.f32 %v1207_v58, %v1145_v53  ;;  %v1072_v10 = vadd.f32 %v1071_v63, %v698_v54 }
  0xae   : > { %v1240_v13 = vadd.f32 %v1239_v0, %v1176_v3 }
  0xaf   : > { %v711_v21 = vpop.f32.mrf.mxu2  ;;  %v725_v22 = vpop.f32.mrf.mxu3  ;;  %v1209_v14 = vadd.f32 %v1208_v1, %v1146_v2 }
  0xb0   : > { %v685_v23 = vpop.f32.mrf.mxu0  ;;  %v699_v24 = vpop.f32.mrf.mxu1  ;;  %v712_v60 = vadd.f32 %v711_v21, %v1781_v20  ;;  %v726_v5 = vadd.f32 %v725_v22, %v1781_v20 }
  0xb1   : > { %v686_v61 = vadd.f32 %v685_v23, %v1785_v26  ;;  %v700_v15 = vadd.f32 %v699_v24, %v1785_v26 }
  0xb2   : > { %v1147_v4 = vmul.f32 %v712_v60, %v712_v60  ;;  %v1073_v17 = vadd.f32 %v1072_v10, %v712_v60  ;;  %v1148_v22 = vmul.f32 %v726_v5, %v726_v5 }
  0xb3   : > { %v1177_v6 = vmul.f32 %v686_v61, %v686_v61  ;;  %v1104_v18 = vadd.f32 %v1103_v9, %v686_v61  ;;  %v1178_v25 = vmul.f32 %v700_v15, %v700_v15 }
  0xb4   : > { %v1210_v21 = vadd.f32 %v1209_v14, %v1147_v4  ;;  %v1074_v33 = vadd.f32 %v1073_v17, %v726_v5 }
  0xb5   : > { %v1241_v23 = vadd.f32 %v1240_v13, %v1177_v6  ;;  %v1105_v34 = vadd.f32 %v1104_v18, %v700_v15 }
  0xb6   : > { %v1211_v36 = vadd.f32 %v1210_v21, %v1148_v22 }
  0xb7   : > { %v713_v28 = vpop.f32.mrf.mxu2  ;;  %v1788_v29 = vpop.f32.mrf.mxu3  ;;  %v1242_v37 = vadd.f32 %v1241_v23, %v1178_v25 }
  0xb8   : > { %v739_v30 = vpop.f32.mrf.mxu0  ;;  %v753_v31 = vpop.f32.mrf.mxu1  ;;  %v714_v19 = vadd.f32 %v713_v28, %v1785_v26  ;;  %v728_v28 = vadd.f32 %v1788_v29, %v1785_v26 }
  0xb9   : > { %v740_v16 = vadd.f32 %v739_v30, %v1781_v20  ;;  %v754_v27 = vadd.f32 %v753_v31, %v1781_v20 }
  0xba   : > { %v1179_v35 = vmul.f32 %v714_v19, %v714_v19  ;;  %v1106_v39 = vadd.f32 %v1105_v34, %v714_v19  ;;  %v1180_v53 = vmul.f32 %v728_v28, %v728_v28 }
  0xbb   : > { %v1149_v32 = vmul.f32 %v740_v16, %v740_v16  ;;  %v1075_v40 = vadd.f32 %v1074_v33, %v740_v16  ;;  %v1150_v31 = vmul.f32 %v754_v27, %v754_v27 }
  0xbc   : > { %v1243_v45 = vadd.f32 %v1242_v37, %v1179_v35  ;;  %v1107_v52 = vadd.f32 %v1106_v39, %v728_v28 }
  0xbd   : > { %v1212_v44 = vadd.f32 %v1211_v36, %v1149_v32 }
  0xbe   : > { %v1244_v57 = vadd.f32 %v1243_v45, %v1180_v53 }
  0xbf   : > { %v767_v48 = vpop.f32.mrf.mxu2  ;;  %v781_v49 = vpop.f32.mrf.mxu3  ;;  %v1213_v55 = vadd.f32 %v1212_v44, %v1150_v31 }
  0xc0   : > { %v741_v50 = vpop.f32.mrf.mxu0  ;;  %v1795_v51 = vpop.f32.mrf.mxu1  ;;  %v768_v24 = vadd.f32 %v767_v48, %v1781_v20  ;;  %v782_v47 = vadd.f32 %v781_v49, %v1781_v20  ;;  %v1076_v48 = vadd.f32 %v1075_v40, %v754_v27 }
  0xc1   : > { %v742_v41 = vadd.f32 %v741_v50, %v1785_v26  ;;  %v756_v50 = vadd.f32 %v1795_v51, %v1785_v26 }
  0xc2   : > { %v1151_v46 = vmul.f32 %v768_v24, %v768_v24  ;;  %v1077_v29 = vadd.f32 %v1076_v48, %v768_v24  ;;  %v1152_v60 = vmul.f32 %v782_v47, %v782_v47 }
  0xc3   : > { %v1181_v54 = vmul.f32 %v742_v41, %v742_v41  ;;  %v1108_v58 = vadd.f32 %v1107_v52, %v742_v41  ;;  %v1182_v6 = vmul.f32 %v756_v50, %v756_v50 }
  0xc4   : > { %v1214_v59 = vadd.f32 %v1213_v55, %v1151_v46  ;;  %v1078_v4 = vadd.f32 %v1077_v29, %v782_v47 }
  0xc5   : > { %v1245_v49 = vadd.f32 %v1244_v57, %v1181_v54  ;;  %v1109_v5 = vadd.f32 %v1108_v58, %v756_v50 }
  0xc6   : > { %v1215_v9 = vadd.f32 %v1214_v59, %v1152_v60 }
  0xc7   : > { %v769_v7 = vpop.f32.mrf.mxu2  ;;  %v1802_v8 = vpop.f32.mrf.mxu3  ;;  %v1246_v51 = vadd.f32 %v1245_v49, %v1182_v6 }
  0xc8   : > { %v795_v11 = vpop.f32.mrf.mxu0  ;;  %v809_v12 = vpop.f32.mrf.mxu1  ;;  %v770_v61 = vadd.f32 %v769_v7, %v1785_v26  ;;  %v784_v7 = vadd.f32 %v1802_v8, %v1785_v26 }
  0xc9   : > { %v796_v56 = vadd.f32 %v795_v11, %v1781_v20  ;;  %v810_v3 = vadd.f32 %v809_v12, %v1781_v20 }
  0xca   : > { %v1183_v10 = vmul.f32 %v770_v61, %v770_v61  ;;  %v1110_v13 = vadd.f32 %v1109_v5, %v770_v61  ;;  %v1184_v33 = vmul.f32 %v784_v7, %v784_v7 }
  0xcb   : > { %v1153_v2 = vmul.f32 %v796_v56, %v796_v56  ;;  %v1079_v14 = vadd.f32 %v1078_v4, %v796_v56  ;;  %v1154_v16 = vmul.f32 %v810_v3, %v810_v3 }
  0xcc   : > { %v1247_v18 = vadd.f32 %v1246_v51, %v1183_v10  ;;  %v1111_v23 = vadd.f32 %v1110_v13, %v784_v7 }
  0xcd   : > { %v1216_v15 = vadd.f32 %v1215_v9, %v1153_v2  ;;  %v1080_v25 = vadd.f32 %v1079_v14, %v810_v3 }
  0xcf   : > { %v823_v38 = vpop.f32.mrf.mxu2  ;;  %v837_v30 = vpop.f32.mrf.mxu3  ;;  %v1217_v34 = vadd.f32 %v1216_v15, %v1154_v16 }
  0xd0   : > { %v797_v42 = vpop.f32.mrf.mxu0  ;;  %v811_v43 = vpop.f32.mrf.mxu1  ;;  %v824_v11 = vadd.f32 %v823_v38, %v1781_v20  ;;  %v838_v12 = vadd.f32 %v837_v30, %v1781_v20  ;;  %v1248_v38 = vadd.f32 %v1247_v18, %v1184_v33 }
  0xd1   : > { %v798_v17 = vadd.f32 %v797_v42, %v1785_v26  ;;  %v812_v24 = vadd.f32 %v811_v43, %v1785_v26 }
  0xd2   : > { %v1155_v19 = vmul.f32 %v824_v11, %v824_v11  ;;  %v1081_v8 = vadd.f32 %v1080_v25, %v824_v11  ;;  %v1156_v28 = vmul.f32 %v838_v12, %v838_v12 }
  0xd3   : > { %v1185_v35 = vmul.f32 %v798_v17, %v798_v17  ;;  %v1112_v37 = vadd.f32 %v1111_v23, %v798_v17  ;;  %v1186_v31 = vmul.f32 %v812_v24, %v812_v24 }
  0xd4   : > { %v1218_v39 = vadd.f32 %v1217_v34, %v1155_v19  ;;  %v1082_v42 = vadd.f32 %v1081_v8, %v838_v12 }
  0xd5   : > { %v1249_v40 = vadd.f32 %v1248_v38, %v1185_v35  ;;  %v1113_v44 = vadd.f32 %v1112_v37, %v812_v24 }
  0xd6   : > { %v1219_v45 = vadd.f32 %v1218_v39, %v1156_v28 }
  0xd7   : > { %v825_v62 = vpop.f32.mrf.mxu2  ;;  %v839_v63 = vpop.f32.mrf.mxu3  ;;  %v1250_v29 = vadd.f32 %v1249_v40, %v1186_v31 }
  0xd8   : > { %v851_v0 = vpop.f32.mrf.mxu0  ;;  %v865_v1 = vpop.f32.mrf.mxu1  ;;  %v826_v30 = vadd.f32 %v825_v62, %v1785_v26  ;;  %v840_v43 = vadd.f32 %v839_v63, %v1785_v26 }
  0xd9   : > { %v852_v36 = vadd.f32 %v851_v0, %v1781_v20  ;;  %v866_v47 = vadd.f32 %v865_v1, %v1781_v20 }
  0xda   : > { %v1187_v46 = vmul.f32 %v826_v30, %v826_v30  ;;  %v1114_v54 = vadd.f32 %v1113_v44, %v826_v30  ;;  %v1188_v49 = vmul.f32 %v840_v43, %v840_v43 }
  0xdb   : > { %v1157_v41 = vmul.f32 %v852_v36, %v852_v36  ;;  %v1083_v55 = vadd.f32 %v1082_v42, %v852_v36  ;;  %v1158_v60 = vmul.f32 %v866_v47, %v866_v47 }
  0xdc   : > { %v1251_v59 = vadd.f32 %v1250_v29, %v1187_v46  ;;  %v1115_v62 = vadd.f32 %v1114_v54, %v840_v43 }
  0xdd   : > { %v1220_v58 = vadd.f32 %v1219_v45, %v1157_v41  ;;  %v1084_v0 = vadd.f32 %v1083_v55, %v866_v47 }
  0xde   : > { %v1252_v9 = vadd.f32 %v1251_v59, %v1188_v49 }
  0xdf   : > { %v879_v21 = vpop.f32.mrf.mxu2  ;;  %v893_v22 = vpop.f32.mrf.mxu3  ;;  %v1221_v1 = vadd.f32 %v1220_v58, %v1158_v60 }
  0xe0   : > { %v853_v32 = vpop.f32.mrf.mxu0  ;;  %v867_v27 = vpop.f32.mrf.mxu1  ;;  %v880_v52 = vadd.f32 %v879_v21, %v1781_v20  ;;  %v894_v2 = vadd.f32 %v893_v22, %v1781_v20 }
  0xe1   : > { %v854_v50 = vadd.f32 %v853_v32, %v1785_v26  ;;  %v868_v6 = vadd.f32 %v867_v27, %v1785_v26 }
  0xe2   : > { %v1159_v61 = vmul.f32 %v880_v52, %v880_v52  ;;  %v1085_v63 = vadd.f32 %v1084_v0, %v880_v52  ;;  %v1160_v15 = vmul.f32 %v894_v2, %v894_v2 }
  0xe3   : > { %v1189_v3 = vmul.f32 %v854_v50, %v854_v50  ;;  %v1116_v5 = vadd.f32 %v1115_v62, %v854_v50  ;;  %v1190_v12 = vmul.f32 %v868_v6, %v868_v6 }
  0xe4   : > { %v1222_v10 = vadd.f32 %v1221_v1, %v1159_v61  ;;  %v1086_v18 = vadd.f32 %v1085_v63, %v894_v2 }
  0xe5   : > { %v1253_v16 = vadd.f32 %v1252_v9, %v1189_v3  ;;  %v1117_v19 = vadd.f32 %v1116_v5, %v868_v6  ;;  %v1555_v6 = vmov 0.0  }
  0xe6   : > { %v1223_v21 = vadd.f32 %v1222_v10, %v1160_v15  ;;  %359 = vst.msk [vmem:[#allocation2] sm:$0xff] %vm358_vm1, %v1555_v6 }
  0xe7   : > { %v881_v53 = vpop.f32.mrf.mxu2  ;;  %v895_v48 = vpop.f32.mrf.mxu3  ;;  %v1254_v33 = vadd.f32 %v1253_v16, %v1190_v12  ;;  %360 = vst.msk [vmem:[#allocation2 + $0x8] sm:$0xff] %vm358_vm1, %v1555_v6 }
  0xe8   : > { %v907_v56 = vpop.f32.mrf.mxu0  ;;  %v921_v57 = vpop.f32.mrf.mxu1  ;;  %v882_v11 = vadd.f32 %v881_v53, %v1785_v26  ;;  %v896_v32 = vadd.f32 %v895_v48, %v1785_v26  ;;  %361 = vst.msk [vmem:[#allocation3] sm:$0xff] %vm358_vm1, %v1555_v6 }
  0xe9   : > { %v908_v4 = vadd.f32 %v907_v56, %v1781_v20  ;;  %v922_v23 = vadd.f32 %v921_v57, %v1781_v20  ;;  %362 = vst.msk [vmem:[#allocation3 + $0x8] sm:$0xff] %vm358_vm1, %v1555_v6 }
  0xea   : > { %v1191_v22 = vmul.f32 %v882_v11, %v882_v11  ;;  %v1118_v34 = vadd.f32 %v1117_v19, %v882_v11  ;;  %v1192_v28 = vmul.f32 %v896_v32, %v896_v32 }
  0xeb   : > { %v1161_v17 = vmul.f32 %v908_v4, %v908_v4  ;;  %v1087_v27 = vadd.f32 %v1086_v18, %v908_v4  ;;  %v1162_v37 = vmul.f32 %v922_v23, %v922_v23 }
  0xec   : > { %v1255_v8 = vadd.f32 %v1254_v33, %v1191_v22  ;;  %v1119_v42 = vadd.f32 %v1118_v34, %v896_v32 }
  0xed   : > { %v1224_v35 = vadd.f32 %v1223_v21, %v1161_v17  ;;  %v1088_v30 = vadd.f32 %v1087_v27, %v922_v23 }
  0xee   : > { %v1256_v53 = vadd.f32 %v1255_v8, %v1192_v28 }
  0xef   : > { %v935_v51 = vpop.f32.mrf.mxu2  ;;  %v949_v13 = vpop.f32.mrf.mxu3  ;;  %v1225_v44 = vadd.f32 %v1224_v35, %v1162_v37 }
  0xf0   : > { %v909_v14 = vpop.f32.mrf.mxu0  ;;  %v923_v7 = vpop.f32.mrf.mxu1  ;;  %v936_v25 = vadd.f32 %v935_v51, %v1781_v20  ;;  %v950_v31 = vadd.f32 %v949_v13, %v1781_v20 }
  0xf1   : > { %v910_v36 = vadd.f32 %v909_v14, %v1785_v26  ;;  %v924_v47 = vadd.f32 %v923_v7, %v1785_v26 }
  0xf2   : > { %v1163_v24 = vmul.f32 %v936_v25, %v936_v25  ;;  %v1089_v46 = vadd.f32 %v1088_v30, %v936_v25  ;;  %v1164_v55 = vmul.f32 %v950_v31, %v950_v31 }
  0xf3   : > { %v1193_v45 = vmul.f32 %v910_v36, %v910_v36  ;;  %v1120_v54 = vadd.f32 %v1119_v42, %v910_v36  ;;  %v1194_v29 = vmul.f32 %v924_v47, %v924_v47 }
  0xf4   : > { %v1226_v48 = vadd.f32 %v1225_v44, %v1163_v24  ;;  %v1090_v57 = vadd.f32 %v1089_v46, %v950_v31 }
  0xf5   : > { %v1257_v56 = vadd.f32 %v1256_v53, %v1193_v45  ;;  %v1121_v59 = vadd.f32 %v1120_v54, %v924_v47 }
  0xf6   : > { %v1227_v50 = vadd.f32 %v1226_v48, %v1164_v55 }
  0xf7   : > { %v937_v38 = vpop.f32.mrf.mxu2  ;;  %v951_v39 = vpop.f32.mrf.mxu3  ;;  %v1258_v4 = vadd.f32 %v1257_v56, %v1194_v29 }
  0xf8   : > { %v963_v40 = vpop.f32.mrf.mxu0  ;;  %v977_v41 = vpop.f32.mrf.mxu1  ;;  %v938_v43 = vadd.f32 %v937_v38, %v1785_v26  ;;  %v952_v63 = vadd.f32 %v951_v39, %v1785_v26 }
  0xf9   : > { %v964_v52 = vadd.f32 %v963_v40, %v1781_v20  ;;  %v978_v61 = vadd.f32 %v977_v41, %v1781_v20 }
  0xfa   : > { %v1195_v60 = vmul.f32 %v938_v43, %v938_v43  ;;  %v1122_v9 = vadd.f32 %v1121_v59, %v938_v43  ;;  %v1196_v7 = vmul.f32 %v952_v63, %v952_v63 }
  0xfb   : > { %v1165_v58 = vmul.f32 %v964_v52, %v964_v52  ;;  %v1091_v0 = vadd.f32 %v1090_v57, %v964_v52  ;;  %v1166_v13 = vmul.f32 %v978_v61, %v978_v61 }
  0xfc   : > { %v1259_v11 = vadd.f32 %v1258_v4, %v1195_v60  ;;  %v1123_v16 = vadd.f32 %v1122_v9, %v952_v63 }
  0xfd   : > { %v1228_v10 = vadd.f32 %v1227_v50, %v1165_v58  ;;  %v1092_v51 = vadd.f32 %v1091_v0, %v978_v61 }
  0xfe   : > { %v1260_v12 = vadd.f32 %v1259_v11, %v1196_v7 }
  0xff   : > { %v991_v62 = vpop.f32.mrf.mxu2  ;;  %v1005_v49 = vpop.f32.mrf.mxu3  ;;  %v1229_v17 = vadd.f32 %v1228_v10, %v1166_v13 }
 0x100   : > { %v992_v1 = vadd.f32 %v991_v62, %v1781_v20  ;;  %v965_v2 = vpop.f32.mrf.mxu0  ;;  %v979_v3 = vpop.f32.mrf.mxu1  ;;  %v1006_v19 = vadd.f32 %v1005_v49, %v1781_v20 }
 0x101   : > { %v966_v5 = vadd.f32 %v965_v2, %v1785_v26  ;;  %v980_v21 = vadd.f32 %v979_v3, %v1785_v26 }
 0x102   : > { %v1167_v14 = vmul.f32 %v992_v1, %v992_v1  ;;  %v1093_v18 = vadd.f32 %v1092_v51, %v992_v1  ;;  %v1168_v37 = vmul.f32 %v1006_v19, %v1006_v19 }
 0x103   : > { %v1197_v15 = vmul.f32 %v966_v5, %v966_v5  ;;  %v1124_v32 = vadd.f32 %v1123_v16, %v966_v5  ;;  %v1198_v24 = vmul.f32 %v980_v21, %v980_v21 }
 0x104   : > { %v1230_v25 = vadd.f32 %v1229_v17, %v1167_v14  ;;  %v1094_v8 = vadd.f32 %v1093_v18, %v1006_v19  ;;  %v1066_v18 = vld [vmem:[#allocation2] sm:$0xff] }
 0x105   : > { %v1261_v35 = vadd.f32 %v1260_v12, %v1197_v15  ;;  %v1125_v30 = vadd.f32 %v1124_v32, %v980_v21  ;;  %v1139_v12 = vld [vmem:[#allocation3] sm:$0xff]  ;;  %v1140_v32 = vld [vmem:[#allocation3 + $0x8] sm:$0xff] }
 0x106   : > { %v1231_v28 = vadd.f32 %v1230_v25, %v1168_v37 }
 0x107   : > { %v993_v22 = vpop.f32.mrf.mxu2  ;;  %v1007_v23 = vpop.f32.mrf.mxu3  ;;  %v1262_v42 = vadd.f32 %v1261_v35, %v1198_v24 }
 0x108   : > { %v994_v27 = vadd.f32 %v993_v22, %v1785_v26  ;;  %v1019_v33 = vpop.f32.mrf.mxu0  ;;  %v1033_v34 = vpop.f32.mrf.mxu1  ;;  %v1008_v44 = vadd.f32 %v1007_v23, %v1785_v26 }
 0x109   : > { %v1020_v36 = vadd.f32 %v1019_v33, %v1781_v20  ;;  %v1034_v41 = vadd.f32 %v1033_v34, %v1781_v20 }
 0x10a   : > { %v1199_v38 = vmul.f32 %v994_v27, %v994_v27  ;;  %v1126_v31 = vadd.f32 %v1125_v30, %v994_v27  ;;  %v1200_v57 = vmul.f32 %v1008_v44, %v1008_v44 }
 0x10b   : > { %v1169_v39 = vmul.f32 %v1020_v36, %v1020_v36  ;;  %v1095_v40 = vadd.f32 %v1094_v8, %v1020_v36  ;;  %v1170_v48 = vmul.f32 %v1034_v41, %v1034_v41 }
 0x10c   : > { %v1263_v46 = vadd.f32 %v1262_v42, %v1199_v38  ;;  %v1127_v58 = vadd.f32 %v1126_v31, %v1008_v44 }
 0x10d   : > { %v1232_v45 = vadd.f32 %v1231_v28, %v1169_v39  ;;  %v1096_v53 = vadd.f32 %v1095_v40, %v1034_v41 }
 0x10e   : > { %v1264_v61 = vadd.f32 %v1263_v46, %v1200_v57 }
 0x10f   : > { %v1047_v47 = vpop.f32.mrf.mxu2  ;;  %v1061_v52 = vpop.f32.mrf.mxu3  ;;  %v1233_v60 = vadd.f32 %v1232_v45, %v1170_v48 }
 0x110   : > { %v1048_v54 = vadd.f32 %v1047_v47, %v1781_v20  ;;  %v1062_v43 = vadd.f32 %v1061_v52, %v1781_v20  ;;  %v1021_v55 = vpop.f32.mrf.mxu0  ;;  %v1035_v56 = vpop.f32.mrf.mxu1 }
 0x111   : > { %v1022_v29 = vadd.f32 %v1021_v55, %v1785_v26  ;;  %v1036_v49 = vadd.f32 %v1035_v56, %v1785_v26  ;;  %v1292_v55 = vld [vmem:[%s1902_s4] sm:$0xff] }
 0x112   : > { %v1171_v50 = vmul.f32 %v1048_v54, %v1048_v54  ;;  %v1097_v59 = vadd.f32 %v1096_v53, %v1048_v54  ;;  %v1172_v2 = vmul.f32 %v1062_v43, %v1062_v43 }
 0x113   : > { %v1201_v62 = vmul.f32 %v1022_v29, %v1022_v29  ;;  %v1128_v0 = vadd.f32 %v1127_v58, %v1022_v29  ;;  %v1202_v9 = vmul.f32 %v1036_v49, %v1036_v49 }
 0x114   : > { %v1098_v1 = vadd.f32 %v1097_v59, %v1062_v43  ;;  %v1234_v3 = vadd.f32 %v1233_v60, %v1171_v50  ;;  %v1320_v59 = vld [vmem:[%s1903_s5] sm:$0xff] }
 0x115   : > { %v1265_v4 = vadd.f32 %v1264_v61, %v1201_v62  ;;  %v1129_v6 = vadd.f32 %v1128_v0, %v1036_v49  ;;  %v1293_v0 = vld [vmem:[%s1902_s4 + $0x8] sm:$0xff] }
 0x116   : > { %1099 = vadd.xlane.f32.xlu1 %v1098_v1  ;;  %v1235_v20 = vadd.f32 %v1234_v3, %v1172_v2 }
 0x117   : > { %v1049_v63 = vpop.f32.mrf.mxu2  ;;  %v1063_v5 = vpop.f32.mrf.mxu3  ;;  %v1266_v51 = vadd.f32 %v1265_v4, %v1202_v9  ;;  %v1321_v4 = vld [vmem:[%s1903_s5 + $0x8] sm:$0xff] }
 0x118   : > { %v1050_v10 = vadd.f32 %v1049_v63, %v1785_v26  ;;  %v1064_v11 = vadd.f32 %v1063_v5, %v1785_v26  ;;  %1236 = vadd.xlane.f32.xlu2 %v1235_v20  ;;  %v1067_v26 = vld [vmem:[#allocation2 + $0x8] sm:$0xff] }
 0x11a   : > { %v1130_v13 = vadd.f32 %v1129_v6, %v1050_v10  ;;  %v1203_v14 = vmul.f32 %v1050_v10, %v1050_v10  ;;  %v1204_v7 = vmul.f32 %v1064_v11, %v1064_v11 }
 0x11c   : > { %v1131_v15 = vadd.f32 %v1130_v13, %v1064_v11  ;;  %v1267_v16 = vadd.f32 %v1266_v51, %v1203_v14 }
 0x11e   : > { %1132 = vadd.xlane.f32.xlu1 %v1131_v15  ;;  %v1268_v17 = vadd.f32 %v1267_v16, %v1204_v7 }
 0x120   : > { %1269 = vadd.xlane.f32.xlu2 %v1268_v17 }
 0x189   : > { %v1100_v19 = vpop.xlane.xlu1 %1099 }
 0x18a   : > { %v1134_v21 = vadd.f32 %v1100_v19, %v1066_v18 }
 0x18b   : > { %v1237_v22 = vpop.xlane.xlu2 %1236 }
 0x18c   : > { %1137 = vst.msk [vmem:[#allocation2] sm:$0xff] %vm358_vm1, %v1134_v21  ;;  %v1271_v23 = vadd.f32 %v1237_v22, %v1139_v12 }
 0x18e   : > { %1273 = vst.msk [vmem:[#allocation3] sm:$0xff] %vm358_vm1, %v1271_v23 }
 0x191   : > { %v1133_v25 = vpop.xlane.xlu1 %1132 }
 0x192   : > { %v1135_v27 = vadd.f32 %v1133_v25, %v1067_v26 }
 0x193   : > { %v1278_v33 = vld [vmem:[#allocation2] sm:$0xff]  ;;  %v1270_v34 = vpop.xlane.xlu2 %1269 }
 0x194   : > { %v1280_v35 = vmul.f32 0.00024414063, %v1278_v33  ;;  %1138 = vst.msk [vmem:[#allocation2 + $0x8] sm:$0xff] %vm358_vm1, %v1135_v27  ;;  %v1272_v36 = vadd.f32 %v1270_v34, %v1140_v32 }
 0x195   : > { %v1282_v8 = vld [vmem:[#allocation3] sm:$0xff] }
 0x196   : > { %v1286_v37 = vmul.f32 %v1280_v35, %v1280_v35  ;;  %v1284_v24 = vmul.f32 0.00024414063, %v1282_v8  ;;  %1274 = vst.msk [vmem:[#allocation3 + $0x8] sm:$0xff] %vm358_vm1, %v1272_v36 }
 0x198   : > { %v1288_v38 = vsub.f32 %v1284_v24, %v1286_v37 }
 0x19a   : > { %v1290_v39 = vmax.f32 %v1288_v38, 0.0 }
 0x19b   : > { %v1279_v28 = vld [vmem:[#allocation2 + $0x8] sm:$0xff] }
 0x19c   : > { %v1294_v30 = vadd.f32 1e-05, %v1290_v39  ;;  %v1281_v40 = vmul.f32 0.00024414063, %v1279_v28 }
 0x19d   : > { %v1283_v41 = vld [vmem:[#allocation3 + $0x8] sm:$0xff] }
 0x19e   : > { %1526 = vrsqrt.f32 %v1294_v30  ;;  %v1287_v42 = vmul.f32 %v1281_v40, %v1281_v40  ;;  %v1285_v44 = vmul.f32 0.00024414063, %v1283_v41  ;;  %vm1302_vm3 = vweird.f32 %v1294_v30 }
 0x1a0   : > { %v1289_v31 = vsub.f32 %v1285_v44, %v1287_v42 }
 0x1a2   : > { %v1291_v45 = vmax.f32 %v1289_v31, 0.0 }
 0x1a4   : > { %v1527_v46 = vpop.eup %1526  ;;  %v1295_v47 = vadd.f32 1e-05, %v1291_v45 }
 0x1a5   : > { %v1297_v52 = vmul.f32 %v1527_v46, %v1294_v30  ;;  %vm1303_vm2 = vweird.f32 %v1527_v46 }
 0x1a6   : > { %1528 = vrsqrt.f32 %v1295_v47  ;;  %vm1304_vm4 = vmor %vm1302_vm3, %vm1303_vm2  ;;  %vm1312_vm6 = vweird.f32 %v1295_v47 }
 0x1a7   : > { %v1298_v53 = vmul.f32 %v1527_v46, %v1297_v52 }
 0x1a9   : > { %v1299_v48 = vmul.f32 0.5, %v1298_v53 }
 0x1ab   : > { %v1300_v54 = vsub.f32 1.5, %v1299_v48 }
 0x1ac   : > { %v1529_v43 = vpop.eup %1528 }
 0x1ad   : > { %v1301_v56 = vmul.f32 %v1527_v46, %v1300_v54  ;;  %v1307_v57 = vmul.f32 %v1529_v43, %v1295_v47  ;;  %vm1313_vm5 = vweird.f32 %v1529_v43 }
 0x1ae   : > { %vm1314_vm7 = vmor %vm1312_vm6, %vm1313_vm5 }
 0x1af   : > { %v1305_v29 = vsel %vm1304_vm4, %v1527_v46, %v1301_v56  ;;  %v1308_v58 = vmul.f32 %v1529_v43, %v1307_v57 }
 0x1b0   : > { %v1316_v50 = vmul.f32 %v1305_v29, %v1292_v55 }
 0x1b1   : > { %v1309_v60 = vmul.f32 0.5, %v1308_v58 }
 0x1b2   : > { %1318 = vst.msk [vmem:[%s347_s28] sm:$0xff] %vm358_vm1, %v1316_v50  ;;  %v1322_v61 = vmul.f32 %v1316_v50, %v1280_v35 }
 0x1b3   : > { %v1310_v62 = vsub.f32 1.5, %v1309_v60 }
 0x1b4   : > { %v1324_v49 = vsub.f32 %v1320_v59, %v1322_v61 }
 0x1b5   : > { %v1311_v1 = vmul.f32 %v1529_v43, %v1310_v62 }
 0x1b6   : > { %1326 = vst.msk [vmem:[%s352_s9] sm:$0xff] %vm358_vm1, %v1324_v49 }
 0x1b7   : > { %v1315_v2 = vsel %vm1314_vm7, %v1529_v43, %v1311_v1 }
 0x1b8   : > { %v1317_v3 = vmul.f32 %v1315_v2, %v1293_v0 }
 0x1ba   : > { %1319 = vst.msk [vmem:[%s347_s28 + $0x8] sm:$0xff] %vm358_vm1, %v1317_v3  ;;  %v1323_v20 = vmul.f32 %v1317_v3, %v1281_v40 }
 0x1bc   : > { %v1325_v63 = vsub.f32 %v1321_v4, %v1323_v20 }
 0x1be   : > { %1327 = vst.msk [vmem:[%s352_s9 + $0x8] sm:$0xff] %vm358_vm1, %v1325_v63 }
 0x1bf PF: > { %s18_s26 = sadd.s32 1, %s1552_s26   ;;  %s1906_s24 = smov %s1548_s25 }
 0x1c0   : > { %p15_p5 = scmp.ge.s32.totalorder %s18_s26, 4   ;;  %s1907_s25 = smov %s1909_s27 }
 0x1c2   :  { %17 = sbr.rel (!%p15_p5) target bundleno = 2 (0x2), region = 97 }

// kernel: grid_attention_block_3d.5
= control target key start
LH: loop header
LB: loop body
LE: loop exit
PB: predicated region body
PF: predicated region fallthrough
CT: control target
= control target key end

     0   :  { %s1555_s21 = smov 0   ;;  %s1557_s22 = smov 0   ;;  %s2055_s0 = inlined_call_operand.vmem [shape: f32[2,16,4096], index: 0, kind: input, shape index: {}]   ;;  %s2056_s1 = inlined_call_operand.vmem [shape: f32[2,1,4096], index: 1, kind: input, shape index: {}]   ;;  %s2057_s2 = inlined_call_operand.vmem [shape: bf16[16,16], index: 2, kind: input, shape index: {}]   ;;  %s2058_s3 = inlined_call_operand.vmem [shape: f32[16,1], index: 3, kind: input, shape index: {}]   ;;  %s2059_s4 = inlined_call_operand.vmem [shape: f32[2,16,1], index: 4, kind: input, shape index: {}]   ;;  %s2060_s5 = inlined_call_operand.vmem [shape: f32[2,16,1], index: 5, kind: input, shape index: {}]   ;;  %s2061_s6 = inlined_call_operand.vmem [shape: f32[2,16,4096], index: 6, kind: output, shape index: {}]  }
   0x1   :  { %s1559_s23 = smov 0  }
   0x2 LB: > { %s28_s24 = sadd.s32 1, %s1513_s22  ;;  %p1414_p0 = scmp.ge.s32.totalorder %s1517_s23, 1  ;;  %s1517_s23 = sphi %s1559_s23, %s16_s23   ;;  %s1513_s22 = sphi %s1557_s22, %s2063_s22   ;;  %s1509_s21 = sphi %s1555_s21, %s2062_s21  }
   0x3   : > { %p30_p1 = scmp.ge.s32.totalorder %s28_s24, 2  ;;  %p269_p2 = scmp.lt.s32.totalorder %s1517_s23, 3 }
   0x5   : > { %s2065_s24 = smov (%p30_p1, %s28_s24), 0  ;;  %p270_p3 = pnand %p1414_p0, %p269_p2 }
   0x6   : > { %p326_p4 = scmp.lt.s32.totalorder (!%p270_p3), %s1509_s21, 1 }
   0x7   : > { %273 = sbr.rel (%p270_p3) target bundleno = 288 (0x120), region = 44 }
   0xc   : > { %v599_v0 = vld [vmem:[%s2058_s3] sm:$0xff]  ;;  %v1519_v1 = vmov 0   ;;  %s2067_s21 = smov (!%p326_p4, %s1509_s21), 1  ;;  %v600_v2 = vld [vmem:[%s2058_s3 + $0x8] sm:$0xff]  ;;  %vm616_vm0 = vcmask 130048  }
   0xd   : > { %1492 = vset.pattern.permute.xlu0 %v1519_v1  ;;  %1493 = vset.pattern.permute.xlu1 %v1519_v1  ;;  %s1462_s27 = sshll.u32 %s2067_s21, 9  ;;  %s1417_s28 = sshll.u32 %s2067_s21, 5  ;;  %v1626_v29 = vld [vmem:[%s2057_s2] sm:$0xff] }
   0xe   : > { %603 = vperm.xlu0 %1492, %v599_v0   ;;  %1494 = vset.pattern.permute.xlu2 %v1519_v1  ;;  %s1585_s7 = scalar_lea.vmem %s2055_s0, %s1462_s27  ;;  %s1590_s10 = scalar_lea.vmem %s2056_s1, %s1417_s28 }
   0xf   : > { %v365_v3 = vld [vmem:[%s1585_s7] sm:$0xff]  ;;  %s1463_s13 = sshll.u32 %s2067_s21, 4  ;;  %v366_v7 = vld [vmem:[%s1585_s7 + $0x8] sm:$0xff]  ;;  %v367_v10 = vld [vmem:[%s1585_s7 + $0x10] sm:$0xff]  ;;  %s1786_s29 = scalar_lea.vmem %s2061_s6, %s1462_s27 }
  0x10   : > { %v397_v4 = vld [vmem:[%s1585_s7 + $0x100] sm:$0xff]  ;;  %v398_v8 = vld [vmem:[%s1585_s7 + $0x108] sm:$0xff]  ;;  %v399_v12 = vld [vmem:[%s1585_s7 + $0x110] sm:$0xff]  ;;  %s1618_s16 = scalar_lea.vmem %s2059_s4, %s1463_s13  ;;  %s1660_s25 = scalar_lea.vmem %s2060_s5, %s1463_s13 }
  0x11   : > { %v1598_v5 = vld [vmem:[%s1590_s10] sm:$0xff]  ;;  %v368_v13 = vld [vmem:[%s1585_s7 + $0x18] sm:$0xff]  ;;  %v371_v22 = vld [vmem:[%s1585_s7 + $0x30] sm:$0xff] }
  0x12   : > { %v437_v6 = vperm.slane %v1598_v5, 0  ;;  %v438_v9 = vperm.slane %v1598_v5, 1  ;;  %v439_v11 = vperm.slane %v1598_v5, 2  ;;  %v400_v14 = vld [vmem:[%s1585_s7 + $0x118] sm:$0xff]  ;;  %v440_v15 = vperm.slane %v1598_v5, 3  ;;  %v403_v23 = vld [vmem:[%s1585_s7 + $0x130] sm:$0xff] }
  0x13   : > { %v443_v16 = vperm.slane %v1598_v5, 6  ;;  %v444_v17 = vperm.slane %v1598_v5, 7  ;;  %v372_v24 = vld [vmem:[%s1585_s7 + $0x38] sm:$0xff]  ;;  %v369_v35 = vld [vmem:[%s1585_s7 + $0x20] sm:$0xff]  ;;  %v370_v42 = vld [vmem:[%s1585_s7 + $0x28] sm:$0xff]  ;;  %v441_v46 = vperm.slane %v1598_v5, 4 }
  0x14   : > { %v501_v18 = vmul.f32 %v437_v6, %v365_v3  ;;  %v533_v19 = vmul.f32 %v437_v6, %v397_v4  ;;  %v502_v20 = vmul.f32 %v438_v9, %v366_v7  ;;  %v534_v21 = vmul.f32 %v438_v9, %v398_v8  ;;  %v404_v30 = vld [vmem:[%s1585_s7 + $0x138] sm:$0xff]  ;;  %v401_v36 = vld [vmem:[%s1585_s7 + $0x120] sm:$0xff]  ;;  %v402_v43 = vld [vmem:[%s1585_s7 + $0x128] sm:$0xff] }
  0x15   : > { %v503_v25 = vmul.f32 %v439_v11, %v367_v10  ;;  %v535_v26 = vmul.f32 %v439_v11, %v399_v12  ;;  %v504_v27 = vmul.f32 %v440_v15, %v368_v13  ;;  %v536_v28 = vmul.f32 %v440_v15, %v400_v14  ;;  %v1068_v37 = vld [vmem:[%s1618_s16] sm:$0xff]  ;;  %v1635_v44 = vld [vmem:[%s1590_s10 + $0x8] sm:$0xff]  ;;  %v375_v48 = vld [vmem:[%s1585_s7 + $0x50] sm:$0xff] }
  0x16   : > { %608 = vperm.xlu0 %1492, %v600_v2   ;;  %v565_v31 = vpack.c.bf16 %v533_v19, %v501_v18  ;;  %v566_v32 = vpack.c.bf16 %v534_v21, %v502_v20  ;;  %v507_v33 = vmul.f32 %v443_v16, %v371_v22  ;;  %v539_v34 = vmul.f32 %v443_v16, %v403_v23  ;;  %v407_v49 = vld [vmem:[%s1585_s7 + $0x150] sm:$0xff]  ;;  %v376_v51 = vld [vmem:[%s1585_s7 + $0x58] sm:$0xff]  ;;  %v373_v61 = vld [vmem:[%s1585_s7 + $0x40] sm:$0xff] }
  0x17   : > { %v567_v38 = vpack.c.bf16 %v535_v26, %v503_v25  ;;  %v568_v39 = vpack.c.bf16 %v536_v28, %v504_v27  ;;  %v508_v40 = vmul.f32 %v444_v17, %v372_v24  ;;  %v540_v41 = vmul.f32 %v444_v17, %v404_v30  ;;  %1072 = vperm.xlu1 %1493, %v1068_v37   ;;  %v408_v53 = vld [vmem:[%s1585_s7 + $0x158] sm:$0xff]  ;;  %v405_v62 = vld [vmem:[%s1585_s7 + $0x140] sm:$0xff]  ;;  %v374_v63 = vld [vmem:[%s1585_s7 + $0x48] sm:$0xff] }
  0x18   : > { %627 = vmatpush.bf16.msra.mxu0 %v565_v31  ;;  %641 = vmatpush.bf16.msra.mxu1 %v566_v32  ;;  %v571_v45 = vpack.c.bf16 %v539_v34, %v507_v33  ;;  %v442_v47 = vperm.slane %v1598_v5, 5  ;;  %v447_v50 = vperm.slane %v1635_v44, 2  ;;  %v448_v54 = vperm.slane %v1635_v44, 3  ;;  %v406_v3 = vld [vmem:[%s1585_s7 + $0x148] sm:$0xff]  ;;  %v1144_v14 = vld [vmem:[%s1660_s25] sm:$0xff]  ;;  %v379_v17 = vld [vmem:[%s1585_s7 + $0x70] sm:$0xff] }
  0x19   : > { %655 = vmatpush.bf16.msra.mxu2 %v567_v38  ;;  %669 = vmatpush.bf16.msra.mxu3 %v568_v39  ;;  %v572_v52 = vpack.c.bf16 %v540_v41, %v508_v40  ;;  %v445_v55 = vperm.slane %v1635_v44, 0  ;;  %v446_v56 = vperm.slane %v1635_v44, 1  ;;  %v505_v57 = vmul.f32 %v441_v46, %v369_v35  ;;  %v1069_v7 = vld [vmem:[%s1618_s16 + $0x8] sm:$0xff]  ;;  %v411_v18 = vld [vmem:[%s1585_s7 + $0x170] sm:$0xff]  ;;  %v380_v21 = vld [vmem:[%s1585_s7 + $0x78] sm:$0xff] }
  0x1a   : > { %v537_v58 = vmul.f32 %v441_v46, %v401_v36  ;;  %v506_v59 = vmul.f32 %v442_v47, %v370_v42  ;;  %v538_v60 = vmul.f32 %v442_v47, %v402_v43  ;;  %v511_v0 = vmul.f32 %v447_v50, %v375_v48  ;;  %1148 = vperm.xlu2 %1494, %v1144_v14   ;;  %v412_v22 = vld [vmem:[%s1585_s7 + $0x178] sm:$0xff]  ;;  %v377_v23 = vld [vmem:[%s1585_s7 + $0x60] sm:$0xff]  ;;  %v378_v27 = vld [vmem:[%s1585_s7 + $0x68] sm:$0xff] }
  0x1b   : > { %1428 = vmatmul.msk.bf16.vlgmr.msra.gmra.mxu0 %vm616_vm0, %v1626_v29  ;;  %1429 = vmatmul.msk.bf16.vlgmr.msra.gmra.mxu1 %vm616_vm0, %v1626_v29  ;;  %v543_v1 = vmul.f32 %v447_v50, %v407_v49  ;;  %v512_v2 = vmul.f32 %v448_v54, %v376_v51  ;;  %v544_v6 = vmul.f32 %v448_v54, %v408_v53  ;;  %v451_v19 = vperm.slane %v1635_v44, 6  ;;  %v409_v26 = vld [vmem:[%s1585_s7 + $0x160] sm:$0xff]  ;;  %v410_v28 = vld [vmem:[%s1585_s7 + $0x168] sm:$0xff]  ;;  %v431_v43 = vld [vmem:[%s1590_s10 + $0x10] sm:$0xff] }
  0x1c   : > { %1430 = vmatmul.msk.bf16.vlgmr.msra.gmra.mxu2 %vm616_vm0, %v1626_v29  ;;  %1431 = vmatmul.msk.bf16.vlgmr.msra.gmra.mxu3 %vm616_vm0, %v1626_v29  ;;  %v569_v4 = vpack.c.bf16 %v537_v58, %v505_v57  ;;  %v570_v5 = vpack.c.bf16 %v538_v60, %v506_v59  ;;  %v509_v9 = vmul.f32 %v445_v55, %v373_v61  ;;  %v452_v20 = vperm.slane %v1635_v44, 7  ;;  %v1145_v34 = vld [vmem:[%s1660_s25 + $0x8] sm:$0xff]  ;;  %v384_v48 = vld [vmem:[%s1585_s7 + $0x98] sm:$0xff]  ;;  %v381_v50 = vld [vmem:[%s1585_s7 + $0x80] sm:$0xff] }
  0x1d   : > { %711 = vmatpush.bf16.msrb.mxu2 %v571_v45  ;;  %725 = vmatpush.bf16.msrb.mxu3 %v572_v52  ;;  %v575_v8 = vpack.c.bf16 %v543_v1, %v511_v0  ;;  %v541_v10 = vmul.f32 %v445_v55, %v405_v62  ;;  %v510_v11 = vmul.f32 %v446_v56, %v374_v63  ;;  %v449_v24 = vperm.slane %v1635_v44, 4  ;;  %v415_v45 = vld [vmem:[%s1585_s7 + $0x190] sm:$0xff]  ;;  %v416_v49 = vld [vmem:[%s1585_s7 + $0x198] sm:$0xff]  ;;  %v413_v53 = vld [vmem:[%s1585_s7 + $0x180] sm:$0xff] }
  0x1e   : > { %683 = vmatpush.bf16.msrb.mxu0 %v569_v4  ;;  %697 = vmatpush.bf16.msrb.mxu1 %v570_v5  ;;  %v576_v12 = vpack.c.bf16 %v544_v6, %v512_v2  ;;  %v542_v13 = vmul.f32 %v446_v56, %v406_v3  ;;  %v450_v25 = vperm.slane %v1635_v44, 5  ;;  %v515_v30 = vmul.f32 %v451_v19, %v379_v17  ;;  %v383_v44 = vld [vmem:[%s1585_s7 + $0x90] sm:$0xff]  ;;  %v382_v54 = vld [vmem:[%s1585_s7 + $0x88] sm:$0xff] }
  0x1f   : > { %1077 = vperm.xlu1 %1493, %v1069_v7   ;;  %v573_v15 = vpack.c.bf16 %v541_v10, %v509_v9  ;;  %v547_v31 = vmul.f32 %v451_v19, %v411_v18  ;;  %v516_v32 = vmul.f32 %v452_v20, %v380_v21  ;;  %v548_v33 = vmul.f32 %v452_v20, %v412_v22  ;;  %v414_v55 = vld [vmem:[%s1585_s7 + $0x188] sm:$0xff]  ;;  %v387_v4 = vld [vmem:[%s1585_s7 + $0xb0] sm:$0xff]  ;;  %v420_v9 = vld [vmem:[%s1585_s7 + $0x1b8] sm:$0xff] }
  0x20   : > { %v574_v16 = vpack.c.bf16 %v542_v13, %v510_v11  ;;  %v513_v35 = vmul.f32 %v449_v24, %v377_v23  ;;  %v545_v36 = vmul.f32 %v449_v24, %v409_v26  ;;  %v514_v37 = vmul.f32 %v450_v25, %v378_v27  ;;  %v419_v5 = vld [vmem:[%s1585_s7 + $0x1b0] sm:$0xff]  ;;  %v385_v10 = vld [vmem:[%s1585_s7 + $0xa0] sm:$0xff]  ;;  %v386_v14 = vld [vmem:[%s1585_s7 + $0xa8] sm:$0xff] }
  0x21   : > { %767 = vmatpush.bf16.msra.mxu2 %v575_v8  ;;  %781 = vmatpush.bf16.msra.mxu3 %v576_v12  ;;  %v546_v38 = vmul.f32 %v450_v25, %v410_v28  ;;  %v579_v39 = vpack.c.bf16 %v547_v31, %v515_v30  ;;  %v580_v40 = vpack.c.bf16 %v548_v33, %v516_v32  ;;  %v455_v46 = vperm.slane %v431_v43, 2  ;;  %v388_v8 = vld [vmem:[%s1585_s7 + $0xb8] sm:$0xff]  ;;  %v417_v13 = vld [vmem:[%s1585_s7 + $0x1a0] sm:$0xff]  ;;  %v391_v30 = vld [vmem:[%s1585_s7 + $0xd0] sm:$0xff] }
  0x22   : > { %739 = vmatpush.bf16.msra.mxu0 %v573_v15  ;;  %753 = vmatpush.bf16.msra.mxu1 %v574_v16  ;;  %v577_v41 = vpack.c.bf16 %v545_v36, %v513_v35  ;;  %v456_v47 = vperm.slane %v431_v43, 3  ;;  %v453_v51 = vperm.slane %v431_v43, 0  ;;  %v454_v52 = vperm.slane %v431_v43, 1  ;;  %v418_v15 = vld [vmem:[%s1585_s7 + $0x1a8] sm:$0xff]  ;;  %v432_v28 = vld [vmem:[%s1590_s10 + $0x18] sm:$0xff]  ;;  %v423_v31 = vld [vmem:[%s1585_s7 + $0x1d0] sm:$0xff] }
  0x23   : > { %1153 = vperm.xlu2 %1494, %v1145_v34   ;;  %v578_v42 = vpack.c.bf16 %v546_v38, %v514_v37  ;;  %v519_v56 = vmul.f32 %v455_v46, %v383_v44  ;;  %v551_v57 = vmul.f32 %v455_v46, %v415_v45  ;;  %v459_v6 = vperm.slane %v431_v43, 6  ;;  %v392_v34 = vld [vmem:[%s1585_s7 + $0xd8] sm:$0xff]  ;;  %v389_v36 = vld [vmem:[%s1585_s7 + $0xc0] sm:$0xff] }
  0x24   : > { %v520_v58 = vmul.f32 %v456_v47, %v384_v48  ;;  %v552_v59 = vmul.f32 %v456_v47, %v416_v49  ;;  %v517_v60 = vmul.f32 %v453_v51, %v381_v50  ;;  %v549_v61 = vmul.f32 %v453_v51, %v413_v53  ;;  %v424_v35 = vld [vmem:[%s1585_s7 + $0x1d8] sm:$0xff] }
  0x25   : > { %v518_v62 = vmul.f32 %v454_v52, %v382_v54  ;;  %v550_v63 = vmul.f32 %v454_v52, %v414_v55  ;;  %v583_v0 = vpack.c.bf16 %v551_v57, %v519_v56  ;;  %v460_v7 = vperm.slane %v431_v43, 7  ;;  %v395_v54 = vld [vmem:[%s1585_s7 + $0xf0] sm:$0xff] }
  0x26   : > { %v584_v1 = vpack.c.bf16 %v552_v59, %v520_v58  ;;  %v581_v2 = vpack.c.bf16 %v549_v61, %v517_v60  ;;  %v457_v11 = vperm.slane %v431_v43, 4  ;;  %v458_v12 = vperm.slane %v431_v43, 5  ;;  %v427_v55 = vld [vmem:[%s1585_s7 + $0x1f0] sm:$0xff]  ;;  %v396_v58 = vld [vmem:[%s1585_s7 + $0xf8] sm:$0xff]  ;;  %v393_v60 = vld [vmem:[%s1585_s7 + $0xe0] sm:$0xff] }
  0x27   : > { %v582_v3 = vpack.c.bf16 %v550_v63, %v518_v62  ;;  %v523_v16 = vmul.f32 %v459_v6, %v387_v4  ;;  %v555_v17 = vmul.f32 %v459_v6, %v419_v5  ;;  %v524_v18 = vmul.f32 %v460_v7, %v388_v8  ;;  %v428_v59 = vld [vmem:[%s1585_s7 + $0x1f8] sm:$0xff]  ;;  %v425_v63 = vld [vmem:[%s1585_s7 + $0x1e0] sm:$0xff] }
  0x28   : > { %v556_v19 = vmul.f32 %v460_v7, %v420_v9  ;;  %v521_v20 = vmul.f32 %v457_v11, %v385_v10  ;;  %v553_v21 = vmul.f32 %v457_v11, %v417_v13  ;;  %v522_v22 = vmul.f32 %v458_v12, %v386_v14 }
  0x29   : > { %v554_v23 = vmul.f32 %v458_v12, %v418_v15  ;;  %v587_v24 = vpack.c.bf16 %v555_v17, %v523_v16  ;;  %v463_v32 = vperm.slane %v432_v28, 2  ;;  %v464_v33 = vperm.slane %v432_v28, 3 }
  0x2a   : > { %v588_v25 = vpack.c.bf16 %v556_v19, %v524_v18  ;;  %v585_v26 = vpack.c.bf16 %v553_v21, %v521_v20  ;;  %v461_v37 = vperm.slane %v432_v28, 0  ;;  %v462_v38 = vperm.slane %v432_v28, 1 }
  0x2b   : > { %1432 = vmatmul.msk.bf16.vlgmr.msrb.gmra.mxu0 %vm616_vm0, %v1626_v29  ;;  %1433 = vmatmul.msk.bf16.vlgmr.msrb.gmra.mxu1 %vm616_vm0, %v1626_v29  ;;  %v586_v27 = vpack.c.bf16 %v554_v23, %v522_v22  ;;  %v559_v43 = vmul.f32 %v463_v32, %v423_v31  ;;  %v528_v44 = vmul.f32 %v464_v33, %v392_v34  ;;  %v467_v56 = vperm.slane %v432_v28, 6 }
  0x2c   : > { %1434 = vmatmul.msk.bf16.vlgmr.msrb.gmra.mxu2 %vm616_vm0, %v1626_v29  ;;  %1435 = vmatmul.msk.bf16.vlgmr.msrb.gmra.mxu3 %vm616_vm0, %v1626_v29  ;;  %v560_v45 = vmul.f32 %v464_v33, %v424_v35  ;;  %v525_v46 = vmul.f32 %v461_v37, %v389_v36  ;;  %v468_v57 = vperm.slane %v432_v28, 7  ;;  %v465_v61 = vperm.slane %v432_v28, 4 }
  0x2d   : > { %823 = vmatpush.bf16.msrb.mxu2 %v579_v39  ;;  %837 = vmatpush.bf16.msrb.mxu3 %v580_v40  ;;  %v421_v39 = vld [vmem:[%s1585_s7 + $0x1c0] sm:$0xff]  ;;  %v390_v40 = vld [vmem:[%s1585_s7 + $0xc8] sm:$0xff]  ;;  %v466_v62 = vperm.slane %v432_v28, 5 }
  0x2e   : > { %795 = vmatpush.bf16.msrb.mxu0 %v577_v41  ;;  %809 = vmatpush.bf16.msrb.mxu1 %v578_v42  ;;  %v422_v41 = vld [vmem:[%s1585_s7 + $0x1c8] sm:$0xff]  ;;  %v527_v42 = vmul.f32 %v463_v32, %v391_v30  ;;  %v557_v47 = vmul.f32 %v461_v37, %v421_v39  ;;  %v526_v48 = vmul.f32 %v462_v38, %v390_v40 }
  0x2f   : > { %v558_v49 = vmul.f32 %v462_v38, %v422_v41  ;;  %v592_v51 = vpack.c.bf16 %v560_v45, %v528_v44  ;;  %v532_v4 = vmul.f32 %v468_v57, %v396_v58  ;;  %v564_v5 = vmul.f32 %v468_v57, %v428_v59 }
  0x30   : > { %v591_v50 = vpack.c.bf16 %v559_v43, %v527_v42  ;;  %v589_v52 = vpack.c.bf16 %v557_v47, %v525_v46  ;;  %v529_v6 = vmul.f32 %v465_v61, %v393_v60  ;;  %v561_v7 = vmul.f32 %v465_v61, %v425_v63 }
  0x31   : > { %v590_v53 = vpack.c.bf16 %v558_v49, %v526_v48  ;;  %v596_v11 = vpack.c.bf16 %v564_v5, %v532_v4 }
  0x32   : > { %v593_v12 = vpack.c.bf16 %v561_v7, %v529_v6 }
  0x3b   : > { %1436 = vmatmul.msk.bf16.vlgmr.msra.gmra.mxu0 %vm616_vm0, %v1626_v29  ;;  %1437 = vmatmul.msk.bf16.vlgmr.msra.gmra.mxu1 %vm616_vm0, %v1626_v29 }
  0x3c   : > { %1438 = vmatmul.msk.bf16.vlgmr.msra.gmra.mxu2 %vm616_vm0, %v1626_v29  ;;  %1439 = vmatmul.msk.bf16.vlgmr.msra.gmra.mxu3 %vm616_vm0, %v1626_v29 }
  0x3d   : > { %879 = vmatpush.bf16.msra.mxu2 %v583_v0  ;;  %893 = vmatpush.bf16.msra.mxu3 %v584_v1  ;;  %v394_v0 = vld [vmem:[%s1585_s7 + $0xe8] sm:$0xff] }
  0x3e   : > { %851 = vmatpush.bf16.msra.mxu0 %v581_v2  ;;  %865 = vmatpush.bf16.msra.mxu1 %v582_v3  ;;  %v426_v1 = vld [vmem:[%s1585_s7 + $0x1e8] sm:$0xff]  ;;  %v531_v2 = vmul.f32 %v467_v56, %v395_v54  ;;  %v563_v3 = vmul.f32 %v467_v56, %v427_v55  ;;  %v530_v8 = vmul.f32 %v466_v62, %v394_v0 }
  0x3f   : > { %v562_v9 = vmul.f32 %v466_v62, %v426_v1 }
  0x40   : > { %v595_v10 = vpack.c.bf16 %v563_v3, %v531_v2 }
  0x41   : > { %v594_v13 = vpack.c.bf16 %v562_v9, %v530_v8 }
  0x4b   : > { %1440 = vmatmul.msk.bf16.vlgmr.msrb.gmra.mxu0 %vm616_vm0, %v1626_v29  ;;  %1441 = vmatmul.msk.bf16.vlgmr.msrb.gmra.mxu1 %vm616_vm0, %v1626_v29 }
  0x4c   : > { %1442 = vmatmul.msk.bf16.vlgmr.msrb.gmra.mxu2 %vm616_vm0, %v1626_v29  ;;  %1443 = vmatmul.msk.bf16.vlgmr.msrb.gmra.mxu3 %vm616_vm0, %v1626_v29 }
  0x4d   : > { %935 = vmatpush.bf16.msrb.mxu2 %v587_v24  ;;  %949 = vmatpush.bf16.msrb.mxu3 %v588_v25 }
  0x4e   : > { %907 = vmatpush.bf16.msrb.mxu0 %v585_v26  ;;  %921 = vmatpush.bf16.msrb.mxu1 %v586_v27 }
  0x5b   : > { %1444 = vmatmul.msk.bf16.vlgmr.msra.gmra.mxu0 %vm616_vm0, %v1626_v29  ;;  %1445 = vmatmul.msk.bf16.vlgmr.msra.gmra.mxu1 %vm616_vm0, %v1626_v29 }
  0x5c   : > { %1446 = vmatmul.msk.bf16.vlgmr.msra.gmra.mxu2 %vm616_vm0, %v1626_v29  ;;  %1447 = vmatmul.msk.bf16.vlgmr.msra.gmra.mxu3 %vm616_vm0, %v1626_v29 }
  0x5d   : > { %991 = vmatpush.bf16.msra.mxu2 %v591_v50  ;;  %1005 = vmatpush.bf16.msra.mxu3 %v592_v51 }
  0x5e   : > { %963 = vmatpush.bf16.msra.mxu0 %v589_v52  ;;  %977 = vmatpush.bf16.msra.mxu1 %v590_v53 }
  0x6b   : > { %1448 = vmatmul.msk.bf16.vlgmr.msrb.gmra.mxu0 %vm616_vm0, %v1626_v29  ;;  %1449 = vmatmul.msk.bf16.vlgmr.msrb.gmra.mxu1 %vm616_vm0, %v1626_v29 }
  0x6c   : > { %1450 = vmatmul.msk.bf16.vlgmr.msrb.gmra.mxu2 %vm616_vm0, %v1626_v29  ;;  %1451 = vmatmul.msk.bf16.vlgmr.msrb.gmra.mxu3 %vm616_vm0, %v1626_v29 }
  0x6d   : > { %1047 = vmatpush.bf16.msrb.mxu2 %v595_v10  ;;  %1061 = vmatpush.bf16.msrb.mxu3 %v596_v11 }
  0x6e   : > { %1019 = vmatpush.bf16.msrb.mxu0 %v593_v12  ;;  %1033 = vmatpush.bf16.msrb.mxu1 %v594_v13 }
  0x74   : > { %v1775_v16 = vpop.permute.xlu2 %1148 }
  0x7b   : > { %1452 = vmatmul.msk.bf16.vlgmr.msra.gmra.mxu0 %vm616_vm0, %v1626_v29  ;;  %1453 = vmatmul.msk.bf16.vlgmr.msra.gmra.mxu1 %vm616_vm0, %v1626_v29 }
  0x7c   : > { %1454 = vmatmul.msk.bf16.vlgmr.msra.gmra.mxu2 %vm616_vm0, %v1626_v29  ;;  %1455 = vmatmul.msk.bf16.vlgmr.msra.gmra.mxu3 %vm616_vm0, %v1626_v29 }
  0x7d   : > { %v1802_v37 = vpop.permute.xlu2 %1153 }
  0x80   : > { %v1771_v14 = vpop.permute.xlu0 %603 }
  0x88   : > { %v1790_v24 = vpop.permute.xlu0 %608 }
  0x89   : > { %v1773_v15 = vpop.permute.xlu1 %1072 }
  0x8b   : > { %1456 = vmatmul.msk.bf16.vlgmr.msrb.gmra.mxu0 %vm616_vm0, %v1626_v29  ;;  %1457 = vmatmul.msk.bf16.vlgmr.msrb.gmra.mxu1 %vm616_vm0, %v1626_v29 }
  0x8c   : > { %1458 = vmatmul.msk.bf16.vlgmr.msrb.gmra.mxu2 %vm616_vm0, %v1626_v29  ;;  %1459 = vmatmul.msk.bf16.vlgmr.msrb.gmra.mxu3 %vm616_vm0, %v1626_v29 }
  0x91   : > { %v1792_v25 = vpop.permute.xlu1 %1077 }
  0x98   : > { %v629_v17 = vpop.f32.mrf.mxu0  ;;  %v643_v18 = vpop.f32.mrf.mxu1 }
  0x99   : > { %v630_v19 = vadd.f32 %v629_v17, %v1771_v14  ;;  %v644_v20 = vadd.f32 %v643_v18, %v1771_v14 }
  0x9b   : > { %v1080_v21 = vmul.f32 %v1773_v15, %v630_v19  ;;  %v1081_v22 = vmul.f32 %v1773_v15, %v644_v20 }
  0x9d   : > { %v1156_v29 = vadd.f32 %v1775_v16, %v1080_v21  ;;  %v1157_v23 = vadd.f32 %v1775_v16, %v1081_v22 }
  0x9f   : > { %1220 = vst [vmem:[%s1786_s29] sm:$0xff] %v1156_v29  ;;  %v657_v26 = vpop.f32.mrf.mxu2  ;;  %v671_v27 = vpop.f32.mrf.mxu3 }
  0xa0   : > { %1221 = vst [vmem:[%s1786_s29 + $0x8] sm:$0xff] %v1157_v23  ;;  %v658_v28 = vadd.f32 %v657_v26, %v1771_v14  ;;  %v672_v30 = vadd.f32 %v671_v27, %v1771_v14  ;;  %v631_v31 = vpop.f32.mrf.mxu0  ;;  %v645_v32 = vpop.f32.mrf.mxu1 }
  0xa1   : > { %v632_v33 = vadd.f32 %v631_v31, %v1790_v24  ;;  %v646_v34 = vadd.f32 %v645_v32, %v1790_v24 }
  0xa2   : > { %v1082_v35 = vmul.f32 %v1773_v15, %v658_v28  ;;  %v1083_v36 = vmul.f32 %v1773_v15, %v672_v30 }
  0xa3   : > { %v1112_v38 = vmul.f32 %v1792_v25, %v632_v33  ;;  %v1113_v39 = vmul.f32 %v1792_v25, %v646_v34 }
  0xa4   : > { %v1158_v40 = vadd.f32 %v1775_v16, %v1082_v35  ;;  %v1159_v41 = vadd.f32 %v1775_v16, %v1083_v36 }
  0xa5   : > { %v1188_v42 = vadd.f32 %v1802_v37, %v1112_v38  ;;  %v1189_v43 = vadd.f32 %v1802_v37, %v1113_v39 }
  0xa6   : > { %1222 = vst [vmem:[%s1786_s29 + $0x10] sm:$0xff] %v1158_v40 }
  0xa7   : > { %1223 = vst [vmem:[%s1786_s29 + $0x18] sm:$0xff] %v1159_v41  ;;  %v659_v44 = vpop.f32.mrf.mxu2  ;;  %v673_v45 = vpop.f32.mrf.mxu3 }
  0xa8   : > { %1252 = vst [vmem:[%s1786_s29 + $0x100] sm:$0xff] %v1188_v42  ;;  %v660_v46 = vadd.f32 %v659_v44, %v1790_v24  ;;  %v674_v47 = vadd.f32 %v673_v45, %v1790_v24  ;;  %v685_v48 = vpop.f32.mrf.mxu0  ;;  %v699_v49 = vpop.f32.mrf.mxu1 }
  0xa9   : > { %1253 = vst [vmem:[%s1786_s29 + $0x108] sm:$0xff] %v1189_v43  ;;  %v686_v50 = vadd.f32 %v685_v48, %v1771_v14  ;;  %v700_v51 = vadd.f32 %v699_v49, %v1771_v14 }
  0xaa   : > { %v1114_v52 = vmul.f32 %v1792_v25, %v660_v46  ;;  %v1115_v53 = vmul.f32 %v1792_v25, %v674_v47 }
  0xab   : > { %v1084_v54 = vmul.f32 %v1773_v15, %v686_v50  ;;  %v1085_v55 = vmul.f32 %v1773_v15, %v700_v51 }
  0xac   : > { %v1190_v56 = vadd.f32 %v1802_v37, %v1114_v52  ;;  %v1191_v57 = vadd.f32 %v1802_v37, %v1115_v53 }
  0xad   : > { %v1160_v58 = vadd.f32 %v1775_v16, %v1084_v54  ;;  %v1161_v59 = vadd.f32 %v1775_v16, %v1085_v55 }
  0xae   : > { %1254 = vst [vmem:[%s1786_s29 + $0x110] sm:$0xff] %v1190_v56 }
  0xaf   : > { %1255 = vst [vmem:[%s1786_s29 + $0x118] sm:$0xff] %v1191_v57  ;;  %v713_v60 = vpop.f32.mrf.mxu2  ;;  %v727_v61 = vpop.f32.mrf.mxu3 }
  0xb0   : > { %1224 = vst [vmem:[%s1786_s29 + $0x20] sm:$0xff] %v1160_v58  ;;  %v714_v62 = vadd.f32 %v713_v60, %v1771_v14  ;;  %v728_v63 = vadd.f32 %v727_v61, %v1771_v14  ;;  %v687_v0 = vpop.f32.mrf.mxu0  ;;  %v701_v1 = vpop.f32.mrf.mxu1 }
  0xb1   : > { %1225 = vst [vmem:[%s1786_s29 + $0x28] sm:$0xff] %v1161_v59  ;;  %v688_v2 = vadd.f32 %v687_v0, %v1790_v24  ;;  %v702_v3 = vadd.f32 %v701_v1, %v1790_v24 }
  0xb2   : > { %v1086_v4 = vmul.f32 %v1773_v15, %v714_v62  ;;  %v1087_v5 = vmul.f32 %v1773_v15, %v728_v63 }
  0xb3   : > { %v1116_v6 = vmul.f32 %v1792_v25, %v688_v2  ;;  %v1117_v7 = vmul.f32 %v1792_v25, %v702_v3 }
  0xb4   : > { %v1162_v8 = vadd.f32 %v1775_v16, %v1086_v4  ;;  %v1163_v9 = vadd.f32 %v1775_v16, %v1087_v5 }
  0xb5   : > { %v1192_v10 = vadd.f32 %v1802_v37, %v1116_v6  ;;  %v1193_v11 = vadd.f32 %v1802_v37, %v1117_v7 }
  0xb6   : > { %1226 = vst [vmem:[%s1786_s29 + $0x30] sm:$0xff] %v1162_v8 }
  0xb7   : > { %1227 = vst [vmem:[%s1786_s29 + $0x38] sm:$0xff] %v1163_v9  ;;  %v715_v12 = vpop.f32.mrf.mxu2  ;;  %v729_v13 = vpop.f32.mrf.mxu3 }
  0xb8   : > { %1256 = vst [vmem:[%s1786_s29 + $0x120] sm:$0xff] %v1192_v10  ;;  %v716_v17 = vadd.f32 %v715_v12, %v1790_v24  ;;  %v730_v18 = vadd.f32 %v729_v13, %v1790_v24  ;;  %v741_v19 = vpop.f32.mrf.mxu0  ;;  %v755_v20 = vpop.f32.mrf.mxu1 }
  0xb9   : > { %1257 = vst [vmem:[%s1786_s29 + $0x128] sm:$0xff] %v1193_v11  ;;  %v742_v21 = vadd.f32 %v741_v19, %v1771_v14  ;;  %v756_v22 = vadd.f32 %v755_v20, %v1771_v14 }
  0xba   : > { %v1118_v29 = vmul.f32 %v1792_v25, %v716_v17  ;;  %v1119_v23 = vmul.f32 %v1792_v25, %v730_v18 }
  0xbb   : > { %v1088_v26 = vmul.f32 %v1773_v15, %v742_v21  ;;  %v1089_v27 = vmul.f32 %v1773_v15, %v756_v22 }
  0xbc   : > { %v1194_v28 = vadd.f32 %v1802_v37, %v1118_v29  ;;  %v1195_v30 = vadd.f32 %v1802_v37, %v1119_v23 }
  0xbd   : > { %v1164_v31 = vadd.f32 %v1775_v16, %v1088_v26  ;;  %v1165_v32 = vadd.f32 %v1775_v16, %v1089_v27 }
  0xbe   : > { %1258 = vst [vmem:[%s1786_s29 + $0x130] sm:$0xff] %v1194_v28 }
  0xbf   : > { %1259 = vst [vmem:[%s1786_s29 + $0x138] sm:$0xff] %v1195_v30  ;;  %v769_v33 = vpop.f32.mrf.mxu2  ;;  %v783_v34 = vpop.f32.mrf.mxu3 }
  0xc0   : > { %1228 = vst [vmem:[%s1786_s29 + $0x40] sm:$0xff] %v1164_v31  ;;  %v770_v35 = vadd.f32 %v769_v33, %v1771_v14  ;;  %v784_v36 = vadd.f32 %v783_v34, %v1771_v14  ;;  %v743_v38 = vpop.f32.mrf.mxu0  ;;  %v757_v39 = vpop.f32.mrf.mxu1 }
  0xc1   : > { %1229 = vst [vmem:[%s1786_s29 + $0x48] sm:$0xff] %v1165_v32  ;;  %v744_v40 = vadd.f32 %v743_v38, %v1790_v24  ;;  %v758_v41 = vadd.f32 %v757_v39, %v1790_v24 }
  0xc2   : > { %v1090_v42 = vmul.f32 %v1773_v15, %v770_v35  ;;  %v1091_v43 = vmul.f32 %v1773_v15, %v784_v36 }
  0xc3   : > { %v1120_v44 = vmul.f32 %v1792_v25, %v744_v40  ;;  %v1121_v45 = vmul.f32 %v1792_v25, %v758_v41 }
  0xc4   : > { %v1166_v46 = vadd.f32 %v1775_v16, %v1090_v42  ;;  %v1167_v47 = vadd.f32 %v1775_v16, %v1091_v43 }
  0xc5   : > { %v1196_v48 = vadd.f32 %v1802_v37, %v1120_v44  ;;  %v1197_v49 = vadd.f32 %v1802_v37, %v1121_v45 }
  0xc6   : > { %1230 = vst [vmem:[%s1786_s29 + $0x50] sm:$0xff] %v1166_v46 }
  0xc7   : > { %1231 = vst [vmem:[%s1786_s29 + $0x58] sm:$0xff] %v1167_v47  ;;  %v771_v50 = vpop.f32.mrf.mxu2  ;;  %v785_v51 = vpop.f32.mrf.mxu3 }
  0xc8   : > { %1260 = vst [vmem:[%s1786_s29 + $0x140] sm:$0xff] %v1196_v48  ;;  %v772_v52 = vadd.f32 %v771_v50, %v1790_v24  ;;  %v786_v53 = vadd.f32 %v785_v51, %v1790_v24  ;;  %v797_v54 = vpop.f32.mrf.mxu0  ;;  %v811_v55 = vpop.f32.mrf.mxu1 }
  0xc9   : > { %1261 = vst [vmem:[%s1786_s29 + $0x148] sm:$0xff] %v1197_v49  ;;  %v798_v56 = vadd.f32 %v797_v54, %v1771_v14  ;;  %v812_v57 = vadd.f32 %v811_v55, %v1771_v14 }
  0xca   : > { %v1122_v58 = vmul.f32 %v1792_v25, %v772_v52  ;;  %v1123_v59 = vmul.f32 %v1792_v25, %v786_v53 }
  0xcb   : > { %v1092_v60 = vmul.f32 %v1773_v15, %v798_v56  ;;  %v1093_v61 = vmul.f32 %v1773_v15, %v812_v57 }
  0xcc   : > { %v1198_v62 = vadd.f32 %v1802_v37, %v1122_v58  ;;  %v1199_v63 = vadd.f32 %v1802_v37, %v1123_v59 }
  0xcd   : > { %v1168_v0 = vadd.f32 %v1775_v16, %v1092_v60  ;;  %v1169_v1 = vadd.f32 %v1775_v16, %v1093_v61 }
  0xce   : > { %1262 = vst [vmem:[%s1786_s29 + $0x150] sm:$0xff] %v1198_v62 }
  0xcf   : > { %1263 = vst [vmem:[%s1786_s29 + $0x158] sm:$0xff] %v1199_v63  ;;  %v825_v2 = vpop.f32.mrf.mxu2  ;;  %v839_v3 = vpop.f32.mrf.mxu3 }
  0xd0   : > { %1232 = vst [vmem:[%s1786_s29 + $0x60] sm:$0xff] %v1168_v0  ;;  %v826_v4 = vadd.f32 %v825_v2, %v1771_v14  ;;  %v840_v5 = vadd.f32 %v839_v3, %v1771_v14  ;;  %v799_v6 = vpop.f32.mrf.mxu0  ;;  %v813_v7 = vpop.f32.mrf.mxu1 }
  0xd1   : > { %1233 = vst [vmem:[%s1786_s29 + $0x68] sm:$0xff] %v1169_v1  ;;  %v800_v8 = vadd.f32 %v799_v6, %v1790_v24  ;;  %v814_v9 = vadd.f32 %v813_v7, %v1790_v24 }
  0xd2   : > { %v1094_v10 = vmul.f32 %v1773_v15, %v826_v4  ;;  %v1095_v11 = vmul.f32 %v1773_v15, %v840_v5 }
  0xd3   : > { %v1124_v12 = vmul.f32 %v1792_v25, %v800_v8  ;;  %v1125_v13 = vmul.f32 %v1792_v25, %v814_v9 }
  0xd4   : > { %v1170_v17 = vadd.f32 %v1775_v16, %v1094_v10  ;;  %v1171_v18 = vadd.f32 %v1775_v16, %v1095_v11 }
  0xd5   : > { %v1200_v19 = vadd.f32 %v1802_v37, %v1124_v12  ;;  %v1201_v20 = vadd.f32 %v1802_v37, %v1125_v13 }
  0xd6   : > { %1234 = vst [vmem:[%s1786_s29 + $0x70] sm:$0xff] %v1170_v17 }
  0xd7   : > { %1235 = vst [vmem:[%s1786_s29 + $0x78] sm:$0xff] %v1171_v18  ;;  %v827_v21 = vpop.f32.mrf.mxu2  ;;  %v841_v22 = vpop.f32.mrf.mxu3 }
  0xd8   : > { %1264 = vst [vmem:[%s1786_s29 + $0x160] sm:$0xff] %v1200_v19  ;;  %v828_v29 = vadd.f32 %v827_v21, %v1790_v24  ;;  %v842_v23 = vadd.f32 %v841_v22, %v1790_v24  ;;  %v853_v26 = vpop.f32.mrf.mxu0  ;;  %v867_v27 = vpop.f32.mrf.mxu1 }
  0xd9   : > { %1265 = vst [vmem:[%s1786_s29 + $0x168] sm:$0xff] %v1201_v20  ;;  %v854_v28 = vadd.f32 %v853_v26, %v1771_v14  ;;  %v868_v30 = vadd.f32 %v867_v27, %v1771_v14 }
  0xda   : > { %v1126_v31 = vmul.f32 %v1792_v25, %v828_v29  ;;  %v1127_v32 = vmul.f32 %v1792_v25, %v842_v23 }
  0xdb   : > { %v1096_v33 = vmul.f32 %v1773_v15, %v854_v28  ;;  %v1097_v34 = vmul.f32 %v1773_v15, %v868_v30 }
  0xdc   : > { %v1202_v35 = vadd.f32 %v1802_v37, %v1126_v31  ;;  %v1203_v36 = vadd.f32 %v1802_v37, %v1127_v32 }
  0xdd   : > { %v1172_v38 = vadd.f32 %v1775_v16, %v1096_v33  ;;  %v1173_v39 = vadd.f32 %v1775_v16, %v1097_v34 }
  0xde   : > { %1266 = vst [vmem:[%s1786_s29 + $0x170] sm:$0xff] %v1202_v35 }
  0xdf   : > { %1267 = vst [vmem:[%s1786_s29 + $0x178] sm:$0xff] %v1203_v36  ;;  %v881_v40 = vpop.f32.mrf.mxu2  ;;  %v895_v41 = vpop.f32.mrf.mxu3 }
  0xe0   : > { %1236 = vst [vmem:[%s1786_s29 + $0x80] sm:$0xff] %v1172_v38  ;;  %v882_v42 = vadd.f32 %v881_v40, %v1771_v14  ;;  %v896_v43 = vadd.f32 %v895_v41, %v1771_v14  ;;  %v855_v44 = vpop.f32.mrf.mxu0  ;;  %v869_v45 = vpop.f32.mrf.mxu1 }
  0xe1   : > { %1237 = vst [vmem:[%s1786_s29 + $0x88] sm:$0xff] %v1173_v39  ;;  %v856_v46 = vadd.f32 %v855_v44, %v1790_v24  ;;  %v870_v47 = vadd.f32 %v869_v45, %v1790_v24 }
  0xe2   : > { %v1098_v48 = vmul.f32 %v1773_v15, %v882_v42  ;;  %v1099_v49 = vmul.f32 %v1773_v15, %v896_v43 }
  0xe3   : > { %v1128_v50 = vmul.f32 %v1792_v25, %v856_v46  ;;  %v1129_v51 = vmul.f32 %v1792_v25, %v870_v47 }
  0xe4   : > { %v1174_v52 = vadd.f32 %v1775_v16, %v1098_v48  ;;  %v1175_v53 = vadd.f32 %v1775_v16, %v1099_v49 }
  0xe5   : > { %v1204_v54 = vadd.f32 %v1802_v37, %v1128_v50  ;;  %v1205_v55 = vadd.f32 %v1802_v37, %v1129_v51 }
  0xe6   : > { %1238 = vst [vmem:[%s1786_s29 + $0x90] sm:$0xff] %v1174_v52 }
  0xe7   : > { %1239 = vst [vmem:[%s1786_s29 + $0x98] sm:$0xff] %v1175_v53  ;;  %v883_v56 = vpop.f32.mrf.mxu2  ;;  %v897_v57 = vpop.f32.mrf.mxu3 }
  0xe8   : > { %1268 = vst [vmem:[%s1786_s29 + $0x180] sm:$0xff] %v1204_v54  ;;  %v884_v58 = vadd.f32 %v883_v56, %v1790_v24  ;;  %v898_v59 = vadd.f32 %v897_v57, %v1790_v24  ;;  %v909_v60 = vpop.f32.mrf.mxu0  ;;  %v923_v61 = vpop.f32.mrf.mxu1 }
  0xe9   : > { %1269 = vst [vmem:[%s1786_s29 + $0x188] sm:$0xff] %v1205_v55  ;;  %v910_v62 = vadd.f32 %v909_v60, %v1771_v14  ;;  %v924_v63 = vadd.f32 %v923_v61, %v1771_v14 }
  0xea   : > { %v1130_v0 = vmul.f32 %v1792_v25, %v884_v58  ;;  %v1131_v1 = vmul.f32 %v1792_v25, %v898_v59 }
  0xeb   : > { %v1100_v2 = vmul.f32 %v1773_v15, %v910_v62  ;;  %v1101_v3 = vmul.f32 %v1773_v15, %v924_v63 }
  0xec   : > { %v1206_v4 = vadd.f32 %v1802_v37, %v1130_v0  ;;  %v1207_v5 = vadd.f32 %v1802_v37, %v1131_v1 }
  0xed   : > { %v1176_v6 = vadd.f32 %v1775_v16, %v1100_v2  ;;  %v1177_v7 = vadd.f32 %v1775_v16, %v1101_v3 }
  0xee   : > { %1270 = vst [vmem:[%s1786_s29 + $0x190] sm:$0xff] %v1206_v4 }
  0xef   : > { %1271 = vst [vmem:[%s1786_s29 + $0x198] sm:$0xff] %v1207_v5  ;;  %v937_v8 = vpop.f32.mrf.mxu2  ;;  %v951_v9 = vpop.f32.mrf.mxu3 }
  0xf0   : > { %1240 = vst [vmem:[%s1786_s29 + $0xa0] sm:$0xff] %v1176_v6  ;;  %v938_v10 = vadd.f32 %v937_v8, %v1771_v14  ;;  %v952_v11 = vadd.f32 %v951_v9, %v1771_v14  ;;  %v911_v12 = vpop.f32.mrf.mxu0  ;;  %v925_v13 = vpop.f32.mrf.mxu1 }
  0xf1   : > { %1241 = vst [vmem:[%s1786_s29 + $0xa8] sm:$0xff] %v1177_v7  ;;  %v912_v17 = vadd.f32 %v911_v12, %v1790_v24  ;;  %v926_v18 = vadd.f32 %v925_v13, %v1790_v24 }
  0xf2   : > { %v1102_v19 = vmul.f32 %v1773_v15, %v938_v10  ;;  %v1103_v20 = vmul.f32 %v1773_v15, %v952_v11 }
  0xf3   : > { %v1132_v21 = vmul.f32 %v1792_v25, %v912_v17  ;;  %v1133_v22 = vmul.f32 %v1792_v25, %v926_v18 }
  0xf4   : > { %v1178_v29 = vadd.f32 %v1775_v16, %v1102_v19  ;;  %v1179_v23 = vadd.f32 %v1775_v16, %v1103_v20 }
  0xf5   : > { %v1208_v26 = vadd.f32 %v1802_v37, %v1132_v21  ;;  %v1209_v27 = vadd.f32 %v1802_v37, %v1133_v22 }
  0xf6   : > { %1242 = vst [vmem:[%s1786_s29 + $0xb0] sm:$0xff] %v1178_v29 }
  0xf7   : > { %1243 = vst [vmem:[%s1786_s29 + $0xb8] sm:$0xff] %v1179_v23  ;;  %v939_v28 = vpop.f32.mrf.mxu2  ;;  %v953_v30 = vpop.f32.mrf.mxu3 }
  0xf8   : > { %1272 = vst [vmem:[%s1786_s29 + $0x1a0] sm:$0xff] %v1208_v26  ;;  %v940_v31 = vadd.f32 %v939_v28, %v1790_v24  ;;  %v954_v32 = vadd.f32 %v953_v30, %v1790_v24  ;;  %v965_v33 = vpop.f32.mrf.mxu0  ;;  %v979_v34 = vpop.f32.mrf.mxu1 }
  0xf9   : > { %1273 = vst [vmem:[%s1786_s29 + $0x1a8] sm:$0xff] %v1209_v27  ;;  %v966_v35 = vadd.f32 %v965_v33, %v1771_v14  ;;  %v980_v36 = vadd.f32 %v979_v34, %v1771_v14 }
  0xfa   : > { %v1134_v38 = vmul.f32 %v1792_v25, %v940_v31  ;;  %v1135_v39 = vmul.f32 %v1792_v25, %v954_v32 }
  0xfb   : > { %v1104_v40 = vmul.f32 %v1773_v15, %v966_v35  ;;  %v1105_v41 = vmul.f32 %v1773_v15, %v980_v36 }
  0xfc   : > { %v1210_v42 = vadd.f32 %v1802_v37, %v1134_v38  ;;  %v1211_v43 = vadd.f32 %v1802_v37, %v1135_v39 }
  0xfd   : > { %v1180_v44 = vadd.f32 %v1775_v16, %v1104_v40  ;;  %v1181_v45 = vadd.f32 %v1775_v16, %v1105_v41 }
  0xfe   : > { %1274 = vst [vmem:[%s1786_s29 + $0x1b0] sm:$0xff] %v1210_v42 }
  0xff   : > { %1275 = vst [vmem:[%s1786_s29 + $0x1b8] sm:$0xff] %v1211_v43  ;;  %v993_v46 = vpop.f32.mrf.mxu2  ;;  %v1007_v47 = vpop.f32.mrf.mxu3 }
 0x100   : > { %1244 = vst [vmem:[%s1786_s29 + $0xc0] sm:$0xff] %v1180_v44  ;;  %v994_v48 = vadd.f32 %v993_v46, %v1771_v14  ;;  %v1008_v49 = vadd.f32 %v1007_v47, %v1771_v14  ;;  %v967_v50 = vpop.f32.mrf.mxu0  ;;  %v981_v51 = vpop.f32.mrf.mxu1 }
 0x101   : > { %1245 = vst [vmem:[%s1786_s29 + $0xc8] sm:$0xff] %v1181_v45  ;;  %v968_v52 = vadd.f32 %v967_v50, %v1790_v24  ;;  %v982_v53 = vadd.f32 %v981_v51, %v1790_v24 }
 0x102   : > { %v1106_v54 = vmul.f32 %v1773_v15, %v994_v48  ;;  %v1107_v55 = vmul.f32 %v1773_v15, %v1008_v49 }
 0x103   : > { %v1136_v56 = vmul.f32 %v1792_v25, %v968_v52  ;;  %v1137_v57 = vmul.f32 %v1792_v25, %v982_v53 }
 0x104   : > { %v1182_v58 = vadd.f32 %v1775_v16, %v1106_v54  ;;  %v1183_v59 = vadd.f32 %v1775_v16, %v1107_v55 }
 0x105   : > { %v1212_v60 = vadd.f32 %v1802_v37, %v1136_v56  ;;  %v1213_v61 = vadd.f32 %v1802_v37, %v1137_v57 }
 0x106   : > { %1246 = vst [vmem:[%s1786_s29 + $0xd0] sm:$0xff] %v1182_v58 }
 0x107   : > { %1247 = vst [vmem:[%s1786_s29 + $0xd8] sm:$0xff] %v1183_v59  ;;  %v995_v62 = vpop.f32.mrf.mxu2  ;;  %v1009_v63 = vpop.f32.mrf.mxu3 }
 0x108   : > { %1276 = vst [vmem:[%s1786_s29 + $0x1c0] sm:$0xff] %v1212_v60  ;;  %v996_v0 = vadd.f32 %v995_v62, %v1790_v24  ;;  %v1010_v1 = vadd.f32 %v1009_v63, %v1790_v24  ;;  %v1021_v2 = vpop.f32.mrf.mxu0  ;;  %v1035_v3 = vpop.f32.mrf.mxu1 }
 0x109   : > { %1277 = vst [vmem:[%s1786_s29 + $0x1c8] sm:$0xff] %v1213_v61  ;;  %v1022_v4 = vadd.f32 %v1021_v2, %v1771_v14  ;;  %v1036_v5 = vadd.f32 %v1035_v3, %v1771_v14 }
 0x10a   : > { %v1138_v6 = vmul.f32 %v1792_v25, %v996_v0  ;;  %v1139_v7 = vmul.f32 %v1792_v25, %v1010_v1 }
 0x10b   : > { %v1108_v8 = vmul.f32 %v1773_v15, %v1022_v4  ;;  %v1109_v9 = vmul.f32 %v1773_v15, %v1036_v5 }
 0x10c   : > { %v1214_v10 = vadd.f32 %v1802_v37, %v1138_v6  ;;  %v1215_v11 = vadd.f32 %v1802_v37, %v1139_v7 }
 0x10d   : > { %v1184_v12 = vadd.f32 %v1775_v16, %v1108_v8  ;;  %v1185_v13 = vadd.f32 %v1775_v16, %v1109_v9 }
 0x10e   : > { %1278 = vst [vmem:[%s1786_s29 + $0x1d0] sm:$0xff] %v1214_v10 }
 0x10f   : > { %1279 = vst [vmem:[%s1786_s29 + $0x1d8] sm:$0xff] %v1215_v11  ;;  %v1049_v17 = vpop.f32.mrf.mxu2  ;;  %v1063_v18 = vpop.f32.mrf.mxu3 }
 0x110   : > { %1248 = vst [vmem:[%s1786_s29 + $0xe0] sm:$0xff] %v1184_v12  ;;  %v1050_v19 = vadd.f32 %v1049_v17, %v1771_v14  ;;  %v1064_v20 = vadd.f32 %v1063_v18, %v1771_v14  ;;  %v1023_v21 = vpop.f32.mrf.mxu0  ;;  %v1037_v22 = vpop.f32.mrf.mxu1 }
 0x111   : > { %1249 = vst [vmem:[%s1786_s29 + $0xe8] sm:$0xff] %v1185_v13  ;;  %v1024_v29 = vadd.f32 %v1023_v21, %v1790_v24  ;;  %v1038_v23 = vadd.f32 %v1037_v22, %v1790_v24 }
 0x112   : > { %v1110_v26 = vmul.f32 %v1773_v15, %v1050_v19  ;;  %v1111_v27 = vmul.f32 %v1773_v15, %v1064_v20 }
 0x113   : > { %v1140_v28 = vmul.f32 %v1792_v25, %v1024_v29  ;;  %v1141_v30 = vmul.f32 %v1792_v25, %v1038_v23 }
 0x114   : > { %v1186_v31 = vadd.f32 %v1775_v16, %v1110_v26  ;;  %v1187_v14 = vadd.f32 %v1775_v16, %v1111_v27 }
 0x115   : > { %v1216_v32 = vadd.f32 %v1802_v37, %v1140_v28  ;;  %v1217_v33 = vadd.f32 %v1802_v37, %v1141_v30 }
 0x116   : > { %1250 = vst [vmem:[%s1786_s29 + $0xf0] sm:$0xff] %v1186_v31 }
 0x117   : > { %1251 = vst [vmem:[%s1786_s29 + $0xf8] sm:$0xff] %v1187_v14  ;;  %v1051_v34 = vpop.f32.mrf.mxu2  ;;  %v1065_v35 = vpop.f32.mrf.mxu3 }
 0x118   : > { %1280 = vst [vmem:[%s1786_s29 + $0x1e0] sm:$0xff] %v1216_v32  ;;  %v1052_v15 = vadd.f32 %v1051_v34, %v1790_v24  ;;  %v1066_v36 = vadd.f32 %v1065_v35, %v1790_v24 }
 0x119   : > { %1281 = vst [vmem:[%s1786_s29 + $0x1e8] sm:$0xff] %v1217_v33 }
 0x11a   : > { %v1142_v38 = vmul.f32 %v1792_v25, %v1052_v15  ;;  %v1143_v39 = vmul.f32 %v1792_v25, %v1066_v36 }
 0x11c   : > { %v1218_v16 = vadd.f32 %v1802_v37, %v1142_v38  ;;  %v1219_v40 = vadd.f32 %v1802_v37, %v1143_v39 }
 0x11e   : > { %1282 = vst [vmem:[%s1786_s29 + $0x1f0] sm:$0xff] %v1218_v16 }
 0x11f   : > { %1283 = vst [vmem:[%s1786_s29 + $0x1f8] sm:$0xff] %v1219_v40 }
 0x120 PF: > { %s16_s23 = sadd.s32 1, %s1517_s23   ;;  %s2062_s21 = smov %s1513_s22 }
 0x121   : > { %p13_p5 = scmp.ge.s32.totalorder %s16_s23, 4   ;;  %s2063_s22 = smov %s2065_s24 }
 0x123   :  { %15 = sbr.rel (!%p13_p5) target bundleno = 2 (0x2), region = 83 }

</bundles_post_ra>
